<compile_context>
chip_gen: v7x
topology: tpu7x:2x2x1
jax: 0.10.0
libtpu: 0.0.40
codegen_flags: <defaults>
</compile_context>

<pallas_src>
import jax
import jax.numpy as jnp
from jax.experimental import pallas as pl
from jax.experimental.pallas import tpu as pltpu

# ---- shapes ------------------------------------------------------------------
B, C, H, W = 2, 128, 16, 16          # input (B, C, H, W) NCHW
SE_R = 8                              # squeeze-excitation reduction ratio
C_SE = C // SE_R                      # 16
HP, WP = H // 2, W // 2               # after AvgPool2d(2) -> 8 x 8
HW = H * W                            # 256
BHW = B * HW                          # 512
FEAT = C * HP * WP                    # 8192 (matches Linear(8192, 2))
NUM_CLASSES = 2


# -----------------------------------------------------------------------------
# Single fused kernel: SE-residual stage + (pool & Linear head folded into the
# per-class weight slabs).  One grid step covers the whole batch.
# -----------------------------------------------------------------------------
def fused_net_kernel(x_ref, w1_ref, b1_ref, w2_ref, b2_ref,
                     wse1_ref, bse1_ref, wse2_ref, bse2_ref,
                     wh_ref, bh_ref, o_ref, feat_ref):
    # ---- Phase 1: channel-mixing 1x1 convs, batched over the whole batch ----
    # Concatenate the per-image (C, HW) slabs along the lane axis -> (C, B*HW):
    # each conv becomes ONE wide MXU matmul instead of B narrow ones.
    x_all = jnp.concatenate([x_ref[b] for b in range(B)], axis=1)      # (C, B*HW) f32
    y = jnp.maximum(
        jnp.dot(w1_ref[...], x_all.astype(jnp.bfloat16),
                preferred_element_type=jnp.float32) + b1_ref[...], 0.0)
    y2 = jnp.dot(w2_ref[...], y.astype(jnp.bfloat16),
                 preferred_element_type=jnp.float32) + b2_ref[...]     # (C, B*HW) f32

    # ---- Phase 2: per-image squeeze-excitation + residual (B tiny: unrolled) ----
    wse1 = wse1_ref[...]; bse1 = bse1_ref[...]
    wse2 = wse2_ref[...]; bse2 = bse2_ref[...]
    for b in range(B):
        lo, hi = b * HW, (b + 1) * HW                                  # aligned lane slice
        y2_b = y2[:, lo:hi]                                            # (C, HW)
        s = jnp.mean(y2_b, axis=1, keepdims=True)                      # (C, 1)
        z = jnp.maximum(
            jnp.dot(wse1, s, preferred_element_type=jnp.float32) + bse1, 0.0)
        g = jax.nn.sigmoid(
            jnp.dot(wse2, z, preferred_element_type=jnp.float32) + bse2)   # (C, 1)
        # channel scale + residual + relu
        feat_ref[b] = jnp.maximum(x_all[:, lo:hi] + y2_b * g, 0.0)     # (C, HW)

    # ---- Phase 3: classifier head, batched over images ----
    # AvgPool2d(2) + NCHW channel-major flatten + Linear(8192, 2) are folded into
    # wh[k]; compute as a batched VPU multiply + lane reduce (no N=2 matmul).
    feats = feat_ref[...]                                              # (B, C, HW)
    col = jax.lax.broadcasted_iota(jnp.int32, (B, NUM_CLASSES), 1)
    logits = jnp.zeros((B, NUM_CLASSES), jnp.float32)
    for k in range(NUM_CLASSES):
        t = jnp.sum(feats * wh_ref[k][None, :, :], axis=2)             # (B, C)
        lk = jnp.sum(t, axis=1, keepdims=True)                         # (B, 1)
        logits = logits + jnp.where(
            col == k, jnp.broadcast_to(lk, (B, NUM_CLASSES)), 0.0)
    o_ref[...] = logits + bh_ref[...]


# -----------------------------------------------------------------------------
# One-time host-side weight prep (outside the per-forward path):
#   - orient stage weights for the (C, HW) layout,
#   - cast the big channel-mixing weights to bf16,
#   - fold AvgPool2d(2) + PyTorch channel-major flatten into the head weights.
# -----------------------------------------------------------------------------
def prepare_params(stage_params, lin_w, lin_b):
    w1, b1, w2, b2, wse1, bse1, wse2, bse2 = stage_params
    prep = {
        "w1": w1.T.astype(jnp.bfloat16),        # (C_out, C_in) bf16
        "b1": b1.reshape(C, 1),
        "w2": w2.T.astype(jnp.bfloat16),
        "b2": b2.reshape(C, 1),
        "wse1": wse1.T,                          # (C_SE, C) f32
        "bse1": bse1.reshape(C_SE, 1),
        "wse2": wse2.T,                          # (C, C_SE) f32
        "bse2": bse2.reshape(C, 1),
    }
    # torch Linear weight: (NUM_CLASSES, FEAT), indexed (cls, c*HP*WP + ph*WP + pw).
    # Fold the 2x2 average pool (repeat to full resolution, scale by 0.25) so the
    # head is a dot against the full-resolution (C, H*W) activation slab.
    w = lin_w.reshape(NUM_CLASSES, C, HP, WP)
    w = jnp.repeat(jnp.repeat(w, 2, axis=2), 2, axis=3) * 0.25   # (NC, C, H, W)
    prep["w_head"] = w.reshape(NUM_CLASSES, C, HW).astype(jnp.float32)
    prep["b_head"] = lin_b.reshape(1, NUM_CLASSES).astype(jnp.float32)
    return prep


# -----------------------------------------------------------------------------
# Forward wrapper: one fused pallas_call, single grid step, no XLA transposes.
# -----------------------------------------------------------------------------
def net_forward(x_nchw, prep):
    x = x_nchw.reshape(B, C, HW)        # free reshape (NCHW -> per-image (C, HW))
    return pl.pallas_call(
        fused_net_kernel,
        out_shape=jax.ShapeDtypeStruct((B, NUM_CLASSES), jnp.float32),
        grid=(1,),
        in_specs=[
            pl.BlockSpec((B, C, HW), lambda i: (0, 0, 0)),
            pl.BlockSpec((C, C), lambda i: (0, 0)),
            pl.BlockSpec((C, 1), lambda i: (0, 0)),
            pl.BlockSpec((C, C), lambda i: (0, 0)),
            pl.BlockSpec((C, 1), lambda i: (0, 0)),
            pl.BlockSpec((C_SE, C), lambda i: (0, 0)),
            pl.BlockSpec((C_SE, 1), lambda i: (0, 0)),
            pl.BlockSpec((C, C_SE), lambda i: (0, 0)),
            pl.BlockSpec((C, 1), lambda i: (0, 0)),
            pl.BlockSpec((NUM_CLASSES, C, HW), lambda i: (0, 0, 0)),
            pl.BlockSpec((1, NUM_CLASSES), lambda i: (0, 0)),
        ],
        out_specs=pl.BlockSpec((B, NUM_CLASSES), lambda i: (0, 0)),
        scratch_shapes=[pltpu.VMEM((B, C, HW), jnp.float32)],
        compiler_params=pltpu.CompilerParams(dimension_semantics=("arbitrary",)),
    )(x, prep["w1"], prep["b1"], prep["w2"], prep["b2"],
      prep["wse1"], prep["bse1"], prep["wse2"], prep["bse2"],
      prep["w_head"], prep["b_head"])


# -----------------------------------------------------------------------------
# Pure-JAX reference (PyTorch semantics: NCHW pool, channel-major flatten, Linear)
# -----------------------------------------------------------------------------
def net_forward_ref(x_nchw, stage_params, lin_w, lin_b):
    w1, b1, w2, b2, wse1, bse1, wse2, bse2 = stage_params
    hi = jax.lax.Precision.HIGHEST
    x = jnp.transpose(x_nchw, (0, 2, 3, 1)).reshape(B, HW, C)
    y = jnp.maximum(jnp.einsum("bpc,cd->bpd", x, w1, precision=hi) + b1, 0.0)
    y2 = jnp.einsum("bpc,cd->bpd", y, w2, precision=hi) + b2
    s = jnp.mean(y2, axis=1, keepdims=True)
    z = jnp.maximum(jnp.einsum("bpc,cd->bpd", s, wse1, precision=hi) + bse1, 0.0)
    g = jax.nn.sigmoid(jnp.einsum("bpc,cd->bpd", z, wse2, precision=hi) + bse2)
    out = jnp.maximum(x + y2 * g, 0.0).reshape(B, H, W, C)
    pooled = out.reshape(B, HP, 2, WP, 2, C).mean(axis=(2, 4))
    xf = jnp.transpose(pooled, (0, 3, 1, 2)).reshape(B, FEAT)   # torch.flatten(x, 1)
    return jnp.dot(xf, lin_w.T, precision=hi) + lin_b


if __name__ == "__main__":
    key = jax.random.PRNGKey(0)
    ks = jax.random.split(key, 12)

    x = jax.random.normal(ks[0], (B, C, H, W), jnp.float32)      # NCHW input

    # deterministic synthetic parameters (shapes implied by the module)
    w1 = jax.random.normal(ks[1], (C, C), jnp.float32) * 0.05
    b1 = jax.random.normal(ks[2], (1, C), jnp.float32) * 0.01
    w2 = jax.random.normal(ks[3], (C, C), jnp.float32) * 0.05
    b2 = jax.random.normal(ks[4], (1, C), jnp.float32) * 0.01
    wse1 = jax.random.normal(ks[5], (C, C_SE), jnp.float32) * 0.05
    bse1 = jax.random.normal(ks[6], (1, C_SE), jnp.float32) * 0.01
    wse2 = jax.random.normal(ks[7], (C_SE, C), jnp.float32) * 0.05
    bse2 = jax.random.normal(ks[8], (1, C), jnp.float32) * 0.01
    stage_params = (w1, b1, w2, b2, wse1, bse1, wse2, bse2)

    # Linear(8192, 2): torch-layout weight (2, 8192) and bias (2,)
    lin_w = jax.random.normal(ks[9], (NUM_CLASSES, FEAT), jnp.float32) * 0.01
    lin_b = jax.random.normal(ks[10], (NUM_CLASSES,), jnp.float32) * 0.01

    prep = prepare_params(stage_params, lin_w, lin_b)   # one-time weight prep

    fwd = jax.jit(net_forward)
    out = jax.block_until_ready(fwd(x, prep))
    assert out.shape == (B, NUM_CLASSES)

    ref = net_forward_ref(x, stage_params, lin_w, lin_b)
    # bf16 MXU operands with f32 accumulation: comfortably within 2e-2 of f32 ref
    assert jnp.allclose(out, ref, rtol=2e-2, atol=2e-2), (out, ref)

    print("KERNEL_OK")
</pallas_src>

<mosaic_0001>
module attributes {stable_mosaic.version = 11 : i64} {
  func.func @fused_net_kernel(%arg0: i32, %arg1: memref<2x128x256xf32, #tpu.memory_space<vmem>>, %arg2: memref<128x128xbf16, #tpu.memory_space<vmem>>, %arg3: memref<128x1xf32, #tpu.memory_space<vmem>>, %arg4: memref<128x128xbf16, #tpu.memory_space<vmem>>, %arg5: memref<128x1xf32, #tpu.memory_space<vmem>>, %arg6: memref<16x128xf32, #tpu.memory_space<vmem>>, %arg7: memref<16x1xf32, #tpu.memory_space<vmem>>, %arg8: memref<128x16xf32, #tpu.memory_space<vmem>>, %arg9: memref<128x1xf32, #tpu.memory_space<vmem>>, %arg10: memref<2x128x256xf32, #tpu.memory_space<vmem>>, %arg11: memref<1x2xf32, #tpu.memory_space<vmem>>, %arg12: memref<2x2xf32, #tpu.memory_space<vmem>>, %arg13: memref<2x128x256xf32, #tpu.memory_space<vmem>>) attributes {dimension_semantics = [#tpu.dimension_semantics<arbitrary>], iteration_bounds = array<i64: 1>, scalar_prefetch = 0 : i64, scratch_operands = 1 : i64, tpu.core_type = #tpu.core_type<tc>, window_params = [{pipeline_mode = #tpu.pipeline_mode<synchronous>, transform_indices = @transform_0, window_bounds = array<i64: 2, 128, 256>}, {pipeline_mode = #tpu.pipeline_mode<synchronous>, transform_indices = @transform_1, window_bounds = array<i64: 128, 128>}, {pipeline_mode = #tpu.pipeline_mode<synchronous>, transform_indices = @transform_2, window_bounds = array<i64: 128, 1>}, {pipeline_mode = #tpu.pipeline_mode<synchronous>, transform_indices = @transform_3, window_bounds = array<i64: 128, 128>}, {pipeline_mode = #tpu.pipeline_mode<synchronous>, transform_indices = @transform_4, window_bounds = array<i64: 128, 1>}, {pipeline_mode = #tpu.pipeline_mode<synchronous>, transform_indices = @transform_5, window_bounds = array<i64: 16, 128>}, {pipeline_mode = #tpu.pipeline_mode<synchronous>, transform_indices = @transform_6, window_bounds = array<i64: 16, 1>}, {pipeline_mode = #tpu.pipeline_mode<synchronous>, transform_indices = @transform_7, window_bounds = array<i64: 128, 16>}, {pipeline_mode = #tpu.pipeline_mode<synchronous>, transform_indices = @transform_8, window_bounds = array<i64: 128, 1>}, {pipeline_mode = #tpu.pipeline_mode<synchronous>, transform_indices = @transform_9, window_bounds = array<i64: 2, 128, 256>}, {pipeline_mode = #tpu.pipeline_mode<synchronous>, transform_indices = @transform_10, window_bounds = array<i64: 1, 2>}, {pipeline_mode = #tpu.pipeline_mode<synchronous>, transform_indices = @transform_11, window_bounds = array<i64: 2, 2>}]} {
    %c0 = arith.constant 0 : index
    %c0_0 = arith.constant 0 : index
    %c0_1 = arith.constant 0 : index
    %0 = vector.load %arg1[%c0, %c0_0, %c0_1] : memref<2x128x256xf32, #tpu.memory_space<vmem>>, vector<1x128x256xf32>
    %1 = vector.shape_cast %0 : vector<1x128x256xf32> to vector<128x256xf32>
    %c1 = arith.constant 1 : index
    %c0_2 = arith.constant 0 : index
    %c0_3 = arith.constant 0 : index
    %2 = vector.load %arg1[%c1, %c0_2, %c0_3] : memref<2x128x256xf32, #tpu.memory_space<vmem>>, vector<1x128x256xf32>
    %3 = vector.shape_cast %2 : vector<1x128x256xf32> to vector<128x256xf32>
    %4 = tpu.concatenate %1, %3 in 1 : vector<128x256xf32>, vector<128x256xf32> -> vector<128x512xf32>
    %c0_4 = arith.constant 0 : index
    %c0_5 = arith.constant 0 : index
    %5 = vector.load %arg2[%c0_4, %c0_5] : memref<128x128xbf16, #tpu.memory_space<vmem>>, vector<128x128xbf16>
    %6 = arith.truncf %4 : vector<128x512xf32> to vector<128x512xbf16>
    %cst = arith.constant dense<0.000000e+00> : vector<128x512xf32>
    %7 = tpu.matmul %5, %6, %cst {dimension_numbers = #tpu.dot_dimension_numbers<[1], [0], [0], [1], [0, 0, 1, 1], [], []>} : vector<128x128xbf16>, vector<128x512xbf16>, vector<128x512xf32> -> vector<128x512xf32>
    %c0_6 = arith.constant 0 : index
    %c0_7 = arith.constant 0 : index
    %8 = vector.load %arg3[%c0_6, %c0_7] : memref<128x1xf32, #tpu.memory_space<vmem>>, vector<128x1xf32>
    %9 = vector.broadcast %8 : vector<128x1xf32> to vector<128x512xf32>
    %10 = arith.addf %7, %9 : vector<128x512xf32>
    %cst_8 = arith.constant 0.000000e+00 : f32
    %11 = vector.broadcast %cst_8 : f32 to vector<128x512xf32>
    %12 = arith.maximumf %10, %11 : vector<128x512xf32>
    %c0_9 = arith.constant 0 : index
    %c0_10 = arith.constant 0 : index
    %13 = vector.load %arg4[%c0_9, %c0_10] : memref<128x128xbf16, #tpu.memory_space<vmem>>, vector<128x128xbf16>
    %14 = arith.truncf %12 : vector<128x512xf32> to vector<128x512xbf16>
    %cst_11 = arith.constant dense<0.000000e+00> : vector<128x512xf32>
    %15 = tpu.matmul %13, %14, %cst_11 {dimension_numbers = #tpu.dot_dimension_numbers<[1], [0], [0], [1], [0, 0, 1, 1], [], []>} : vector<128x128xbf16>, vector<128x512xbf16>, vector<128x512xf32> -> vector<128x512xf32>
    %c0_12 = arith.constant 0 : index
    %c0_13 = arith.constant 0 : index
    %16 = vector.load %arg5[%c0_12, %c0_13] : memref<128x1xf32, #tpu.memory_space<vmem>>, vector<128x1xf32>
    %17 = vector.broadcast %16 : vector<128x1xf32> to vector<128x512xf32>
    %18 = arith.addf %15, %17 : vector<128x512xf32>
    %c0_14 = arith.constant 0 : index
    %c0_15 = arith.constant 0 : index
    %19 = vector.load %arg6[%c0_14, %c0_15] : memref<16x128xf32, #tpu.memory_space<vmem>>, vector<16x128xf32>
    %c0_16 = arith.constant 0 : index
    %c0_17 = arith.constant 0 : index
    %20 = vector.load %arg7[%c0_16, %c0_17] : memref<16x1xf32, #tpu.memory_space<vmem>>, vector<16x1xf32>
    %c0_18 = arith.constant 0 : index
    %c0_19 = arith.constant 0 : index
    %21 = vector.load %arg8[%c0_18, %c0_19] : memref<128x16xf32, #tpu.memory_space<vmem>>, vector<128x16xf32>
    %c0_20 = arith.constant 0 : index
    %c0_21 = arith.constant 0 : index
    %22 = vector.load %arg9[%c0_20, %c0_21] : memref<128x1xf32, #tpu.memory_space<vmem>>, vector<128x1xf32>
    %23 = vector.extract_strided_slice %18 {offsets = [0, 0], sizes = [128, 256], strides = [1, 1]} : vector<128x512xf32> to vector<128x256xf32>
    %cst_22 = arith.constant dense<0.000000e+00> : vector<128xf32>
    %24 = vector.multi_reduction <add>, %23, %cst_22 [1] : vector<128x256xf32> to vector<128xf32>
    %25 = vector.shape_cast %24 : vector<128xf32> to vector<128x1xf32>
    %cst_23 = arith.constant 2.560000e+02 : f32
    %26 = vector.broadcast %cst_23 : f32 to vector<128x1xf32>
    %27 = arith.divf %25, %26 : vector<128x1xf32>
    %cst_24 = arith.constant dense<0.000000e+00> : vector<16x1xf32>
    %28 = tpu.matmul %19, %27, %cst_24 {dimension_numbers = #tpu.dot_dimension_numbers<[1], [0], [0], [1], [0, 0, 1, 1], [], []>} : vector<16x128xf32>, vector<128x1xf32>, vector<16x1xf32> -> vector<16x1xf32>
    %29 = arith.addf %28, %20 : vector<16x1xf32>
    %cst_25 = arith.constant 0.000000e+00 : f32
    %30 = vector.broadcast %cst_25 : f32 to vector<16x1xf32>
    %31 = arith.maximumf %29, %30 : vector<16x1xf32>
    %cst_26 = arith.constant dense<0.000000e+00> : vector<128x1xf32>
    %32 = tpu.matmul %21, %31, %cst_26 {dimension_numbers = #tpu.dot_dimension_numbers<[1], [0], [0], [1], [0, 0, 1, 1], [], []>} : vector<128x16xf32>, vector<16x1xf32>, vector<128x1xf32> -> vector<128x1xf32>
    %33 = arith.addf %32, %22 : vector<128x1xf32>
    %34 = arith.negf %33 : vector<128x1xf32>
    %35 = math.exp %34 : vector<128x1xf32>
    %cst_27 = arith.constant 1.000000e+00 : f32
    %36 = vector.broadcast %cst_27 : f32 to vector<128x1xf32>
    %37 = arith.addf %36, %35 : vector<128x1xf32>
    %38 = arith.divf %36, %37 : vector<128x1xf32>
    %39 = vector.extract_strided_slice %4 {offsets = [0, 0], sizes = [128, 256], strides = [1, 1]} : vector<128x512xf32> to vector<128x256xf32>
    %40 = vector.broadcast %38 : vector<128x1xf32> to vector<128x256xf32>
    %41 = arith.mulf %23, %40 : vector<128x256xf32>
    %42 = arith.addf %39, %41 : vector<128x256xf32>
    %cst_28 = arith.constant 0.000000e+00 : f32
    %43 = vector.broadcast %cst_28 : f32 to vector<128x256xf32>
    %44 = arith.maximumf %42, %43 : vector<128x256xf32>
    %c0_29 = arith.constant 0 : index
    %c0_30 = arith.constant 0 : index
    %c0_31 = arith.constant 0 : index
    %45 = vector.load %arg13[%c0_29, %c0_30, %c0_31] : memref<2x128x256xf32, #tpu.memory_space<vmem>>, vector<1x128x256xf32>
    %46 = vector.shape_cast %45 : vector<1x128x256xf32> to vector<128x256xf32>
    %47 = vector.shape_cast %44 : vector<128x256xf32> to vector<1x128x256xf32>
    tpu.vector_store %arg13[%c0_29, %c0_30, %c0_31], %47 {strides = array<i32>} : memref<2x128x256xf32, #tpu.memory_space<vmem>>, vector<1x128x256xf32>,
    %48 = vector.extract_strided_slice %18 {offsets = [0, 256], sizes = [128, 256], strides = [1, 1]} : vector<128x512xf32> to vector<128x256xf32>
    %cst_32 = arith.constant dense<0.000000e+00> : vector<128xf32>
    %49 = vector.multi_reduction <add>, %48, %cst_32 [1] : vector<128x256xf32> to vector<128xf32>
    %50 = vector.shape_cast %49 : vector<128xf32> to vector<128x1xf32>
    %cst_33 = arith.constant 2.560000e+02 : f32
    %51 = vector.broadcast %cst_33 : f32 to vector<128x1xf32>
    %52 = arith.divf %50, %51 : vector<128x1xf32>
    %cst_34 = arith.constant dense<0.000000e+00> : vector<16x1xf32>
    %53 = tpu.matmul %19, %52, %cst_34 {dimension_numbers = #tpu.dot_dimension_numbers<[1], [0], [0], [1], [0, 0, 1, 1], [], []>} : vector<16x128xf32>, vector<128x1xf32>, vector<16x1xf32> -> vector<16x1xf32>
    %54 = arith.addf %53, %20 : vector<16x1xf32>
    %cst_35 = arith.constant 0.000000e+00 : f32
    %55 = vector.broadcast %cst_35 : f32 to vector<16x1xf32>
    %56 = arith.maximumf %54, %55 : vector<16x1xf32>
    %cst_36 = arith.constant dense<0.000000e+00> : vector<128x1xf32>
    %57 = tpu.matmul %21, %56, %cst_36 {dimension_numbers = #tpu.dot_dimension_numbers<[1], [0], [0], [1], [0, 0, 1, 1], [], []>} : vector<128x16xf32>, vector<16x1xf32>, vector<128x1xf32> -> vector<128x1xf32>
    %58 = arith.addf %57, %22 : vector<128x1xf32>
    %59 = arith.negf %58 : vector<128x1xf32>
    %60 = math.exp %59 : vector<128x1xf32>
    %cst_37 = arith.constant 1.000000e+00 : f32
    %61 = vector.broadcast %cst_37 : f32 to vector<128x1xf32>
    %62 = arith.addf %61, %60 : vector<128x1xf32>
    %63 = arith.divf %61, %62 : vector<128x1xf32>
    %64 = vector.extract_strided_slice %4 {offsets = [0, 256], sizes = [128, 256], strides = [1, 1]} : vector<128x512xf32> to vector<128x256xf32>
    %65 = vector.broadcast %63 : vector<128x1xf32> to vector<128x256xf32>
    %66 = arith.mulf %48, %65 : vector<128x256xf32>
    %67 = arith.addf %64, %66 : vector<128x256xf32>
    %cst_38 = arith.constant 0.000000e+00 : f32
    %68 = vector.broadcast %cst_38 : f32 to vector<128x256xf32>
    %69 = arith.maximumf %67, %68 : vector<128x256xf32>
    %c1_39 = arith.constant 1 : index
    %c0_40 = arith.constant 0 : index
    %c0_41 = arith.constant 0 : index
    %70 = vector.load %arg13[%c1_39, %c0_40, %c0_41] : memref<2x128x256xf32, #tpu.memory_space<vmem>>, vector<1x128x256xf32>
    %71 = vector.shape_cast %70 : vector<1x128x256xf32> to vector<128x256xf32>
    %72 = vector.shape_cast %69 : vector<128x256xf32> to vector<1x128x256xf32>
    tpu.vector_store %arg13[%c1_39, %c0_40, %c0_41], %72 {strides = array<i32>} : memref<2x128x256xf32, #tpu.memory_space<vmem>>, vector<1x128x256xf32>,
    %c0_42 = arith.constant 0 : index
    %c0_43 = arith.constant 0 : index
    %c0_44 = arith.constant 0 : index
    %73 = vector.load %arg13[%c0_42, %c0_43, %c0_44] : memref<2x128x256xf32, #tpu.memory_space<vmem>>, vector<2x128x256xf32>
    %74 = tpu.iota {dimensions = array<i32: 1>} : vector<2x2xi32>
    %cst_45 = arith.constant 0.000000e+00 : f32
    %75 = vector.broadcast %cst_45 : f32 to vector<2x2xf32>
    %c0_46 = arith.constant 0 : index
    %c0_47 = arith.constant 0 : index
    %c0_48 = arith.constant 0 : index
    %76 = vector.load %arg10[%c0_46, %c0_47, %c0_48] : memref<2x128x256xf32, #tpu.memory_space<vmem>>, vector<1x128x256xf32>
    %77 = vector.shape_cast %76 : vector<1x128x256xf32> to vector<128x256xf32>
    %78 = vector.shape_cast %77 : vector<128x256xf32> to vector<1x128x256xf32>
    %79 = vector.broadcast %78 : vector<1x128x256xf32> to vector<2x128x256xf32>
    %80 = arith.mulf %73, %79 : vector<2x128x256xf32>
    %cst_49 = arith.constant dense<0.000000e+00> : vector<2x128xf32>
    %81 = vector.multi_reduction <add>, %80, %cst_49 [2] : vector<2x128x256xf32> to vector<2x128xf32>
    %cst_50 = arith.constant dense<0.000000e+00> : vector<2xf32>
    %82 = vector.multi_reduction <add>, %81, %cst_50 [1] : vector<2x128xf32> to vector<2xf32>
    %83 = vector.shape_cast %82 : vector<2xf32> to vector<2x1xf32>
    %c0_i32 = arith.constant 0 : i32
    %84 = vector.broadcast %c0_i32 : i32 to vector<2x2xi32>
    %85 = arith.cmpi eq, %74, %84 : vector<2x2xi32>
    %86 = vector.shape_cast %83 : vector<2x1xf32> to vector<2x1xf32>
    %87 = vector.broadcast %86 : vector<2x1xf32> to vector<2x2xf32>
    %cst_51 = arith.constant 0.000000e+00 : f32
    %88 = vector.broadcast %cst_51 : f32 to vector<2x2xf32>
    %89 = arith.select %85, %87, %88 : vector<2x2xi1>, vector<2x2xf32>
    %90 = arith.addf %75, %89 : vector<2x2xf32>
    %c1_52 = arith.constant 1 : index
    %c0_53 = arith.constant 0 : index
    %c0_54 = arith.constant 0 : index
    %91 = vector.load %arg10[%c1_52, %c0_53, %c0_54] : memref<2x128x256xf32, #tpu.memory_space<vmem>>, vector<1x128x256xf32>
    %92 = vector.shape_cast %91 : vector<1x128x256xf32> to vector<128x256xf32>
    %93 = vector.shape_cast %92 : vector<128x256xf32> to vector<1x128x256xf32>
    %94 = vector.broadcast %93 : vector<1x128x256xf32> to vector<2x128x256xf32>
    %95 = arith.mulf %73, %94 : vector<2x128x256xf32>
    %cst_55 = arith.constant dense<0.000000e+00> : vector<2x128xf32>
    %96 = vector.multi_reduction <add>, %95, %cst_55 [2] : vector<2x128x256xf32> to vector<2x128xf32>
    %cst_56 = arith.constant dense<0.000000e+00> : vector<2xf32>
    %97 = vector.multi_reduction <add>, %96, %cst_56 [1] : vector<2x128xf32> to vector<2xf32>
    %98 = vector.shape_cast %97 : vector<2xf32> to vector<2x1xf32>
    %c1_i32 = arith.constant 1 : i32
    %99 = vector.broadcast %c1_i32 : i32 to vector<2x2xi32>
    %100 = arith.cmpi eq, %74, %99 : vector<2x2xi32>
    %101 = vector.shape_cast %98 : vector<2x1xf32> to vector<2x1xf32>
    %102 = vector.broadcast %101 : vector<2x1xf32> to vector<2x2xf32>
    %cst_57 = arith.constant 0.000000e+00 : f32
    %103 = vector.broadcast %cst_57 : f32 to vector<2x2xf32>
    %104 = arith.select %100, %102, %103 : vector<2x2xi1>, vector<2x2xf32>
    %105 = arith.addf %90, %104 : vector<2x2xf32>
    %c0_58 = arith.constant 0 : index
    %c0_59 = arith.constant 0 : index
    %106 = vector.load %arg11[%c0_58, %c0_59] : memref<1x2xf32, #tpu.memory_space<vmem>>, vector<1x2xf32>
    %107 = vector.broadcast %106 : vector<1x2xf32> to vector<2x2xf32>
    %108 = arith.addf %105, %107 : vector<2x2xf32>
    %c0_60 = arith.constant 0 : index
    %c0_61 = arith.constant 0 : index
    %109 = vector.load %arg12[%c0_60, %c0_61] : memref<2x2xf32, #tpu.memory_space<vmem>>, vector<2x2xf32>
    tpu.vector_store %arg12[%c0_60, %c0_61], %108 {strides = array<i32>} : memref<2x2xf32, #tpu.memory_space<vmem>>, vector<2x2xf32>,
    return
  }
  func.func @transform_0(%arg0: i32) -> (i32, i32, i32) {
    %c0_i32 = arith.constant 0 : i32
    %c0_i32_0 = arith.constant 0 : i32
    %c0_i32_1 = arith.constant 0 : i32
    %c0_i32_2 = arith.constant 0 : i32
    return %c0_i32, %c0_i32_0, %c0_i32_1 : i32, i32, i32
  }
  func.func @transform_1(%arg0: i32) -> (i32, i32) {
    %c0_i32 = arith.constant 0 : i32
    %c0_i32_0 = arith.constant 0 : i32
    %c0_i32_1 = arith.constant 0 : i32
    return %c0_i32, %c0_i32_0 : i32, i32
  }
  func.func @transform_2(%arg0: i32) -> (i32, i32) {
    %c0_i32 = arith.constant 0 : i32
    %c0_i32_0 = arith.constant 0 : i32
    %c0_i32_1 = arith.constant 0 : i32
    return %c0_i32, %c0_i32_0 : i32, i32
  }
  func.func @transform_3(%arg0: i32) -> (i32, i32) {
    %c0_i32 = arith.constant 0 : i32
    %c0_i32_0 = arith.constant 0 : i32
    %c0_i32_1 = arith.constant 0 : i32
    return %c0_i32, %c0_i32_0 : i32, i32
  }
  func.func @transform_4(%arg0: i32) -> (i32, i32) {
    %c0_i32 = arith.constant 0 : i32
    %c0_i32_0 = arith.constant 0 : i32
    %c0_i32_1 = arith.constant 0 : i32
    return %c0_i32, %c0_i32_0 : i32, i32
  }
  func.func @transform_5(%arg0: i32) -> (i32, i32) {
    %c0_i32 = arith.constant 0 : i32
    %c0_i32_0 = arith.constant 0 : i32
    %c0_i32_1 = arith.constant 0 : i32
    return %c0_i32, %c0_i32_0 : i32, i32
  }
  func.func @transform_6(%arg0: i32) -> (i32, i32) {
    %c0_i32 = arith.constant 0 : i32
    %c0_i32_0 = arith.constant 0 : i32
    %c0_i32_1 = arith.constant 0 : i32
    return %c0_i32, %c0_i32_0 : i32, i32
  }
  func.func @transform_7(%arg0: i32) -> (i32, i32) {
    %c0_i32 = arith.constant 0 : i32
    %c0_i32_0 = arith.constant 0 : i32
    %c0_i32_1 = arith.constant 0 : i32
    return %c0_i32, %c0_i32_0 : i32, i32
  }
  func.func @transform_8(%arg0: i32) -> (i32, i32) {
    %c0_i32 = arith.constant 0 : i32
    %c0_i32_0 = arith.constant 0 : i32
    %c0_i32_1 = arith.constant 0 : i32
    return %c0_i32, %c0_i32_0 : i32, i32
  }
  func.func @transform_9(%arg0: i32) -> (i32, i32, i32) {
    %c0_i32 = arith.constant 0 : i32
    %c0_i32_0 = arith.constant 0 : i32
    %c0_i32_1 = arith.constant 0 : i32
    %c0_i32_2 = arith.constant 0 : i32
    return %c0_i32, %c0_i32_0, %c0_i32_1 : i32, i32, i32
  }
  func.func @transform_10(%arg0: i32) -> (i32, i32) {
    %c0_i32 = arith.constant 0 : i32
    %c0_i32_0 = arith.constant 0 : i32
    %c0_i32_1 = arith.constant 0 : i32
    return %c0_i32, %c0_i32_0 : i32, i32
  }
  func.func @transform_11(%arg0: i32) -> (i32, i32) {
    %c0_i32 = arith.constant 0 : i32
    %c0_i32_0 = arith.constant 0 : i32
    %c0_i32_1 = arith.constant 0 : i32
    return %c0_i32, %c0_i32_0 : i32, i32
  }
}

</mosaic_0001>

<bundles_post_ra>
// kernel: net_forward.1
= control target key start
LH: loop header
LB: loop body
LE: loop exit
PB: predicated region body
PF: predicated region fallthrough
CT: control target
= control target key end

     0   :  { %v3842_v7 = vmov 0   ;;  %s5937_s0 = inlined_call_operand.vmem [shape: f32[2,128,256], index: 0, kind: input, shape index: {}]   ;;  %s5938_s1 = inlined_call_operand.vmem [shape: bf16[128,128], index: 1, kind: input, shape index: {}]   ;;  %s5939_s2 = inlined_call_operand.vmem [shape: f32[128,1], index: 2, kind: input, shape index: {}]   ;;  %s5940_s3 = inlined_call_operand.vmem [shape: bf16[128,128], index: 3, kind: input, shape index: {}]   ;;  %s5941_s4 = inlined_call_operand.vmem [shape: f32[128,1], index: 4, kind: input, shape index: {}]   ;;  %s5942_s5 = inlined_call_operand.vmem [shape: f32[16,128], index: 5, kind: input, shape index: {}]   ;;  %s5943_s6 = inlined_call_operand.vmem [shape: f32[16,1], index: 6, kind: input, shape index: {}]   ;;  %s5944_s7 = inlined_call_operand.vmem [shape: f32[128,16], index: 7, kind: input, shape index: {}]   ;;  %s5945_s8 = inlined_call_operand.vmem [shape: f32[128,1], index: 8, kind: input, shape index: {}]   ;;  %s5946_s9 = inlined_call_operand.vmem [shape: f32[2,128,256], index: 9, kind: input, shape index: {}]   ;;  %s5947_s10 = inlined_call_operand.vmem [shape: f32[1,2], index: 10, kind: input, shape index: {}]   ;;  %s5948_s11 = inlined_call_operand.hbm [shape: f32[2,2], index: 11, kind: output, shape index: {}]  }
   0x1   :  { %v41_v0 = vld [vmem:[%s5937_s0 + $0x8] sm:$0xff]  ;;  %v43_v1 = vld [vmem:[%s5937_s0 + $0x18] sm:$0xff]  ;;  %v40_v5 = vld [vmem:[%s5937_s0] sm:$0xff]  ;;  %329 = vmatprep.mubr.bf16.mxu0 %v3842_v7  ;;  %442 = vmatprep.mubr.bf16.mxu1 %v3842_v7 }
   0x2   :  { %v3176_v2 = vld [vmem:[%s5937_s0 + $0x108] sm:$0xff]  ;;  %v122_v3 = vpack.c.bf16 %v43_v1, %v41_v0  ;;  %v3178_v4 = vld [vmem:[%s5937_s0 + $0x118] sm:$0xff]  ;;  %v42_v6 = vld [vmem:[%s5937_s0 + $0x10] sm:$0xff]  ;;  %3592 = vset.pattern.permute.xlu0 %v3842_v7  ;;  %3593 = vset.pattern.permute.xlu1 %v3842_v7 }
   0x3   :  { %v124_v8 = vpack.c.bf16 %v3178_v4, %v3176_v2  ;;  %v121_v9 = vpack.c.bf16 %v42_v6, %v40_v5  ;;  %v3175_v10 = vld [vmem:[%s5937_s0 + $0x100] sm:$0xff]  ;;  %v3177_v11 = vld [vmem:[%s5937_s0 + $0x110] sm:$0xff]  ;;  %v45_v12 = vld [vmem:[%s5937_s0 + $0x28] sm:$0xff] }
   0x4   :  { %297 = vmatprep.subr.bf16.mxu0 %v122_v3  ;;  %v123_v13 = vpack.c.bf16 %v3177_v11, %v3175_v10  ;;  %v47_v14 = vld [vmem:[%s5937_s0 + $0x38] sm:$0xff]  ;;  %v3180_v15 = vld [vmem:[%s5937_s0 + $0x128] sm:$0xff]  ;;  %v44_v19 = vld [vmem:[%s5937_s0 + $0x20] sm:$0xff] }
   0x5   :  { %v3182_v16 = vld [vmem:[%s5937_s0 + $0x138] sm:$0xff]  ;;  %410 = vmatprep.subr.bf16.mxu1 %v124_v8  ;;  %298 = vmatpush1.bf16.msra.mxu0 %v121_v9  ;;  %v126_v17 = vpack.c.bf16 %v47_v14, %v45_v12  ;;  %v46_v20 = vld [vmem:[%s5937_s0 + $0x30] sm:$0xff]  ;;  %v3179_v21 = vld [vmem:[%s5937_s0 + $0x120] sm:$0xff] }
   0x6   :  { %v128_v18 = vpack.c.bf16 %v3182_v16, %v3180_v15  ;;  %411 = vmatpush1.bf16.msra.mxu1 %v123_v13  ;;  %v125_v22 = vpack.c.bf16 %v46_v20, %v44_v19  ;;  %v3181_v23 = vld [vmem:[%s5937_s0 + $0x130] sm:$0xff]  ;;  %v49_v24 = vld [vmem:[%s5937_s0 + $0x48] sm:$0xff]  ;;  %v51_v25 = vld [vmem:[%s5937_s0 + $0x58] sm:$0xff] }
   0x7   :  { %299 = vmatprep.subr.bf16.mxu0 %v126_v17  ;;  %v127_v26 = vpack.c.bf16 %v3181_v23, %v3179_v21  ;;  %v130_v27 = vpack.c.bf16 %v51_v25, %v49_v24  ;;  %v3184_v28 = vld [vmem:[%s5937_s0 + $0x148] sm:$0xff]  ;;  %v3186_v29 = vld [vmem:[%s5937_s0 + $0x158] sm:$0xff]  ;;  %v48_v30 = vld [vmem:[%s5937_s0 + $0x40] sm:$0xff] }
   0x8   :  { %412 = vmatprep.subr.bf16.mxu1 %v128_v18  ;;  %v132_v31 = vpack.c.bf16 %v3186_v29, %v3184_v28  ;;  %v50_v32 = vld [vmem:[%s5937_s0 + $0x50] sm:$0xff]  ;;  %v3183_v33 = vld [vmem:[%s5937_s0 + $0x140] sm:$0xff]  ;;  %v53_v36 = vld [vmem:[%s5937_s0 + $0x68] sm:$0xff] }
   0x9   :  { %v3185_v34 = vld [vmem:[%s5937_s0 + $0x150] sm:$0xff]  ;;  %300 = vmatpush1.bf16.msra.mxu0 %v125_v22  ;;  %v129_v35 = vpack.c.bf16 %v50_v32, %v48_v30  ;;  %v55_v37 = vld [vmem:[%s5937_s0 + $0x78] sm:$0xff]  ;;  %v3188_v38 = vld [vmem:[%s5937_s0 + $0x168] sm:$0xff] }
   0xa   :  { %413 = vmatpush1.bf16.msra.mxu1 %v127_v26  ;;  %301 = vmatprep.subr.bf16.mxu0 %v130_v27  ;;  %v131_v39 = vpack.c.bf16 %v3185_v34, %v3183_v33  ;;  %v134_v40 = vpack.c.bf16 %v55_v37, %v53_v36  ;;  %v3190_v41 = vld [vmem:[%s5937_s0 + $0x178] sm:$0xff]  ;;  %v52_v42 = vld [vmem:[%s5937_s0 + $0x60] sm:$0xff]  ;;  %v54_v43 = vld [vmem:[%s5937_s0 + $0x70] sm:$0xff] }
   0xb   :  { %414 = vmatprep.subr.bf16.mxu1 %v132_v31  ;;  %v136_v44 = vpack.c.bf16 %v3190_v41, %v3188_v38  ;;  %v3187_v45 = vld [vmem:[%s5937_s0 + $0x160] sm:$0xff]  ;;  %v3189_v46 = vld [vmem:[%s5937_s0 + $0x170] sm:$0xff]  ;;  %v57_v47 = vld [vmem:[%s5937_s0 + $0x88] sm:$0xff]  ;;  %v133_v51 = vpack.c.bf16 %v54_v43, %v52_v42 }
   0xc   :  { %v59_v48 = vld [vmem:[%s5937_s0 + $0x98] sm:$0xff]  ;;  %v3192_v49 = vld [vmem:[%s5937_s0 + $0x188] sm:$0xff]  ;;  %v135_v52 = vpack.c.bf16 %v3189_v46, %v3187_v45  ;;  %v56_v54 = vld [vmem:[%s5937_s0 + $0x80] sm:$0xff] }
   0xd   :  { %v3194_v50 = vld [vmem:[%s5937_s0 + $0x198] sm:$0xff]  ;;  %302 = vmatpush1.bf16.msra.mxu0 %v129_v35  ;;  %v138_v53 = vpack.c.bf16 %v59_v48, %v57_v47  ;;  %v58_v55 = vld [vmem:[%s5937_s0 + $0x90] sm:$0xff]  ;;  %v3191_v56 = vld [vmem:[%s5937_s0 + $0x180] sm:$0xff] }
   0xe   :  { %415 = vmatpush1.bf16.msra.mxu1 %v131_v39  ;;  %303 = vmatprep.subr.bf16.mxu0 %v134_v40  ;;  %v140_v57 = vpack.c.bf16 %v3194_v50, %v3192_v49  ;;  %v3193_v58 = vld [vmem:[%s5937_s0 + $0x190] sm:$0xff]  ;;  %v61_v59 = vld [vmem:[%s5937_s0 + $0xa8] sm:$0xff]  ;;  %v63_v60 = vld [vmem:[%s5937_s0 + $0xb8] sm:$0xff]  ;;  %v137_v63 = vpack.c.bf16 %v58_v55, %v56_v54 }
   0xf   :  { %416 = vmatprep.subr.bf16.mxu1 %v136_v44  ;;  %v3196_v61 = vld [vmem:[%s5937_s0 + $0x1a8] sm:$0xff]  ;;  %v3198_v62 = vld [vmem:[%s5937_s0 + $0x1b8] sm:$0xff]  ;;  %v60_v0 = vld [vmem:[%s5937_s0 + $0xa0] sm:$0xff]  ;;  %v139_v1 = vpack.c.bf16 %v3193_v58, %v3191_v56  ;;  %v142_v2 = vpack.c.bf16 %v63_v60, %v61_v59 }
  0x10   :  { %v62_v3 = vld [vmem:[%s5937_s0 + $0xb0] sm:$0xff]  ;;  %v3195_v4 = vld [vmem:[%s5937_s0 + $0x1a0] sm:$0xff]  ;;  %v144_v6 = vpack.c.bf16 %v3198_v62, %v3196_v61  ;;  %v65_v8 = vld [vmem:[%s5937_s0 + $0xc8] sm:$0xff] }
  0x11   :  { %304 = vmatpush1.bf16.msra.mxu0 %v133_v51  ;;  %v3197_v5 = vld [vmem:[%s5937_s0 + $0x1b0] sm:$0xff]  ;;  %v67_v9 = vld [vmem:[%s5937_s0 + $0xd8] sm:$0xff]  ;;  %v3200_v10 = vld [vmem:[%s5937_s0 + $0x1c8] sm:$0xff]  ;;  %v141_v14 = vpack.c.bf16 %v62_v3, %v60_v0 }
  0x12   :  { %417 = vmatpush1.bf16.msra.mxu1 %v135_v52  ;;  %305 = vmatprep.subr.bf16.mxu0 %v138_v53  ;;  %v3202_v11 = vld [vmem:[%s5937_s0 + $0x1d8] sm:$0xff]  ;;  %v64_v12 = vld [vmem:[%s5937_s0 + $0xc0] sm:$0xff]  ;;  %v66_v13 = vld [vmem:[%s5937_s0 + $0xd0] sm:$0xff]  ;;  %v143_v19 = vpack.c.bf16 %v3197_v5, %v3195_v4  ;;  %v146_v20 = vpack.c.bf16 %v67_v9, %v65_v8 }
  0x13   :  { %418 = vmatprep.subr.bf16.mxu1 %v140_v57  ;;  %v3199_v15 = vld [vmem:[%s5937_s0 + $0x1c0] sm:$0xff]  ;;  %v3201_v16 = vld [vmem:[%s5937_s0 + $0x1d0] sm:$0xff]  ;;  %v69_v17 = vld [vmem:[%s5937_s0 + $0xe8] sm:$0xff]  ;;  %v148_v22 = vpack.c.bf16 %v3202_v11, %v3200_v10  ;;  %v145_v25 = vpack.c.bf16 %v66_v13, %v64_v12 }
  0x14   :  { %v71_v18 = vld [vmem:[%s5937_s0 + $0xf8] sm:$0xff]  ;;  %v3204_v21 = vld [vmem:[%s5937_s0 + $0x1e8] sm:$0xff]  ;;  %v68_v24 = vld [vmem:[%s5937_s0 + $0xe0] sm:$0xff]  ;;  %v147_v27 = vpack.c.bf16 %v3201_v16, %v3199_v15 }
  0x15   :  { %306 = vmatpush1.bf16.msra.mxu0 %v137_v63  ;;  %v3206_v23 = vld [vmem:[%s5937_s0 + $0x1f8] sm:$0xff]  ;;  %v70_v26 = vld [vmem:[%s5937_s0 + $0xf0] sm:$0xff]  ;;  %v150_v28 = vpack.c.bf16 %v71_v18, %v69_v17  ;;  %v3203_v29 = vld [vmem:[%s5937_s0 + $0x1e0] sm:$0xff] }
  0x16   :  { %419 = vmatpush1.bf16.msra.mxu1 %v139_v1  ;;  %307 = vmatprep.subr.bf16.mxu0 %v142_v2  ;;  %v152_v30 = vpack.c.bf16 %v3206_v23, %v3204_v21  ;;  %v3205_v31 = vld [vmem:[%s5937_s0 + $0x1f0] sm:$0xff]  ;;  %v149_v32 = vpack.c.bf16 %v70_v26, %v68_v24  ;;  %v153_v33 = vld [vmem:[%s5939_s2] sm:$0xff]  ;;  %v154_v37 = vld [vmem:[%s5939_s2 + $0x8] sm:$0xff] }
  0x17   :  { %420 = vmatprep.subr.bf16.mxu1 %v144_v6  ;;  %v155_v34 = vld [vmem:[%s5939_s2 + $0x10] sm:$0xff]  ;;  %v151_v35 = vpack.c.bf16 %v3205_v31, %v3203_v29  ;;  %171 = vperm.xlu0 %3592, %v153_v33   ;;  %v3594_v36 = vld [vmem:[%s5938_s1] sm:$0xff]   ;;  %v156_v38 = vld [vmem:[%s5939_s2 + $0x18] sm:$0xff] }
  0x18   :  { %181 = vperm.xlu1 %3593, %v155_v34   ;;  %v157_v39 = vld [vmem:[%s5939_s2 + $0x20] sm:$0xff]  ;;  %v158_v40 = vld [vmem:[%s5939_s2 + $0x28] sm:$0xff]  ;;  %v159_v42 = vld [vmem:[%s5939_s2 + $0x30] sm:$0xff] }
  0x19   :  { %308 = vmatpush1.bf16.msra.mxu0 %v141_v14  ;;  %v3595_v41 = vld [vmem:[%s5938_s1 + $0x8] sm:$0xff]   ;;  %v160_v43 = vld [vmem:[%s5939_s2 + $0x38] sm:$0xff]  ;;  %v161_v44 = vld [vmem:[%s5939_s2 + $0x40] sm:$0xff] }
  0x1a   :  { %421 = vmatpush1.bf16.msra.mxu1 %v143_v19  ;;  %309 = vmatprep.subr.bf16.mxu0 %v146_v20  ;;  %v162_v45 = vld [vmem:[%s5939_s2 + $0x48] sm:$0xff] }
  0x1b   :  { %422 = vmatprep.subr.bf16.mxu1 %v148_v22  ;;  %176 = vperm.xlu0 %3592, %v154_v37  }
  0x1c   :  { %186 = vperm.xlu1 %3593, %v156_v38  }
  0x1d   :  { %310 = vmatpush1.bf16.msra.mxu0 %v145_v25 }
  0x1e   :  { %423 = vmatpush1.bf16.msra.mxu1 %v147_v27  ;;  %311 = vmatprep.subr.bf16.mxu0 %v150_v28 }
  0x1f   :  { %424 = vmatprep.subr.bf16.mxu1 %v152_v30  ;;  %191 = vperm.xlu0 %3592, %v157_v39  }
  0x20   :  { %196 = vperm.xlu1 %3593, %v158_v40  }
  0x21   :  { %312 = vmatpush1.bf16.msra.mxu0 %v149_v32 }
  0x22   :  { %425 = vmatpush1.bf16.msra.mxu1 %v151_v35 }
  0x23   :  { %201 = vperm.xlu0 %3592, %v159_v42  }
  0x24   :  { %330 = vmatmul.mubr.bf16.vlgmr.msra.gmra.mrb[0].mxu0 %v3594_v36  ;;  %206 = vperm.xlu1 %3593, %v160_v43  }
  0x25   :  { %443 = vmatmul.mubr.bf16.vlgmr.msra.gmra.mrb[0].mxu1 %v3594_v36  ;;  %339 = vmatprep.mubr.bf16.mxu0 %v3842_v7 }
  0x26   :  { %452 = vmatprep.mubr.bf16.mxu1 %v3842_v7 }
  0x2c   :  { %340 = vmatmul.mubr.bf16.gmra.mrb[4].mxu0 %v3595_v41 }
  0x2d   :  { %453 = vmatmul.mubr.bf16.gmra.mrb[4].mxu1 %v3595_v41  ;;  %349 = vmatprep.mubr.bf16.mxu0 %v3842_v7 }
  0x2e   :  { %462 = vmatprep.mubr.bf16.mxu1 %v3842_v7 }
  0x2f   :  { %16 = vsyncpa [#allocation4], 0  ;;  %211 = vperm.xlu0 %3592, %v161_v44   ;;  %v3596_v46 = vld [vmem:[%s5938_s1 + $0x10] sm:$0xff]   ;;  %216 = vperm.xlu1 %3593, %v162_v45   ;;  %v164_v48 = vld [vmem:[%s5939_s2 + $0x58] sm:$0xff]  ;;  %vm1183_vm0 = vcmask 130048   ;;  %vm2571_vm1 = vcmask 130112  }
  0x30   :  { %v163_v47 = vld [vmem:[%s5939_s2 + $0x50] sm:$0xff]  ;;  %v165_v49 = vld [vmem:[%s5939_s2 + $0x60] sm:$0xff]  ;;  %v166_v50 = vld [vmem:[%s5939_s2 + $0x68] sm:$0xff]  ;;  %vm2578_vm2 = vcmask 195712   ;;  %vm2585_vm3 = vcmask 261312   ;;  %vm2592_vm4 = vcmask 326912  }
  0x31   :  { %v3597_v51 = vld [vmem:[%s5938_s1 + $0x18] sm:$0xff]   ;;  %v167_v52 = vld [vmem:[%s5939_s2 + $0x70] sm:$0xff]  ;;  %v635_v54 = vld [vmem:[%s5941_s4] sm:$0xff]  ;;  %vm2599_vm5 = vcmask 392512   ;;  %vm2606_vm6 = vcmask 458112   ;;  %vm2613_vm7 = vcmask 523712  }
  0x32   :  { %v168_v53 = vld [vmem:[%s5939_s2 + $0x78] sm:$0xff]  ;;  %v636_v55 = vld [vmem:[%s5941_s4 + $0x8] sm:$0xff]  ;;  %v3598_v56 = vld [vmem:[%s5938_s1 + $0x20] sm:$0xff]   ;;  %vm2620_vm8 = vcmask 589312   ;;  %vm2627_vm9 = vcmask 654912   ;;  %vm2634_vm10 = vcmask 720512  }
  0x33   :  { %221 = vperm.xlu0 %3592, %v163_v47   ;;  %226 = vperm.xlu1 %3593, %v164_v48   ;;  %v637_v57 = vld [vmem:[%s5941_s4 + $0x10] sm:$0xff]  ;;  %v638_v58 = vld [vmem:[%s5941_s4 + $0x18] sm:$0xff]  ;;  %v639_v59 = vld [vmem:[%s5941_s4 + $0x20] sm:$0xff]  ;;  %vm2641_vm11 = vcmask 786112   ;;  %vm2648_vm12 = vcmask 851712   ;;  %vm2655_vm13 = vcmask 917312  }
  0x34   :  { %350 = vmatmul.mubr.bf16.gmra.mrb[8].mxu0 %v3596_v46  ;;  %v640_v60 = vld [vmem:[%s5941_s4 + $0x28] sm:$0xff]  ;;  %v641_v62 = vld [vmem:[%s5941_s4 + $0x30] sm:$0xff]  ;;  %v642_v63 = vld [vmem:[%s5941_s4 + $0x38] sm:$0xff]  ;;  %vm2662_vm14 = vcmask 982912   ;;  %vm2669_vm15 = vcmask 1048512   ;;  %s3843_s15 = smov [#allocation3]  }
  0x35   :  { %463 = vmatmul.mubr.bf16.gmra.mrb[8].mxu1 %v3596_v46  ;;  %359 = vmatprep.mubr.bf16.mxu0 %v3842_v7  ;;  %v3599_v61 = vld [vmem:[%s5938_s1 + $0x28] sm:$0xff]   ;;  %v643_v0 = vld [vmem:[%s5941_s4 + $0x40] sm:$0xff]  ;;  %v3600_v2 = vld [vmem:[%s5938_s1 + $0x30] sm:$0xff]   ;;  %s3167_s16 = sshll.u32 %s3843_s15, 4  ;;  %s3168_s16 = int_to_ptr.vmem [resolvable:$true] %s3167_s16 }
  0x36   :  { %472 = vmatprep.mubr.bf16.mxu1 %v3842_v7  ;;  %v644_v1 = vld [vmem:[%s5941_s4 + $0x48] sm:$0xff]  ;;  %v645_v3 = vld [vmem:[%s5941_s4 + $0x50] sm:$0xff]  ;;  %v646_v4 = vld [vmem:[%s5941_s4 + $0x58] sm:$0xff]  ;;  %s3818_s17 = scalar_lea.vmem %s3168_s16, 32  ;;  %p3823_p1 = scmp.lt.s32.totalorder %s3168_s16, %s3168_s16 }
  0x37   :  { %231 = vperm.xlu0 %3592, %v165_v49   ;;  %236 = vperm.xlu1 %3593, %v166_v50   ;;  %v647_v5 = vld [vmem:[%s5941_s4 + $0x60] sm:$0xff]  ;;  %v648_v6 = vld [vmem:[%s5941_s4 + $0x68] sm:$0xff]  ;;  %v3601_v8 = vld [vmem:[%s5938_s1 + $0x38] sm:$0xff]   ;;  %p3819_p0 = scmp.ne.s32.totalorder %s3168_s16, %s3818_s17  ;;  %p3824_p2 = scmp.lt.s32.totalorder %s3818_s17, %s3818_s17 }
  0x38   :  { %v649_v9 = vld [vmem:[%s5941_s4 + $0x70] sm:$0xff]  ;;  %v650_v10 = vld [vmem:[%s5941_s4 + $0x78] sm:$0xff] }
  0x39   :  { %p3825_p3 = por %p3824_p2, %p3823_p1 }
  0x3b   :  { %241 = vperm.xlu0 %3592, %v167_v52   ;;  %246 = vperm.xlu1 %3593, %v168_v53   ;;  %p3826_p4 = pnand %p3825_p3, %p3819_p0 }
  0x3c   :  { %360 = vmatmul.mubr.bf16.gmra.mrb[12].mxu0 %v3597_v51 }
  0x3d   :  { %473 = vmatmul.mubr.bf16.gmra.mrb[12].mxu1 %v3597_v51  ;;  %369 = vmatprep.mubr.bf16.mxu0 %v3842_v7 }
  0x3e   :  { %482 = vmatprep.mubr.bf16.mxu1 %v3842_v7 }
  0x3f   :  { %653 = vperm.xlu0 %3592, %v635_v54   ;;  %658 = vperm.xlu1 %3593, %v636_v55  }
  0x43   :  { %663 = vperm.xlu0 %3592, %v637_v57   ;;  %668 = vperm.xlu1 %3593, %v638_v58  }
  0x44   :  { %370 = vmatmul.mubr.bf16.gmra.mrb[16].mxu0 %v3598_v56 }
  0x45   :  { %483 = vmatmul.mubr.bf16.gmra.mrb[16].mxu1 %v3598_v56  ;;  %379 = vmatprep.mubr.bf16.mxu0 %v3842_v7 }
  0x46   :  { %492 = vmatprep.mubr.bf16.mxu1 %v3842_v7 }
  0x47   :  { %673 = vperm.xlu0 %3592, %v639_v59   ;;  %678 = vperm.xlu1 %3593, %v640_v60  }
  0x4b   :  { %683 = vperm.xlu0 %3592, %v641_v62   ;;  %688 = vperm.xlu1 %3593, %v642_v63  }
  0x4c   :  { %380 = vmatmul.mubr.bf16.gmra.mrb[20].mxu0 %v3599_v61 }
  0x4d   :  { %493 = vmatmul.mubr.bf16.gmra.mrb[20].mxu1 %v3599_v61  ;;  %389 = vmatprep.mubr.bf16.mxu0 %v3842_v7 }
  0x4e   :  { %502 = vmatprep.mubr.bf16.mxu1 %v3842_v7 }
  0x4f   :  { %693 = vperm.xlu0 %3592, %v643_v0   ;;  %698 = vperm.xlu1 %3593, %v644_v1  }
  0x53   :  { %703 = vperm.xlu0 %3592, %v645_v3   ;;  %708 = vperm.xlu1 %3593, %v646_v4  }
  0x54   :  { %390 = vmatmul.mubr.bf16.gmra.mrb[24].mxu0 %v3600_v2 }
  0x55   :  { %503 = vmatmul.mubr.bf16.gmra.mrb[24].mxu1 %v3600_v2  ;;  %399 = vmatprep.mubr.bf16.mxu0 %v3842_v7 }
  0x56   :  { %512 = vmatprep.mubr.bf16.mxu1 %v3842_v7 }
  0x57   :  { %713 = vperm.xlu0 %3592, %v647_v5   ;;  %718 = vperm.xlu1 %3593, %v648_v6  }
  0x5b   :  { %723 = vperm.xlu0 %3592, %v649_v9   ;;  %728 = vperm.xlu1 %3593, %v650_v10  }
  0x5c   :  { %400 = vmatmul.mubr.bf16.gmra.mrb[28].mxu0 %v3601_v8 }
  0x5d   :  { %513 = vmatmul.mubr.bf16.gmra.mrb[28].mxu1 %v3601_v8  ;;  %811 = vmatprep.mubr.bf16.mxu0 %v3842_v7 }
  0x5e   :  { %924 = vmatprep.mubr.bf16.mxu1 %v3842_v7 }
  0x96   :  { %v172_v11 = vpop.permute.xlu0 %171 }
  0x97   :  { %v182_v12 = vpop.permute.xlu1 %181 }
  0x9a   :  { %v177_v13 = vpop.permute.xlu0 %176 }
  0x9b   :  { %v187_v39 = vpop.permute.xlu1 %186 }
  0x9e   :  { %v192_v2 = vpop.permute.xlu0 %191 }
  0x9f   :  { %v197_v5 = vpop.permute.xlu1 %196 }
  0xf7   :  { %v331_v14 = vpop.f32.mrb[0].mxu0 }
  0xf8   :  { %v332_v15 = vadd.f32 %v331_v14, %v172_v11  ;;  %v333_v16 = vpop.f32.mrb[1].mxu0  ;;  %v444_v17 = vpop.f32.mrb[0].mxu1 }
  0xf9   :  { %v334_v18 = vadd.f32 %v333_v16, %v172_v11  ;;  %v335_v19 = vpop.f32.mrb[2].mxu0  ;;  %v445_v20 = vadd.f32 %v444_v17, %v172_v11  ;;  %v446_v21 = vpop.f32.mrb[1].mxu1 }
  0xfa   :  { %v336_v22 = vadd.f32 %v335_v19, %v177_v13  ;;  %v337_v23 = vpop.f32.mrb[3].mxu0  ;;  %v447_v24 = vadd.f32 %v446_v21, %v172_v11  ;;  %v448_v25 = vpop.f32.mrb[2].mxu1  ;;  %v523_v30 = vmax.f32 %v332_v15, 0.0 }
  0xfb   :  { %v338_v26 = vadd.f32 %v337_v23, %v177_v13  ;;  %v525_v27 = vmax.f32 %v445_v20, 0.0  ;;  %v449_v28 = vadd.f32 %v448_v25, %v177_v13  ;;  %v450_v29 = vpop.f32.mrb[3].mxu1  ;;  %v524_v34 = vmax.f32 %v334_v18, 0.0 }
  0xfc   :  { %v527_v31 = vmax.f32 %v336_v22, 0.0  ;;  %v526_v32 = vmax.f32 %v447_v24, 0.0  ;;  %v451_v33 = vadd.f32 %v450_v29, %v177_v13 }
  0xfd   :  { %v528_v35 = vmax.f32 %v338_v26, 0.0  ;;  %v529_v36 = vmax.f32 %v449_v28, 0.0 }
  0xfe   :  { %v603_v37 = vpack.c.bf16 %v527_v31, %v523_v30  ;;  %v530_v38 = vmax.f32 %v451_v33, 0.0  ;;  %v202_v33 = vpop.permute.xlu0 %201 }
  0xff   :  { %v604_v40 = vpack.c.bf16 %v528_v35, %v524_v34  ;;  %v341_v41 = vpop.f32.mrb[4].mxu0  ;;  %v605_v42 = vpack.c.bf16 %v529_v36, %v525_v27  ;;  %v207_v36 = vpop.permute.xlu1 %206 }
 0x100   :  { %v342_v43 = vadd.f32 %v341_v41, %v182_v12  ;;  %v343_v44 = vpop.f32.mrb[5].mxu0  ;;  %v606_v45 = vpack.c.bf16 %v530_v38, %v526_v32  ;;  %v454_v46 = vpop.f32.mrb[4].mxu1 }
 0x101   :  { %v344_v47 = vadd.f32 %v343_v44, %v182_v12  ;;  %v345_v48 = vpop.f32.mrb[6].mxu0  ;;  %779 = vmatprep.subr.bf16.mxu0 %v604_v40  ;;  %v455_v49 = vadd.f32 %v454_v46, %v182_v12  ;;  %v456_v50 = vpop.f32.mrb[5].mxu1 }
 0x102   :  { %v346_v51 = vadd.f32 %v345_v48, %v187_v39  ;;  %v347_v52 = vpop.f32.mrb[7].mxu0  ;;  %780 = vmatpush1.bf16.msra.mxu0 %v603_v37  ;;  %v457_v53 = vadd.f32 %v456_v50, %v182_v12  ;;  %v458_v54 = vpop.f32.mrb[6].mxu1  ;;  %892 = vmatprep.subr.bf16.mxu1 %v606_v45  ;;  %v531_v59 = vmax.f32 %v342_v43, 0.0 }
 0x103   :  { %v348_v55 = vadd.f32 %v347_v52, %v187_v39  ;;  %v533_v56 = vmax.f32 %v455_v49, 0.0  ;;  %v459_v57 = vadd.f32 %v458_v54, %v187_v39  ;;  %v460_v58 = vpop.f32.mrb[7].mxu1  ;;  %893 = vmatpush1.bf16.msra.mxu1 %v605_v42  ;;  %v532_v63 = vmax.f32 %v344_v47, 0.0 }
 0x104   :  { %v535_v60 = vmax.f32 %v346_v51, 0.0  ;;  %v534_v61 = vmax.f32 %v457_v53, 0.0  ;;  %v461_v62 = vadd.f32 %v460_v58, %v187_v39 }
 0x105   :  { %v536_v0 = vmax.f32 %v348_v55, 0.0  ;;  %v537_v1 = vmax.f32 %v459_v57, 0.0 }
 0x106   :  { %v607_v3 = vpack.c.bf16 %v535_v60, %v531_v59  ;;  %v538_v4 = vmax.f32 %v461_v62, 0.0 }
 0x107   :  { %v608_v6 = vpack.c.bf16 %v536_v0, %v532_v63  ;;  %v351_v8 = vpop.f32.mrb[8].mxu0  ;;  %v609_v9 = vpack.c.bf16 %v537_v1, %v533_v56  ;;  %v212_v63 = vpop.permute.xlu0 %211 }
 0x108   :  { %v352_v10 = vadd.f32 %v351_v8, %v192_v2  ;;  %v353_v11 = vpop.f32.mrb[9].mxu0  ;;  %v610_v12 = vpack.c.bf16 %v538_v4, %v534_v61  ;;  %v464_v13 = vpop.f32.mrb[8].mxu1 }
 0x109   :  { %v354_v14 = vadd.f32 %v353_v11, %v192_v2  ;;  %v355_v15 = vpop.f32.mrb[10].mxu0  ;;  %781 = vmatprep.subr.bf16.mxu0 %v608_v6  ;;  %v465_v16 = vadd.f32 %v464_v13, %v192_v2  ;;  %v466_v17 = vpop.f32.mrb[9].mxu1 }
 0x10a   :  { %v356_v18 = vadd.f32 %v355_v15, %v197_v5  ;;  %v357_v19 = vpop.f32.mrb[11].mxu0  ;;  %782 = vmatpush1.bf16.msra.mxu0 %v607_v3  ;;  %v467_v20 = vadd.f32 %v466_v17, %v192_v2  ;;  %v468_v21 = vpop.f32.mrb[10].mxu1  ;;  %894 = vmatprep.subr.bf16.mxu1 %v610_v12  ;;  %v539_v26 = vmax.f32 %v352_v10, 0.0 }
 0x10b   :  { %v358_v22 = vadd.f32 %v357_v19, %v197_v5  ;;  %v541_v23 = vmax.f32 %v465_v16, 0.0  ;;  %v469_v24 = vadd.f32 %v468_v21, %v197_v5  ;;  %v470_v25 = vpop.f32.mrb[11].mxu1  ;;  %895 = vmatpush1.bf16.msra.mxu1 %v609_v9  ;;  %v540_v30 = vmax.f32 %v354_v14, 0.0  ;;  %v217_v2 = vpop.permute.xlu1 %216 }
 0x10c   :  { %v543_v27 = vmax.f32 %v356_v18, 0.0  ;;  %v542_v28 = vmax.f32 %v467_v20, 0.0  ;;  %v471_v29 = vadd.f32 %v470_v25, %v197_v5 }
 0x10d   :  { %v544_v31 = vmax.f32 %v358_v22, 0.0  ;;  %v545_v32 = vmax.f32 %v469_v24, 0.0 }
 0x10e   :  { %v611_v34 = vpack.c.bf16 %v543_v27, %v539_v26  ;;  %v546_v35 = vmax.f32 %v471_v29, 0.0  ;;  %v222_v29 = vpop.permute.xlu0 %221 }
 0x10f   :  { %v612_v37 = vpack.c.bf16 %v544_v31, %v540_v30  ;;  %v613_v38 = vpack.c.bf16 %v545_v32, %v541_v23  ;;  %v361_v39 = vpop.f32.mrb[12].mxu0 }
 0x110   :  { %v614_v40 = vpack.c.bf16 %v546_v35, %v542_v28  ;;  %v362_v41 = vadd.f32 %v361_v39, %v202_v33  ;;  %v474_v42 = vpop.f32.mrb[12].mxu1  ;;  %v363_v43 = vpop.f32.mrb[13].mxu0 }
 0x111   :  { %v475_v44 = vadd.f32 %v474_v42, %v202_v33  ;;  %v364_v45 = vadd.f32 %v363_v43, %v202_v33  ;;  %v476_v46 = vpop.f32.mrb[13].mxu1  ;;  %v365_v47 = vpop.f32.mrb[14].mxu0  ;;  %783 = vmatprep.subr.bf16.mxu0 %v612_v37 }
 0x112   :  { %v477_v48 = vadd.f32 %v476_v46, %v202_v33  ;;  %v366_v49 = vadd.f32 %v365_v47, %v207_v36  ;;  %v478_v50 = vpop.f32.mrb[14].mxu1  ;;  %v367_v51 = vpop.f32.mrb[15].mxu0  ;;  %784 = vmatpush1.bf16.msra.mxu0 %v611_v34  ;;  %896 = vmatprep.subr.bf16.mxu1 %v614_v40  ;;  %v547_v56 = vmax.f32 %v362_v41, 0.0 }
 0x113   :  { %v549_v52 = vmax.f32 %v475_v44, 0.0  ;;  %v479_v53 = vadd.f32 %v478_v50, %v207_v36  ;;  %v368_v54 = vadd.f32 %v367_v51, %v207_v36  ;;  %v480_v55 = vpop.f32.mrb[15].mxu1  ;;  %897 = vmatpush1.bf16.msra.mxu1 %v613_v38  ;;  %v548_v60 = vmax.f32 %v364_v45, 0.0  ;;  %v227_v33 = vpop.permute.xlu1 %226 }
 0x114   :  { %v550_v57 = vmax.f32 %v477_v48, 0.0  ;;  %v551_v58 = vmax.f32 %v366_v49, 0.0  ;;  %v481_v59 = vadd.f32 %v480_v55, %v207_v36 }
 0x115   :  { %v553_v61 = vmax.f32 %v479_v53, 0.0  ;;  %v552_v62 = vmax.f32 %v368_v54, 0.0 }
 0x116   :  { %v615_v0 = vpack.c.bf16 %v551_v58, %v547_v56  ;;  %v554_v1 = vmax.f32 %v481_v59, 0.0  ;;  %v232_v59 = vpop.permute.xlu0 %231 }
 0x117   :  { %v617_v3 = vpack.c.bf16 %v553_v61, %v549_v52  ;;  %v616_v4 = vpack.c.bf16 %v552_v62, %v548_v60  ;;  %v371_v5 = vpop.f32.mrb[16].mxu0 }
 0x118   :  { %v618_v6 = vpack.c.bf16 %v554_v1, %v550_v57  ;;  %v372_v8 = vadd.f32 %v371_v5, %v212_v63  ;;  %v484_v9 = vpop.f32.mrb[16].mxu1  ;;  %v373_v10 = vpop.f32.mrb[17].mxu0 }
 0x119   :  { %v485_v11 = vadd.f32 %v484_v9, %v212_v63  ;;  %v374_v12 = vadd.f32 %v373_v10, %v212_v63  ;;  %v486_v13 = vpop.f32.mrb[17].mxu1  ;;  %v375_v14 = vpop.f32.mrb[18].mxu0  ;;  %785 = vmatprep.subr.bf16.mxu0 %v616_v4 }
 0x11a   :  { %v487_v15 = vadd.f32 %v486_v13, %v212_v63  ;;  %v376_v16 = vadd.f32 %v375_v14, %v217_v2  ;;  %v488_v17 = vpop.f32.mrb[18].mxu1  ;;  %898 = vmatprep.subr.bf16.mxu1 %v618_v6  ;;  %v377_v18 = vpop.f32.mrb[19].mxu0  ;;  %786 = vmatpush1.bf16.msra.mxu0 %v615_v0  ;;  %v555_v22 = vmax.f32 %v372_v8, 0.0 }
 0x11b   :  { %v489_v19 = vadd.f32 %v488_v17, %v217_v2  ;;  %v378_v20 = vadd.f32 %v377_v18, %v217_v2  ;;  %v490_v21 = vpop.f32.mrb[19].mxu1  ;;  %899 = vmatpush1.bf16.msra.mxu1 %v617_v3  ;;  %v557_v25 = vmax.f32 %v485_v11, 0.0  ;;  %v556_v26 = vmax.f32 %v374_v12, 0.0  ;;  %v237_v63 = vpop.permute.xlu1 %236 }
 0x11c   :  { %v559_v23 = vmax.f32 %v376_v16, 0.0  ;;  %v491_v24 = vadd.f32 %v490_v21, %v217_v2  ;;  %v558_v30 = vmax.f32 %v487_v15, 0.0 }
 0x11d   :  { %v561_v27 = vmax.f32 %v489_v19, 0.0  ;;  %v560_v28 = vmax.f32 %v378_v20, 0.0 }
 0x11e   :  { %v619_v31 = vpack.c.bf16 %v559_v23, %v555_v22  ;;  %v562_v32 = vmax.f32 %v491_v24, 0.0 }
 0x11f   :  { %v621_v34 = vpack.c.bf16 %v561_v27, %v557_v25  ;;  %v620_v35 = vpack.c.bf16 %v560_v28, %v556_v26  ;;  %v381_v36 = vpop.f32.mrb[20].mxu0  ;;  %v242_v26 = vpop.permute.xlu0 %241 }
 0x120   :  { %v622_v37 = vpack.c.bf16 %v562_v32, %v558_v30  ;;  %v382_v38 = vadd.f32 %v381_v36, %v222_v29  ;;  %v494_v39 = vpop.f32.mrb[20].mxu1  ;;  %v383_v40 = vpop.f32.mrb[21].mxu0 }
 0x121   :  { %v495_v41 = vadd.f32 %v494_v39, %v222_v29  ;;  %v384_v42 = vadd.f32 %v383_v40, %v222_v29  ;;  %v496_v43 = vpop.f32.mrb[21].mxu1  ;;  %v385_v44 = vpop.f32.mrb[22].mxu0  ;;  %787 = vmatprep.subr.bf16.mxu0 %v620_v35 }
 0x122   :  { %v497_v45 = vadd.f32 %v496_v43, %v222_v29  ;;  %v386_v46 = vadd.f32 %v385_v44, %v227_v33  ;;  %v498_v47 = vpop.f32.mrb[22].mxu1  ;;  %900 = vmatprep.subr.bf16.mxu1 %v622_v37  ;;  %v387_v48 = vpop.f32.mrb[23].mxu0  ;;  %788 = vmatpush1.bf16.msra.mxu0 %v619_v31  ;;  %v563_v52 = vmax.f32 %v382_v38, 0.0 }
 0x123   :  { %v499_v49 = vadd.f32 %v498_v47, %v227_v33  ;;  %v388_v50 = vadd.f32 %v387_v48, %v227_v33  ;;  %v500_v51 = vpop.f32.mrb[23].mxu1  ;;  %901 = vmatpush1.bf16.msra.mxu1 %v621_v34  ;;  %v565_v55 = vmax.f32 %v495_v41, 0.0  ;;  %v564_v56 = vmax.f32 %v384_v42, 0.0  ;;  %v247_v30 = vpop.permute.xlu1 %246 }
 0x124   :  { %v567_v53 = vmax.f32 %v386_v46, 0.0  ;;  %v501_v54 = vadd.f32 %v500_v51, %v227_v33  ;;  %v566_v60 = vmax.f32 %v497_v45, 0.0 }
 0x125   :  { %v569_v57 = vmax.f32 %v499_v49, 0.0  ;;  %v568_v58 = vmax.f32 %v388_v50, 0.0 }
 0x126   :  { %v623_v61 = vpack.c.bf16 %v567_v53, %v563_v52  ;;  %v570_v62 = vmax.f32 %v501_v54, 0.0 }
 0x127   :  { %v625_v0 = vpack.c.bf16 %v569_v57, %v565_v55  ;;  %v624_v1 = vpack.c.bf16 %v568_v58, %v564_v56  ;;  %v391_v2 = vpop.f32.mrb[24].mxu0 }
 0x128   :  { %v626_v3 = vpack.c.bf16 %v570_v62, %v566_v60  ;;  %v392_v4 = vadd.f32 %v391_v2, %v232_v59  ;;  %v504_v5 = vpop.f32.mrb[24].mxu1  ;;  %v393_v6 = vpop.f32.mrb[25].mxu0  ;;  %v3602_v62 = vld [vmem:[%s5940_s3] sm:$0xff]  }
 0x129   :  { %v505_v8 = vadd.f32 %v504_v5, %v232_v59  ;;  %v394_v9 = vadd.f32 %v393_v6, %v232_v59  ;;  %v506_v10 = vpop.f32.mrb[25].mxu1  ;;  %v395_v11 = vpop.f32.mrb[26].mxu0  ;;  %789 = vmatprep.subr.bf16.mxu0 %v624_v1  ;;  %v3605_v1 = vld [vmem:[%s5940_s3 + $0x18] sm:$0xff]   ;;  %v3606_v2 = vld [vmem:[%s5940_s3 + $0x20] sm:$0xff]  }
 0x12a   :  { %v507_v12 = vadd.f32 %v506_v10, %v232_v59  ;;  %v396_v13 = vadd.f32 %v395_v11, %v237_v63  ;;  %v508_v14 = vpop.f32.mrb[26].mxu1  ;;  %902 = vmatprep.subr.bf16.mxu1 %v626_v3  ;;  %v397_v15 = vpop.f32.mrb[27].mxu0  ;;  %790 = vmatpush1.bf16.msra.mxu0 %v623_v61  ;;  %v571_v19 = vmax.f32 %v392_v4, 0.0  ;;  %v3607_v3 = vld [vmem:[%s5940_s3 + $0x28] sm:$0xff]   ;;  %v3608_v4 = vld [vmem:[%s5940_s3 + $0x30] sm:$0xff]   ;;  %v3609_v5 = vld [vmem:[%s5940_s3 + $0x38] sm:$0xff]  }
 0x12b   :  { %v509_v16 = vadd.f32 %v508_v14, %v237_v63  ;;  %v398_v17 = vadd.f32 %v397_v15, %v237_v63  ;;  %v510_v18 = vpop.f32.mrb[27].mxu1  ;;  %903 = vmatpush1.bf16.msra.mxu1 %v625_v0  ;;  %v573_v22 = vmax.f32 %v505_v8, 0.0  ;;  %v572_v23 = vmax.f32 %v394_v9, 0.0  ;;  %v3604_v0 = vld [vmem:[%s5940_s3 + $0x10] sm:$0xff]   ;;  %v4274_v6 = vpop.permute.xlu0 %653 }
 0x12c   :  { %v575_v20 = vmax.f32 %v396_v13, 0.0  ;;  %v511_v21 = vadd.f32 %v510_v18, %v237_v63  ;;  %v574_v27 = vmax.f32 %v507_v12, 0.0  ;;  %v3603_v63 = vld [vmem:[%s5940_s3 + $0x8] sm:$0xff]   ;;  %v4276_v8 = vpop.permute.xlu1 %658 }
 0x12d   :  { %v577_v24 = vmax.f32 %v509_v16, 0.0  ;;  %v576_v25 = vmax.f32 %v398_v17, 0.0 }
 0x12e   :  { %v627_v28 = vpack.c.bf16 %v575_v20, %v571_v19  ;;  %v578_v29 = vmax.f32 %v511_v21, 0.0 }
 0x12f   :  { %v629_v31 = vpack.c.bf16 %v577_v24, %v573_v22  ;;  %v628_v32 = vpack.c.bf16 %v576_v25, %v572_v23  ;;  %v401_v33 = vpop.f32.mrb[28].mxu0  ;;  %v4302_v22 = vpop.permute.xlu0 %663 }
 0x130   :  { %v630_v34 = vpack.c.bf16 %v578_v29, %v574_v27  ;;  %v402_v35 = vadd.f32 %v401_v33, %v242_v26  ;;  %v514_v36 = vpop.f32.mrb[28].mxu1  ;;  %v403_v37 = vpop.f32.mrb[29].mxu0 }
 0x131   :  { %v515_v38 = vadd.f32 %v514_v36, %v242_v26  ;;  %v404_v39 = vadd.f32 %v403_v37, %v242_v26  ;;  %v516_v40 = vpop.f32.mrb[29].mxu1  ;;  %v405_v41 = vpop.f32.mrb[30].mxu0  ;;  %791 = vmatprep.subr.bf16.mxu0 %v628_v32 }
 0x132   :  { %v517_v42 = vadd.f32 %v516_v40, %v242_v26  ;;  %v406_v43 = vadd.f32 %v405_v41, %v247_v30  ;;  %v518_v44 = vpop.f32.mrb[30].mxu1  ;;  %904 = vmatprep.subr.bf16.mxu1 %v630_v34  ;;  %v407_v45 = vpop.f32.mrb[31].mxu0  ;;  %792 = vmatpush1.bf16.msra.mxu0 %v627_v28  ;;  %v579_v49 = vmax.f32 %v402_v35, 0.0 }
 0x133   :  { %v519_v46 = vadd.f32 %v518_v44, %v247_v30  ;;  %v408_v47 = vadd.f32 %v407_v45, %v247_v30  ;;  %v520_v48 = vpop.f32.mrb[31].mxu1  ;;  %905 = vmatpush1.bf16.msra.mxu1 %v629_v31  ;;  %v581_v52 = vmax.f32 %v515_v38, 0.0  ;;  %v580_v53 = vmax.f32 %v404_v39, 0.0  ;;  %v4304_v23 = vpop.permute.xlu1 %668 }
 0x134   :  { %v583_v50 = vmax.f32 %v406_v43, 0.0  ;;  %v521_v51 = vadd.f32 %v520_v48, %v247_v30  ;;  %v582_v56 = vmax.f32 %v517_v42, 0.0  ;;  %v4328_v37 = vpop.permute.xlu0 %673 }
 0x135   :  { %v585_v54 = vmax.f32 %v519_v46, 0.0  ;;  %v584_v55 = vmax.f32 %v408_v47, 0.0 }
 0x136   :  { %v631_v57 = vpack.c.bf16 %v583_v50, %v579_v49  ;;  %v586_v58 = vmax.f32 %v521_v51, 0.0 }
 0x137   :  { %v633_v59 = vpack.c.bf16 %v585_v54, %v581_v52  ;;  %v632_v60 = vpack.c.bf16 %v584_v55, %v580_v53  ;;  %v4330_v38 = vpop.permute.xlu1 %678 }
 0x138   :  { %v634_v61 = vpack.c.bf16 %v586_v58, %v582_v56  ;;  %v4358_v54 = vpop.permute.xlu0 %683 }
 0x139   :  { %793 = vmatprep.subr.bf16.mxu0 %v632_v60 }
 0x13a   :  { %906 = vmatprep.subr.bf16.mxu1 %v634_v61  ;;  %794 = vmatpush1.bf16.msra.mxu0 %v631_v57 }
 0x13b   :  { %907 = vmatpush1.bf16.msra.mxu1 %v633_v59  ;;  %v4360_v55 = vpop.permute.xlu1 %688 }
 0x13d   :  { %812 = vmatmul.mubr.bf16.vlgmr.msra.gmra.mrb[32].mxu0 %v3602_v62 }
 0x13e   :  { %925 = vmatmul.mubr.bf16.vlgmr.msra.gmra.mrb[32].mxu1 %v3602_v62  ;;  %821 = vmatprep.mubr.bf16.mxu0 %v3842_v7 }
 0x13f   :  { %934 = vmatprep.mubr.bf16.mxu1 %v3842_v7 }
 0x145   :  { %822 = vmatmul.mubr.bf16.gmra.mrb[36].mxu0 %v3603_v63 }
 0x146   :  { %935 = vmatmul.mubr.bf16.gmra.mrb[36].mxu1 %v3603_v63  ;;  %831 = vmatprep.mubr.bf16.mxu0 %v3842_v7 }
 0x147   :  { %944 = vmatprep.mubr.bf16.mxu1 %v3842_v7 }
 0x14d   :  { %832 = vmatmul.mubr.bf16.gmra.mrb[40].mxu0 %v3604_v0 }
 0x14e   :  { %945 = vmatmul.mubr.bf16.gmra.mrb[40].mxu1 %v3604_v0  ;;  %841 = vmatprep.mubr.bf16.mxu0 %v3842_v7 }
 0x14f   :  { %954 = vmatprep.mubr.bf16.mxu1 %v3842_v7 }
 0x155   :  { %842 = vmatmul.mubr.bf16.gmra.mrb[44].mxu0 %v3605_v1 }
 0x156   :  { %955 = vmatmul.mubr.bf16.gmra.mrb[44].mxu1 %v3605_v1  ;;  %851 = vmatprep.mubr.bf16.mxu0 %v3842_v7 }
 0x157   :  { %964 = vmatprep.mubr.bf16.mxu1 %v3842_v7 }
 0x15d   :  { %852 = vmatmul.mubr.bf16.gmra.mrb[48].mxu0 %v3606_v2 }
 0x15e   :  { %965 = vmatmul.mubr.bf16.gmra.mrb[48].mxu1 %v3606_v2  ;;  %861 = vmatprep.mubr.bf16.mxu0 %v3842_v7 }
 0x15f   :  { %974 = vmatprep.mubr.bf16.mxu1 %v3842_v7 }
 0x165   :  { %862 = vmatmul.mubr.bf16.gmra.mrb[52].mxu0 %v3607_v3 }
 0x166   :  { %975 = vmatmul.mubr.bf16.gmra.mrb[52].mxu1 %v3607_v3  ;;  %871 = vmatprep.mubr.bf16.mxu0 %v3842_v7 }
 0x167   :  { %984 = vmatprep.mubr.bf16.mxu1 %v3842_v7 }
 0x16d   :  { %872 = vmatmul.mubr.bf16.gmra.mrb[56].mxu0 %v3608_v4 }
 0x16e   :  { %985 = vmatmul.mubr.bf16.gmra.mrb[56].mxu1 %v3608_v4  ;;  %881 = vmatprep.mubr.bf16.mxu0 %v3842_v7 }
 0x16f   :  { %994 = vmatprep.mubr.bf16.mxu1 %v3842_v7 }
 0x175   :  { %882 = vmatmul.mubr.bf16.gmra.mrb[60].mxu0 %v3609_v5 }
 0x176   :  { %995 = vmatmul.mubr.bf16.gmra.mrb[60].mxu1 %v3609_v5 }
 0x210   :  { %v813_v9 = vpop.f32.mrb[32].mxu0 }
 0x211   :  { %v4279_v10 = vadd.f32 %v813_v9, %v4274_v6  ;;  %v4281_v11 = vpop.f32.mrb[32].mxu1  ;;  %v815_v12 = vpop.f32.mrb[33].mxu0 }
 0x212   :  { %v4284_v13 = vadd.f32 %v815_v12, %v4274_v6  ;;  %v4286_v7 = vpop.f32.mrb[33].mxu1  ;;  %v817_v14 = vpop.f32.mrb[34].mxu0 }
 0x213   :  { %v4289_v15 = vadd.f32 %v817_v14, %v4276_v8  ;;  %v4291_v16 = vpop.f32.mrb[34].mxu1  ;;  %v819_v17 = vpop.f32.mrb[35].mxu0 }
 0x214   :  { %v4294_v18 = vadd.f32 %v819_v17, %v4276_v8  ;;  %v4296_v19 = vpop.f32.mrb[35].mxu1  ;;  %v1041_v20 = vadd.f32 %v4284_v13, %v4279_v10  ;;  %v4386_v9 = vpop.permute.xlu0 %693 }
 0x215   :  { %v4388_v12 = vpop.permute.xlu1 %698 }
 0x216   :  { %1042 = vadd.xlane.f32.xlu0 %v1041_v20  ;;  %v1044_v21 = vadd.f32 %v4294_v18, %v4289_v15 }
 0x218   :  { %v823_v24 = vpop.f32.mrb[36].mxu0  ;;  %1045 = vadd.xlane.f32.xlu1 %v1044_v21 }
 0x219   :  { %v4307_v25 = vadd.f32 %v823_v24, %v4302_v22  ;;  %v4309_v26 = vpop.f32.mrb[36].mxu1  ;;  %v825_v27 = vpop.f32.mrb[37].mxu0 }
 0x21a   :  { %v4312_v28 = vadd.f32 %v825_v27, %v4302_v22  ;;  %v4314_v29 = vpop.f32.mrb[37].mxu1  ;;  %v827_v30 = vpop.f32.mrb[38].mxu0 }
 0x21b   :  { %6029 = vst [vmem:[#allocation6_spill] sm:$0xff] %v4307_v25  ;;  %v4316_v31 = vpop.f32.mrb[38].mxu1  ;;  %v829_v32 = vpop.f32.mrb[39].mxu0  ;;  %v4319_v33 = vadd.f32 %v827_v30, %v4304_v23 }
 0x21c   :  { %6030 = vst [vmem:[#allocation7_spill] sm:$0xff] %v4312_v28  ;;  %v4322_v34 = vadd.f32 %v829_v32, %v4304_v23  ;;  %v4324_v35 = vpop.f32.mrb[39].mxu1  ;;  %v1047_v36 = vadd.f32 %v4312_v28, %v4307_v25  ;;  %v4508_v25 = vadd.f32 %v4296_v19, %v4276_v8 }
 0x21d   :  { %v4528_v19 = vadd.f32 %v4324_v35, %v4304_v23 }
 0x21e   :  { %1048 = vadd.xlane.f32.xlu0 %v1047_v36  ;;  %v1050_v40 = vadd.f32 %v4322_v34, %v4319_v33 }
 0x21f   :  { %6056 = vst [vmem:[#allocation33_spill] sm:$0xff] %v4528_v19 }
 0x220   :  { %v833_v39 = vpop.f32.mrb[40].mxu0 }
 0x221   :  { %v4335_v41 = vadd.f32 %v833_v39, %v4328_v37  ;;  %v4337_v42 = vpop.f32.mrb[40].mxu1  ;;  %v835_v43 = vpop.f32.mrb[41].mxu0 }
 0x222   :  { %v4340_v44 = vadd.f32 %v835_v43, %v4328_v37  ;;  %v4342_v45 = vpop.f32.mrb[41].mxu1  ;;  %v837_v46 = vpop.f32.mrb[42].mxu0  ;;  %1051 = vadd.xlane.f32.xlu0 %v1050_v40 }
 0x223   :  { %6031 = vst [vmem:[#allocation8_spill] sm:$0xff] %v4335_v41  ;;  %v4345_v47 = vadd.f32 %v837_v46, %v4330_v38  ;;  %v4347_v48 = vpop.f32.mrb[42].mxu1  ;;  %v839_v49 = vpop.f32.mrb[43].mxu0 }
 0x224   :  { %6032 = vst [vmem:[#allocation9_spill] sm:$0xff] %v4340_v44  ;;  %v4350_v50 = vadd.f32 %v839_v49, %v4330_v38  ;;  %v4352_v51 = vpop.f32.mrb[43].mxu1  ;;  %v1053_v52 = vadd.f32 %v4340_v44, %v4335_v41 }
 0x225   :  { %6033 = vst [vmem:[#allocation10_spill] sm:$0xff] %v4345_v47 }
 0x226   :  { %6034 = vst [vmem:[#allocation11_spill] sm:$0xff] %v4350_v50  ;;  %1054 = vadd.xlane.f32.xlu1 %v1053_v52  ;;  %v1056_v53 = vadd.f32 %v4350_v50, %v4345_v47  ;;  %v4414_v52 = vpop.permute.xlu0 %703 }
 0x228   :  { %v843_v56 = vpop.f32.mrb[44].mxu0  ;;  %1057 = vadd.xlane.f32.xlu0 %v1056_v53  ;;  %v4416_v53 = vpop.permute.xlu1 %708 }
 0x229   :  { %v4363_v57 = vadd.f32 %v843_v56, %v4358_v54  ;;  %v4365_v58 = vpop.f32.mrb[44].mxu1  ;;  %v845_v59 = vpop.f32.mrb[45].mxu0 }
 0x22a   :  { %v4368_v60 = vadd.f32 %v845_v59, %v4358_v54  ;;  %v4370_v61 = vpop.f32.mrb[45].mxu1  ;;  %v847_v62 = vpop.f32.mrb[46].mxu0 }
 0x22b   :  { %6035 = vst [vmem:[#allocation12_spill] sm:$0xff] %v4363_v57  ;;  %v4373_v63 = vadd.f32 %v847_v62, %v4360_v55  ;;  %v4375_v0 = vpop.f32.mrb[46].mxu1  ;;  %v849_v1 = vpop.f32.mrb[47].mxu0 }
 0x22c   :  { %6036 = vst [vmem:[#allocation13_spill] sm:$0xff] %v4368_v60  ;;  %v4378_v2 = vadd.f32 %v849_v1, %v4360_v55  ;;  %v4380_v3 = vpop.f32.mrb[47].mxu1  ;;  %v1059_v4 = vadd.f32 %v4368_v60, %v4363_v57 }
 0x22d   :  { %6037 = vst [vmem:[#allocation14_spill] sm:$0xff] %v4373_v63 }
 0x22e   :  { %6038 = vst [vmem:[#allocation15_spill] sm:$0xff] %v4378_v2  ;;  %1060 = vadd.xlane.f32.xlu1 %v1059_v4  ;;  %v1062_v5 = vadd.f32 %v4378_v2, %v4373_v63 }
 0x230   :  { %v853_v14 = vpop.f32.mrb[48].mxu0  ;;  %1063 = vadd.xlane.f32.xlu0 %v1062_v5 }
 0x231   :  { %v4391_v17 = vadd.f32 %v853_v14, %v4386_v9  ;;  %v4393_v20 = vpop.f32.mrb[48].mxu1  ;;  %v855_v21 = vpop.f32.mrb[49].mxu0 }
 0x232   :  { %v4396_v24 = vadd.f32 %v855_v21, %v4386_v9  ;;  %v4398_v27 = vpop.f32.mrb[49].mxu1  ;;  %v857_v30 = vpop.f32.mrb[50].mxu0 }
 0x233   :  { %6039 = vst [vmem:[#allocation16_spill] sm:$0xff] %v4391_v17  ;;  %v4401_v32 = vadd.f32 %v857_v30, %v4388_v12  ;;  %v4403_v36 = vpop.f32.mrb[50].mxu1  ;;  %v859_v39 = vpop.f32.mrb[51].mxu0 }
 0x234   :  { %6040 = vst [vmem:[#allocation17_spill] sm:$0xff] %v4396_v24  ;;  %v4406_v40 = vadd.f32 %v859_v39, %v4388_v12  ;;  %v4408_v43 = vpop.f32.mrb[51].mxu1  ;;  %v1065_v46 = vadd.f32 %v4396_v24, %v4391_v17 }
 0x235   :  { %6041 = vst [vmem:[#allocation18_spill] sm:$0xff] %v4401_v32 }
 0x236   :  { %6042 = vst [vmem:[#allocation19_spill] sm:$0xff] %v4406_v40  ;;  %1066 = vadd.xlane.f32.xlu1 %v1065_v46  ;;  %v1068_v49 = vadd.f32 %v4406_v40, %v4401_v32  ;;  %v4442_v40 = vpop.permute.xlu0 %713  ;;  %v4444_v32 = vpop.permute.xlu1 %718 }
 0x238   :  { %v863_v56 = vpop.f32.mrb[52].mxu0  ;;  %1069 = vadd.xlane.f32.xlu0 %v1068_v49 }
 0x239   :  { %v4419_v59 = vadd.f32 %v863_v56, %v4414_v52  ;;  %v4421_v62 = vpop.f32.mrb[52].mxu1  ;;  %v865_v1 = vpop.f32.mrb[53].mxu0 }
 0x23a   :  { %v4424_v4 = vadd.f32 %v865_v1, %v4414_v52  ;;  %v4426_v5 = vpop.f32.mrb[53].mxu1  ;;  %v867_v14 = vpop.f32.mrb[54].mxu0 }
 0x23b   :  { %6043 = vst [vmem:[#allocation20_spill] sm:$0xff] %v4419_v59  ;;  %v4429_v21 = vadd.f32 %v867_v14, %v4416_v53  ;;  %v4431_v30 = vpop.f32.mrb[54].mxu1  ;;  %v869_v39 = vpop.f32.mrb[55].mxu0 }
 0x23c   :  { %6044 = vst [vmem:[#allocation21_spill] sm:$0xff] %v4424_v4  ;;  %v4434_v46 = vadd.f32 %v869_v39, %v4416_v53  ;;  %v4436_v49 = vpop.f32.mrb[55].mxu1  ;;  %v1071_v56 = vadd.f32 %v4424_v4, %v4419_v59  ;;  %v4470_v24 = vpop.permute.xlu0 %723 }
 0x23d   :  { %6045 = vst [vmem:[#allocation22_spill] sm:$0xff] %v4429_v21  ;;  %v4472_v17 = vpop.permute.xlu1 %728 }
 0x23e   :  { %6046 = vst [vmem:[#allocation23_spill] sm:$0xff] %v4434_v46  ;;  %1072 = vadd.xlane.f32.xlu1 %v1071_v56  ;;  %v1074_v1 = vadd.f32 %v4434_v46, %v4429_v21 }
 0x240   :  { %v873_v14 = vpop.f32.mrb[56].mxu0  ;;  %1075 = vadd.xlane.f32.xlu0 %v1074_v1 }
 0x241   :  { %v4447_v60 = vadd.f32 %v873_v14, %v4442_v40  ;;  %v4449_v39 = vpop.f32.mrb[56].mxu1  ;;  %v875_v57 = vpop.f32.mrb[57].mxu0 }
 0x242   :  { %v4452_v2 = vadd.f32 %v875_v57, %v4442_v40  ;;  %v4454_v4 = vpop.f32.mrb[57].mxu1  ;;  %v877_v56 = vpop.f32.mrb[58].mxu0 }
 0x243   :  { %6047 = vst [vmem:[#allocation24_spill] sm:$0xff] %v4447_v60  ;;  %v4457_v46 = vadd.f32 %v877_v56, %v4444_v32  ;;  %v4459_v21 = vpop.f32.mrb[58].mxu1  ;;  %v879_v59 = vpop.f32.mrb[59].mxu0 }
 0x244   :  { %6048 = vst [vmem:[#allocation25_spill] sm:$0xff] %v4452_v2  ;;  %v4462_v1 = vadd.f32 %v879_v59, %v4444_v32  ;;  %v4464_v14 = vpop.f32.mrb[59].mxu1  ;;  %v1077_v63 = vadd.f32 %v4452_v2, %v4447_v60 }
 0x245   :  { %6049 = vst [vmem:[#allocation26_spill] sm:$0xff] %v4457_v46 }
 0x246   :  { %6050 = vst [vmem:[#allocation27_spill] sm:$0xff] %v4462_v1  ;;  %1078 = vadd.xlane.f32.xlu1 %v1077_v63  ;;  %v1080_v57 = vadd.f32 %v4462_v1, %v4457_v46 }
 0x248   :  { %v883_v56 = vpop.f32.mrb[60].mxu0  ;;  %1081 = vadd.xlane.f32.xlu0 %v1080_v57  ;;  %v4491_v57 = vadd.f32 %v4281_v11, %v4274_v6  ;;  %v4514_v11 = vadd.f32 %v4309_v26, %v4302_v22 }
 0x249   :  { %v4475_v44 = vadd.f32 %v883_v56, %v4470_v24  ;;  %v4477_v59 = vpop.f32.mrb[60].mxu1  ;;  %v885_v41 = vpop.f32.mrb[61].mxu0  ;;  %v4495_v56 = vadd.f32 %v4286_v7, %v4274_v6  ;;  %v4518_v7 = vadd.f32 %v4314_v29, %v4302_v22  ;;  %v4534_v22 = vadd.f32 %v4337_v42, %v4328_v37 }
 0x24a   :  { %v4480_v50 = vadd.f32 %v885_v41, %v4470_v24  ;;  %v4482_v2 = vpop.f32.mrb[61].mxu1  ;;  %v887_v63 = vpop.f32.mrb[62].mxu0  ;;  %6053 = vst [vmem:[#allocation30_spill] sm:$0xff] %v4514_v11  ;;  %v4558_v42 = vadd.f32 %v4370_v61, %v4358_v54  ;;  %v4588_v61 = vadd.f32 %v4408_v43, %v4388_v12  ;;  %v4614_v43 = vadd.f32 %v4449_v39, %v4442_v40 }
 0x24b   :  { %v4485_v1 = vadd.f32 %v887_v63, %v4472_v17  ;;  %v4487_v46 = vpop.f32.mrb[62].mxu1  ;;  %v889_v60 = vpop.f32.mrb[63].mxu0  ;;  %v4504_v63 = vadd.f32 %v4291_v16, %v4276_v8  ;;  %6054 = vst [vmem:[#allocation31_spill] sm:$0xff] %v4518_v7  ;;  %v1681_v16 = vadd.f32 %v4495_v56, %v4491_v57  ;;  %v4524_v8 = vadd.f32 %v4316_v31, %v4304_v23 }
 0x24c   :  { %v4498_v41 = vadd.f32 %v889_v60, %v4472_v17  ;;  %v1002_v47 = vpop.f32.mrb[63].mxu1  ;;  %v1083_v28 = vadd.f32 %v4480_v50, %v4475_v44  ;;  %6057 = vst [vmem:[#allocation34_spill] sm:$0xff] %v4534_v22  ;;  %v1687_v29 = vadd.f32 %v4518_v7, %v4514_v11  ;;  %v4544_v23 = vadd.f32 %v4347_v48, %v4330_v38 }
 0x24d   :  { %6051 = vst [vmem:[#allocation28_spill] sm:$0xff] %v4485_v1  ;;  %6055 = vst [vmem:[#allocation32_spill] sm:$0xff] %v4524_v8  ;;  %v1684_v26 = vadd.f32 %v4508_v25, %v4504_v63  ;;  %v4548_v31 = vadd.f32 %v4352_v51, %v4330_v38  ;;  %v1690_v35 = vadd.f32 %v4528_v19, %v4524_v8 }
 0x24e   :  { %6052 = vst [vmem:[#allocation29_spill] sm:$0xff] %v4498_v41  ;;  %1084 = vadd.xlane.f32.xlu1 %v1083_v28  ;;  %v1086_v6 = vadd.f32 %v4498_v41, %v4485_v1  ;;  %v4538_v28 = vadd.f32 %v4342_v45, %v4328_v37  ;;  %6059 = vst [vmem:[#allocation36_spill] sm:$0xff] %v4544_v23  ;;  %v4554_v37 = vadd.f32 %v4365_v58, %v4358_v54 }
 0x24f   :  { %6060 = vst [vmem:[#allocation37_spill] sm:$0xff] %v4548_v31  ;;  %6062 = vst [vmem:[#allocation39_spill] sm:$0xff] %v4558_v42  ;;  %v4564_v38 = vadd.f32 %v4375_v0, %v4360_v55  ;;  %v4568_v48 = vadd.f32 %v4380_v3, %v4360_v55  ;;  %v1696_v51 = vadd.f32 %v4548_v31, %v4544_v23 }
 0x250   :  { %1087 = vadd.xlane.f32.xlu0 %v1086_v6  ;;  %6058 = vst [vmem:[#allocation35_spill] sm:$0xff] %v4538_v28  ;;  %6061 = vst [vmem:[#allocation38_spill] sm:$0xff] %v4554_v37  ;;  %v1693_v45 = vadd.f32 %v4538_v28, %v4534_v22  ;;  %v4574_v54 = vadd.f32 %v4393_v20, %v4386_v9  ;;  %v4578_v58 = vadd.f32 %v4398_v27, %v4386_v9 }
 0x251   :  { %6063 = vst [vmem:[#allocation40_spill] sm:$0xff] %v4564_v38  ;;  %6064 = vst [vmem:[#allocation41_spill] sm:$0xff] %v4568_v48  ;;  %v1699_v60 = vadd.f32 %v4558_v42, %v4554_v37  ;;  %v4584_v55 = vadd.f32 %v4403_v36, %v4388_v12  ;;  %v1702_v0 = vadd.f32 %v4568_v48, %v4564_v38 }
 0x252   :  { %1682 = vadd.xlane.f32.xlu1 %v1681_v16  ;;  %6065 = vst [vmem:[#allocation42_spill] sm:$0xff] %v4574_v54  ;;  %6066 = vst [vmem:[#allocation43_spill] sm:$0xff] %v4578_v58  ;;  %v4594_v3 = vadd.f32 %v4421_v62, %v4414_v52  ;;  %v4598_v9 = vadd.f32 %v4426_v5, %v4414_v52  ;;  %v1705_v20 = vadd.f32 %v4578_v58, %v4574_v54  ;;  %v4847_v54 = vld [vmem:[%s5945_s8 + $0x40] sm:$0xff] }
 0x253   :  { %6067 = vst [vmem:[#allocation44_spill] sm:$0xff] %v4584_v55  ;;  %6068 = vst [vmem:[#allocation45_spill] sm:$0xff] %v4588_v61  ;;  %v4604_v12 = vadd.f32 %v4431_v30, %v4416_v53  ;;  %v4608_v27 = vadd.f32 %v4436_v49, %v4416_v53  ;;  %v1708_v36 = vadd.f32 %v4588_v61, %v4584_v55  ;;  %v4625_v53 = vld [vmem:[%s5942_s5] sm:$0xff] }
 0x254   :  { %1685 = vadd.xlane.f32.xlu0 %v1684_v26  ;;  %6069 = vst [vmem:[#allocation46_spill] sm:$0xff] %v4594_v3  ;;  %6070 = vst [vmem:[#allocation47_spill] sm:$0xff] %v4598_v9  ;;  %v4618_v52 = vadd.f32 %v4454_v4, %v4442_v40  ;;  %v1711_v62 = vadd.f32 %v4598_v9, %v4594_v3  ;;  %3424 = vmatprep.mubr.f32.mxu1 %v4625_v53  ;;  %v4823_v9 = vld [vmem:[%s5945_s8 + $0x20] sm:$0xff] }
 0x255   :  { %6071 = vst [vmem:[#allocation48_spill] sm:$0xff] %v4604_v12  ;;  %6072 = vst [vmem:[#allocation49_spill] sm:$0xff] %v4608_v27  ;;  %v4630_v5 = vadd.f32 %v4459_v21, %v4444_v32  ;;  %v4634_v30 = vadd.f32 %v4464_v14, %v4444_v32  ;;  %v1714_v40 = vadd.f32 %v4608_v27, %v4604_v12  ;;  %v4835_v27 = vld [vmem:[%s5945_s8 + $0x30] sm:$0xff] }
 0x256   :  { %1688 = vadd.xlane.f32.xlu1 %v1687_v29  ;;  %6073 = vst [vmem:[#allocation50_spill] sm:$0xff] %v4614_v43  ;;  %6074 = vst [vmem:[#allocation51_spill] sm:$0xff] %v4618_v52  ;;  %v4640_v4 = vadd.f32 %v4477_v59, %v4470_v24  ;;  %v4644_v49 = vadd.f32 %v4482_v2, %v4470_v24  ;;  %v1717_v21 = vadd.f32 %v4618_v52, %v4614_v43 }
 0x257   :  { %6075 = vst [vmem:[#allocation52_spill] sm:$0xff] %v4630_v5  ;;  %6076 = vst [vmem:[#allocation53_spill] sm:$0xff] %v4634_v30  ;;  %v4650_v32 = vadd.f32 %v4487_v46, %v4472_v17  ;;  %v4653_v39 = vadd.f32 %v1002_v47, %v4472_v17  ;;  %v1720_v14 = vadd.f32 %v4634_v30, %v4630_v5  ;;  %v4818_v5 = vld [vmem:[%s5945_s8 + $0x28] sm:$0xff] }
 0x258   :  { %1691 = vadd.xlane.f32.xlu0 %v1690_v35  ;;  %6077 = vst [vmem:[#allocation54_spill] sm:$0xff] %v4640_v4  ;;  %6078 = vst [vmem:[#allocation55_spill] sm:$0xff] %v4644_v49  ;;  %v1723_v2 = vadd.f32 %v4644_v49, %v4640_v4  ;;  %v4687_v4 = vld [vmem:[%s5944_s7 + $0x8] sm:$0xff] }
 0x259   :  { %6079 = vst [vmem:[#allocation56_spill] sm:$0xff] %v4650_v32  ;;  %6080 = vst [vmem:[#allocation57_spill] sm:$0xff] %v4653_v39  ;;  %v1726_v24 = vadd.f32 %v4653_v39, %v4650_v32  ;;  %v4776_v32 = vld [vmem:[%s5944_s7 + $0x70] sm:$0xff] }
 0x25a   :  { %1694 = vadd.xlane.f32.xlu1 %v1693_v45 }
 0x25c   :  { %1697 = vadd.xlane.f32.xlu0 %v1696_v51 }
 0x25e   :  { %1700 = vadd.xlane.f32.xlu1 %v1699_v60 }
 0x260   :  { %1703 = vadd.xlane.f32.xlu0 %v1702_v0 }
 0x262   :  { %1706 = vadd.xlane.f32.xlu1 %v1705_v20 }
 0x264   :  { %1709 = vadd.xlane.f32.xlu0 %v1708_v36 }
 0x266   :  { %1712 = vadd.xlane.f32.xlu1 %v1711_v62 }
 0x268   :  { %1715 = vadd.xlane.f32.xlu0 %v1714_v40 }
 0x26a   :  { %1718 = vadd.xlane.f32.xlu1 %v1717_v21 }
 0x26c   :  { %1721 = vadd.xlane.f32.xlu0 %v1720_v14 }
 0x26e   :  { %1724 = vadd.xlane.f32.xlu1 %v1723_v2 }
 0x270   :  { %1727 = vadd.xlane.f32.xlu0 %v1726_v24 }
 0x2a3   :  { %v1043_v59 = vpop.xlane.xlu0 %1042 }
 0x2a4   :  { %v1090_v46 = vmul.f32 0.00390625, %v1043_v59 }
 0x2a5   :  { %v1046_v6 = vpop.xlane.xlu1 %1045 }
 0x2a6   :  { %v1091_v16 = vmul.f32 0.00390625, %v1046_v6 }
 0x2a8   :  { %v3518_v26 = vpack.c.bf16 %v1091_v16, %v1090_v46 }
 0x2aa   :  { %3519 = vmatprep.subr.bf16.mxu1 %v3518_v26 }
 0x2ab   :  { %3521 = vmatpush3.bf16.msra.mxu1 %v3518_v26  ;;  %v1049_v47 = vpop.xlane.xlu0 %1048 }
 0x2ac   :  { %v1092_v29 = vmul.f32 0.00390625, %v1049_v47 }
 0x2af   :  { %v1052_v17 = vpop.xlane.xlu0 %1051 }
 0x2b0   :  { %v1093_v35 = vmul.f32 0.00390625, %v1052_v17 }
 0x2b2   :  { %v3522_v45 = vpack.c.bf16 %v1093_v35, %v1092_v29 }
 0x2b3   :  { %v1055_v51 = vpop.xlane.xlu1 %1054 }
 0x2b4   :  { %3523 = vmatprep.subr.bf16.mxu1 %v3522_v45  ;;  %v1094_v0 = vmul.f32 0.00390625, %v1055_v51 }
 0x2b5   :  { %3525 = vmatpush3.bf16.msra.mxu1 %v3522_v45  ;;  %v1058_v60 = vpop.xlane.xlu0 %1057 }
 0x2b6   :  { %v1095_v20 = vmul.f32 0.00390625, %v1058_v60 }
 0x2b8   :  { %v3526_v36 = vpack.c.bf16 %v1095_v20, %v1094_v0 }
 0x2ba   :  { %3527 = vmatprep.subr.bf16.mxu1 %v3526_v36 }
 0x2bb   :  { %v1061_v62 = vpop.xlane.xlu1 %1060  ;;  %3529 = vmatpush3.bf16.msra.mxu1 %v3526_v36 }
 0x2bc   :  { %v1096_v21 = vmul.f32 0.00390625, %v1061_v62 }
 0x2bd   :  { %v1064_v40 = vpop.xlane.xlu0 %1063 }
 0x2be   :  { %v1097_v14 = vmul.f32 0.00390625, %v1064_v40 }
 0x2c0   :  { %v3530_v2 = vpack.c.bf16 %v1097_v14, %v1096_v21 }
 0x2c2   :  { %3531 = vmatprep.subr.bf16.mxu1 %v3530_v2 }
 0x2c3   :  { %v1067_v24 = vpop.xlane.xlu1 %1066  ;;  %3533 = vmatpush3.bf16.msra.mxu1 %v3530_v2  ;;  %v4664_v2 = vld [vmem:[%s5942_s5 + $0x8] sm:$0xff] }
 0x2c4   :  { %v1098_v6 = vmul.f32 0.00390625, %v1067_v24  ;;  %v1009_v24 = vld [vmem:[%s5944_s7] sm:$0xff] }
 0x2c5   :  { %v1070_v59 = vpop.xlane.xlu0 %1069  ;;  %3431 = vmatprep.mubr.msk.f32.mxu0 %vm1183_vm0, %v1009_v24 }
 0x2c6   :  { %v1099_v46 = vmul.f32 0.00390625, %v1070_v59 }
 0x2c8   :  { %v3534_v16 = vpack.c.bf16 %v1099_v46, %v1098_v6 }
 0x2ca   :  { %3535 = vmatprep.subr.bf16.mxu1 %v3534_v16 }
 0x2cb   :  { %v1073_v26 = vpop.xlane.xlu1 %1072  ;;  %3537 = vmatpush3.bf16.msra.mxu1 %v3534_v16 }
 0x2cc   :  { %v1100_v17 = vmul.f32 0.00390625, %v1073_v26  ;;  %v4675_v26 = vld [vmem:[%s5943_s6 + $0x8] sm:$0xff] }
 0x2cd   :  { %v1076_v47 = vpop.xlane.xlu0 %1075 }
 0x2ce   :  { %v1101_v29 = vmul.f32 0.00390625, %v1076_v47 }
 0x2d0   :  { %v3538_v35 = vpack.c.bf16 %v1101_v29, %v1100_v17  ;;  %v4680_v17 = vld [vmem:[%s5943_s6] sm:$0xff] }
 0x2d2   :  { %3539 = vmatprep.subr.bf16.mxu1 %v3538_v35 }
 0x2d3   :  { %v1079_v45 = vpop.xlane.xlu1 %1078  ;;  %3541 = vmatpush3.bf16.msra.mxu1 %v3538_v35 }
 0x2d4   :  { %v1102_v60 = vmul.f32 0.00390625, %v1079_v45 }
 0x2d5   :  { %v1082_v51 = vpop.xlane.xlu0 %1081 }
 0x2d6   :  { %v1103_v0 = vmul.f32 0.00390625, %v1082_v51 }
 0x2d8   :  { %v3542_v20 = vpack.c.bf16 %v1103_v0, %v1102_v60 }
 0x2da   :  { %3543 = vmatprep.subr.bf16.mxu1 %v3542_v20 }
 0x2db   :  { %v1085_v36 = vpop.xlane.xlu1 %1084  ;;  %3545 = vmatpush3.bf16.msra.mxu1 %v3542_v20 }
 0x2dc   :  { %v1104_v40 = vmul.f32 0.00390625, %v1085_v36 }
 0x2dd   :  { %v1088_v62 = vpop.xlane.xlu0 %1087 }
 0x2de   :  { %v1105_v21 = vmul.f32 0.00390625, %v1088_v62 }
 0x2df   :  { %v1683_v6 = vpop.xlane.xlu1 %1682 }
 0x2e0   :  { %v3546_v14 = vpack.c.bf16 %v1105_v21, %v1104_v40  ;;  %v1729_v40 = vmul.f32 0.00390625, %v1683_v6 }
 0x2e1   :  { %v1686_v59 = vpop.xlane.xlu0 %1685 }
 0x2e2   :  { %3547 = vmatprep.subr.bf16.mxu1 %v3546_v14  ;;  %v1730_v20 = vmul.f32 0.00390625, %v1686_v59  ;;  %v4692_v59 = vld [vmem:[%s5944_s7 + $0x10] sm:$0xff] }
 0x2e3   :  { %3549 = vmatpush3.bf16.msra.mxu1 %v3546_v14  ;;  %v1689_v16 = vpop.xlane.xlu1 %1688 }
 0x2e5   :  { %v1692_v46 = vpop.xlane.xlu0 %1691 }
 0x2e6   :  { %3425 = vmatmul.mubr.f32.vlgmr.msra.gmra.mrb[64].mxu1 %v4664_v2  ;;  %v1732_v49 = vmul.f32 0.00390625, %v1692_v46 }
 0x2e7   :  { %3494 = vmatprep.mubr.msk.f32.mxu1 %vm1183_vm0, %v1009_v24  ;;  %v1695_v35 = vpop.xlane.xlu1 %1694  ;;  %v3554_v24 = vpack.c.bf16 %v1730_v20, %v1729_v40  ;;  %v4720_v40 = vld [vmem:[%s5944_s7 + $0x30] sm:$0xff] }
 0x2e9   :  { %v1698_v47 = vpop.xlane.xlu0 %1697 }
 0x2eb   :  { %v1701_v14 = vpop.xlane.xlu1 %1700 }
 0x2ed   :  { %v1704_v62 = vpop.xlane.xlu0 %1703 }
 0x2ef   :  { %v1707_v46 = vpop.xlane.xlu1 %1706 }
 0x3b9   :  { %v3426_v29 = vpop.f32.mrb[64].mxu1 }
 0x3ba   :  { %v1178_v45 = vadd.f32 %v3426_v29, %v4675_v26  ;;  %v1172_v51 = vpop.f32.mrb[65].mxu1  ;;  %v1731_v29 = vmul.f32 0.00390625, %v1689_v16  ;;  %v4701_v16 = vld [vmem:[%s5944_s7 + $0x18] sm:$0xff] }
 0x3bb   :  { %v1173_v60 = vadd.f32 %v1172_v51, %v4680_v17  ;;  %v1734_v51 = vmul.f32 0.00390625, %v1698_v47 }
 0x3bc   :  { %v1182_v0 = vmax.f32 %v1178_v45, 0.0  ;;  %v1710_v45 = vpop.xlane.xlu0 %1709  ;;  %v3558_v6 = vpack.c.bf16 %v1732_v49, %v1731_v29  ;;  %v4706_v49 = vld [vmem:[%s5944_s7 + $0x20] sm:$0xff]  ;;  %v1737_v29 = vmul.f32 0.00390625, %v1707_v46  ;;  %v4743_v46 = vld [vmem:[%s5944_s7 + $0x48] sm:$0xff] }
 0x3bd   :  { %v1181_v36 = vmax.f32 %v1173_v60, 0.0  ;;  %v1733_v60 = vmul.f32 0.00390625, %v1695_v35  ;;  %v4715_v35 = vld [vmem:[%s5944_s7 + $0x28] sm:$0xff] }
 0x3bf   :  { %v3550_v21 = vpack.c.bf16 %v1182_v0, %v1181_v36  ;;  %v3562_v47 = vpack.c.bf16 %v1734_v51, %v1733_v60  ;;  %v1736_v0 = vmul.f32 0.00390625, %v1704_v62  ;;  %v1735_v36 = vmul.f32 0.00390625, %v1701_v14  ;;  %v1713_v62 = vpop.xlane.xlu1 %1712  ;;  %v4729_v14 = vld [vmem:[%s5944_s7 + $0x38] sm:$0xff] }
 0x3c0   :  { %v1716_v20 = vpop.xlane.xlu0 %1715 }
 0x3c1   :  { %3551 = vmatprep.subr.bf16.mxu0 %v3550_v21  ;;  %v1740_v60 = vmul.f32 0.00390625, %v1716_v20 }
 0x3c2   :  { %3553 = vmatpush3.bf16.msra.mxu0 %v3550_v21  ;;  %v3566_v21 = vpack.c.bf16 %v1736_v0, %v1735_v36  ;;  %v1739_v0 = vmul.f32 0.00390625, %v1713_v62  ;;  %v4748_v36 = vld [vmem:[%s5944_s7 + $0x50] sm:$0xff]  ;;  %v4757_v62 = vld [vmem:[%s5944_s7 + $0x58] sm:$0xff] }
 0x3c3   :  { %3555 = vmatprep.subr.bf16.mxu0 %v3554_v24 }
 0x3c4   :  { %v3574_v20 = vpack.c.bf16 %v1740_v60, %v1739_v0  ;;  %v4762_v60 = vld [vmem:[%s5944_s7 + $0x60] sm:$0xff] }
 0x3c5   :  { %3432 = vmatmul.mubr.msk.f32.vlgmr.msra.gmra.mrb[64].mxu0 %vm1183_vm0, %v4687_v4 }
 0x3c6   :  { %3557 = vmatpush3.bf16.msra.mxu0 %v3554_v24  ;;  %3434 = vmatprep.mubr.msk.f32.mxu0 %vm1183_vm0, %v4692_v59  ;;  %v1738_v24 = vmul.f32 0.00390625, %v1710_v45  ;;  %v1722_v45 = vpop.xlane.xlu0 %1721 }
 0x3c7   :  { %3559 = vmatprep.subr.bf16.mxu0 %v3558_v6 }
 0x3c8   :  { %v3570_v51 = vpack.c.bf16 %v1738_v24, %v1737_v29  ;;  %v1742_v24 = vmul.f32 0.00390625, %v1722_v45 }
 0x3c9   :  { %3435 = vmatmul.mubr.msk.f32.gmra.mrb[66].mxu0 %vm1183_vm0, %v4701_v16 }
 0x3ca   :  { %3561 = vmatpush3.bf16.msra.mxu0 %v3558_v6  ;;  %3437 = vmatprep.mubr.msk.f32.mxu0 %vm1183_vm0, %v4706_v49  ;;  %v4734_v6 = vld [vmem:[%s5944_s7 + $0x40] sm:$0xff] }
 0x3cb   :  { %3563 = vmatprep.subr.bf16.mxu0 %v3562_v47 }
 0x3cd   :  { %3438 = vmatmul.mubr.msk.f32.gmra.mrb[68].mxu0 %vm1183_vm0, %v4715_v35 }
 0x3ce   :  { %3565 = vmatpush3.bf16.msra.mxu0 %v3562_v47  ;;  %3440 = vmatprep.mubr.msk.f32.mxu0 %vm1183_vm0, %v4720_v40  ;;  %v1719_v47 = vpop.xlane.xlu1 %1718 }
 0x3cf   :  { %3567 = vmatprep.subr.bf16.mxu0 %v3566_v21  ;;  %v1741_v29 = vmul.f32 0.00390625, %v1719_v47 }
 0x3d1   :  { %3441 = vmatmul.mubr.msk.f32.gmra.mrb[70].mxu0 %vm1183_vm0, %v4729_v14  ;;  %v3578_v0 = vpack.c.bf16 %v1742_v24, %v1741_v29 }
 0x3d2   :  { %3569 = vmatpush3.bf16.msra.mxu0 %v3566_v21  ;;  %3443 = vmatprep.mubr.msk.f32.mxu0 %vm1183_vm0, %v4734_v6  ;;  %v1728_v21 = vpop.xlane.xlu0 %1727  ;;  %v1725_v45 = vpop.xlane.xlu1 %1724 }
 0x3d3   :  { %3571 = vmatprep.subr.bf16.mxu0 %v3570_v51  ;;  %v1744_v39 = vmul.f32 0.00390625, %v1728_v21  ;;  %v1743_v47 = vmul.f32 0.00390625, %v1725_v45  ;;  %v4799_v21 = vld [vmem:[%s5945_s8] sm:$0xff] }
 0x3d5   :  { %3444 = vmatmul.mubr.msk.f32.gmra.mrb[72].mxu0 %vm1183_vm0, %v4743_v46  ;;  %v3582_v24 = vpack.c.bf16 %v1744_v39, %v1743_v47  ;;  %v4794_v39 = vld [vmem:[%s5945_s8 + $0x8] sm:$0xff] }
 0x3d6   :  { %3573 = vmatpush3.bf16.msra.mxu0 %v3570_v51  ;;  %3446 = vmatprep.mubr.msk.f32.mxu0 %vm1183_vm0, %v4748_v36  ;;  %v4771_v51 = vld [vmem:[%s5944_s7 + $0x68] sm:$0xff] }
 0x3d7   :  { %3575 = vmatprep.subr.bf16.mxu0 %v3574_v20 }
 0x3d9   :  { %3447 = vmatmul.mubr.msk.f32.gmra.mrb[74].mxu0 %vm1183_vm0, %v4757_v62 }
 0x3da   :  { %3577 = vmatpush3.bf16.msra.mxu0 %v3574_v20  ;;  %3449 = vmatprep.mubr.msk.f32.mxu0 %vm1183_vm0, %v4762_v60  ;;  %v4785_v20 = vld [vmem:[%s5944_s7 + $0x78] sm:$0xff] }
 0x3db   :  { %3579 = vmatprep.subr.bf16.mxu0 %v3578_v0 }
 0x3dd   :  { %3450 = vmatmul.mubr.msk.f32.gmra.mrb[76].mxu0 %vm1183_vm0, %v4771_v51 }
 0x3de   :  { %3581 = vmatpush3.bf16.msra.mxu0 %v3578_v0  ;;  %3452 = vmatprep.mubr.msk.f32.mxu0 %vm1183_vm0, %v4776_v32 }
 0x3df   :  { %3583 = vmatprep.subr.bf16.mxu0 %v3582_v24 }
 0x3e1   :  { %3453 = vmatmul.mubr.msk.f32.gmra.mrb[78].mxu0 %vm1183_vm0, %v4785_v20 }
 0x3e2   :  { %3585 = vmatpush3.bf16.msra.mxu0 %v3582_v24  ;;  %3487 = vmatprep.mubr.f32.mxu0 %v4625_v53  ;;  %v4806_v53 = vld [vmem:[%s5945_s8 + $0x18] sm:$0xff]  ;;  %v4811_v24 = vld [vmem:[%s5945_s8 + $0x10] sm:$0xff] }
 0x3e5   :  { %3488 = vmatmul.mubr.f32.vlgmr.msra.gmra.mrb[80].mxu0 %v4664_v2 }
 0x498   :  { %v3433_v29 = vpop.f32.mrb[64].mxu0 }
 0x499   :  { %v1304_v45 = vadd.f32 %v3433_v29, %v4794_v39  ;;  %v1298_v0 = vpop.f32.mrb[65].mxu0 }
 0x49a   :  { %v1299_v47 = vadd.f32 %v1298_v0, %v4799_v21 }
 0x49b   :  { %v3240_v2 = vmul.f32 -1.442695, %v1304_v45 }
 0x49c   :  { %v3239_v52 = vmul.f32 -1.442695, %v1299_v47  ;;  %v3436_v43 = vpop.f32.mrb[66].mxu0 }
 0x49d   :  { %3610 = vpow2.f32 %v3240_v2  ;;  %v1314_v30 = vadd.f32 %v3436_v43, %v4806_v53  ;;  %v1308_v29 = vpop.f32.mrb[67].mxu0 }
 0x49e   :  { %3612 = vpow2.f32 %v3239_v52  ;;  %v1309_v0 = vadd.f32 %v1308_v29, %v4811_v24  ;;  %v4830_v29 = vld [vmem:[%s5945_s8 + $0x38] sm:$0xff] }
 0x49f   :  { %v3242_v45 = vmul.f32 -1.442695, %v1314_v30 }
 0x4a0   :  { %v3241_v47 = vmul.f32 -1.442695, %v1309_v0  ;;  %v3439_v3 = vpop.f32.mrb[68].mxu0 }
 0x4a1   :  { %3614 = vpow2.f32 %v3242_v45  ;;  %v1324_v43 = vadd.f32 %v3439_v3, %v4818_v5  ;;  %v1318_v2 = vpop.f32.mrb[69].mxu0 }
 0x4a2   :  { %3616 = vpow2.f32 %v3241_v47  ;;  %v1319_v52 = vadd.f32 %v1318_v2, %v4823_v9  ;;  %v4842_v2 = vld [vmem:[%s5945_s8 + $0x48] sm:$0xff] }
 0x4a3   :  { %v3244_v30 = vmul.f32 -1.442695, %v1324_v43 }
 0x4a4   :  { %v3243_v0 = vmul.f32 -1.442695, %v1319_v52  ;;  %v3442_v12 = vpop.f32.mrb[70].mxu0 }
 0x4a5   :  { %3618 = vpow2.f32 %v3244_v30  ;;  %v1334_v3 = vadd.f32 %v3442_v12, %v4830_v29  ;;  %v1328_v45 = vpop.f32.mrb[71].mxu0 }
 0x4a6   :  { %3620 = vpow2.f32 %v3243_v0  ;;  %v1329_v47 = vadd.f32 %v1328_v45, %v4835_v27 }
 0x4a7   :  { %v3611_v43 = vpop.eup %3610  ;;  %v3246_v58 = vmul.f32 -1.442695, %v1334_v3  ;;  %v4854_v3 = vld [vmem:[%s5945_s8 + $0x58] sm:$0xff] }
 0x4a8   :  { %v3613_v52 = vpop.eup %3612  ;;  %v1426_v30 = vadd.f32 1.0, %v3611_v43  ;;  %v3245_v61 = vmul.f32 -1.442695, %v1329_v47  ;;  %v3445_v12 = vpop.f32.mrb[72].mxu0  ;;  %v4859_v47 = vld [vmem:[%s5945_s8 + $0x50] sm:$0xff] }
 0x4a9   :  { %v1425_v55 = vadd.f32 1.0, %v3613_v52  ;;  %3622 = vpow2.f32 %v3246_v58  ;;  %v1344_v0 = vadd.f32 %v3445_v12, %v4842_v2  ;;  %v1338_v45 = vpop.f32.mrb[73].mxu0 }
 0x4aa   :  { %3624 = vrcp.f32 %v1426_v30  ;;  %v1339_v42 = vadd.f32 %v1338_v45, %v4847_v54 }
 0x4ab   :  { %v3615_v37 = vpop.eup %3614  ;;  %3626 = vrcp.f32 %v1425_v55  ;;  %v3248_v48 = vmul.f32 -1.442695, %v1344_v0  ;;  %v4866_v55 = vld [vmem:[%s5945_s8 + $0x68] sm:$0xff] }
 0x4ac   :  { %v3617_v58 = vpop.eup %3616  ;;  %v1428_v43 = vadd.f32 1.0, %v3615_v37  ;;  %3628 = vpow2.f32 %v3245_v61  ;;  %v3247_v52 = vmul.f32 -1.442695, %v1339_v42  ;;  %v3448_v30 = vpop.f32.mrb[74].mxu0  ;;  %v4871_v37 = vld [vmem:[%s5945_s8 + $0x60] sm:$0xff] }
 0x4ad   :  { %v1427_v12 = vadd.f32 1.0, %v3617_v58  ;;  %3630 = vpow2.f32 %v3248_v48  ;;  %v1354_v45 = vadd.f32 %v3448_v30, %v4854_v3  ;;  %v1348_v38 = vpop.f32.mrb[75].mxu0 }
 0x4ae   :  { %3632 = vrcp.f32 %v1428_v43  ;;  %v1349_v28 = vadd.f32 %v1348_v38, %v4859_v47 }
 0x4af   :  { %v3619_v0 = vpop.eup %3618  ;;  %v3250_v22 = vmul.f32 -1.442695, %v1354_v45  ;;  %3634 = vpow2.f32 %v3247_v52  ;;  %v4878_v45 = vld [vmem:[%s5945_s8 + $0x78] sm:$0xff] }
 0x4b0   :  { %v3621_v42 = vpop.eup %3620  ;;  %v3249_v48 = vmul.f32 -1.442695, %v1349_v28  ;;  %v3451_v61 = vpop.f32.mrb[76].mxu0  ;;  %3636 = vrcp.f32 %v1427_v12  ;;  %v1430_v58 = vadd.f32 1.0, %v3619_v0  ;;  %v4883_v28 = vld [vmem:[%s5945_s8 + $0x70] sm:$0xff] }
 0x4b1   :  { %v1429_v43 = vadd.f32 1.0, %v3621_v42  ;;  %v1364_v38 = vadd.f32 %v3451_v61, %v4866_v55  ;;  %v1358_v30 = vpop.f32.mrb[77].mxu0  ;;  %3638 = vpow2.f32 %v3250_v22 }
 0x4b2   :  { %v1359_v31 = vadd.f32 %v1358_v30, %v4871_v37 }
 0x4b3   :  { %v3623_v23 = vpop.eup %3622  ;;  %3640 = vrcp.f32 %v1429_v43  ;;  %v3252_v7 = vmul.f32 -1.442695, %v1364_v38 }
 0x4b4   :  { %v3625_v52 = vpop.eup %3624  ;;  %3642 = vpow2.f32 %v3249_v48  ;;  %v3251_v12 = vmul.f32 -1.442695, %v1359_v31  ;;  %v3454_v0 = vpop.f32.mrb[78].mxu0  ;;  %v1432_v11 = vadd.f32 1.0, %v3623_v23 }
 0x4b5   :  { %v3627_v22 = vpop.eup %3626  ;;  %3644 = vrcp.f32 %v1430_v58  ;;  %v1374_v42 = vadd.f32 %v3454_v0, %v4878_v45  ;;  %1480 = vperm.xlu0 %3592, %v3625_v52   ;;  %v1368_v61 = vpop.f32.mrb[79].mxu0 }
 0x4b6   :  { %v3629_v30 = vpop.eup %3628  ;;  %3646 = vpow2.f32 %v3252_v7  ;;  %v1369_v43 = vadd.f32 %v1368_v61, %v4883_v28  ;;  %1475 = vperm.xlu1 %3593, %v3627_v22  }
 0x4b7   :  { %v3631_v38 = vpop.eup %3630  ;;  %v1431_v19 = vadd.f32 1.0, %v3629_v30  ;;  %3648 = vpow2.f32 %v3251_v12  ;;  %v3254_v8 = vmul.f32 -1.442695, %v1374_v42 }
 0x4b8   :  { %v3633_v41 = vpop.eup %3632  ;;  %v3253_v48 = vmul.f32 -1.442695, %v1369_v43  ;;  %v3489_v31 = vpop.f32.mrb[80].mxu0  ;;  %v1434_v23 = vadd.f32 1.0, %v3631_v38 }
 0x4b9   :  { %3650 = vrcp.f32 %v1431_v19  ;;  %v1817_v58 = vadd.f32 %v3489_v31, %v4675_v26  ;;  %v1811_v1 = vpop.f32.mrb[81].mxu0  ;;  %v3635_v0 = vpop.eup %3634 }
 0x4ba   :  { %3652 = vrcp.f32 %v1432_v11  ;;  %v1812_v52 = vadd.f32 %v1811_v1, %v4680_v17  ;;  %1490 = vperm.xlu1 %3593, %v3633_v41   ;;  %v3637_v7 = vpop.eup %3636  ;;  %v1433_v61 = vadd.f32 1.0, %v3635_v0 }
 0x4bb   :  { %3654 = vpow2.f32 %v3254_v8  ;;  %v1821_v22 = vmax.f32 %v1817_v58, 0.0  ;;  %v3639_v30 = vpop.eup %3638 }
 0x4bc   :  { %3656 = vpow2.f32 %v3253_v48  ;;  %v1820_v12 = vmax.f32 %v1812_v52, 0.0  ;;  %v1436_v11 = vadd.f32 1.0, %v3639_v30 }
 0x4bd   :  { %v3641_v42 = vpop.eup %3640  ;;  %3658 = vrcp.f32 %v1433_v61 }
 0x4be   :  { %v3643_v43 = vpop.eup %3642  ;;  %v3586_v19 = vpack.c.bf16 %v1821_v22, %v1820_v12  ;;  %1495 = vperm.xlu0 %3592, %v3641_v42   ;;  %1485 = vperm.xlu1 %3593, %v3637_v7   ;;  %3660 = vrcp.f32 %v1434_v23  ;;  %v3290_v12 = vld [vmem:[%s5946_s9 + $0x118] sm:$0xff]  ;;  %v4944_v42 = vld [vmem:[%s5946_s9 + $0x10] sm:$0xff] }
 0x4bf   :  { %v3645_v26 = vpop.eup %3644  ;;  %v1435_v31 = vadd.f32 1.0, %v3643_v43  ;;  %v4949_v43 = vld [vmem:[%s5946_s9 + $0x18] sm:$0xff] }
 0x4c0   :  { %v3647_v1 = vpop.eup %3646  ;;  %3587 = vmatprep.subr.bf16.mxu1 %v3586_v19 }
 0x4c1   :  { %v3649_v41 = vpop.eup %3648  ;;  %3662 = vrcp.f32 %v1435_v31  ;;  %3589 = vmatpush3.bf16.msra.mxu1 %v3586_v19  ;;  %v1438_v38 = vadd.f32 1.0, %v3647_v1  ;;  %v2338_v31 = vld [vmem:[%s5946_s9] sm:$0xff]  ;;  %v2339_v1 = vld [vmem:[%s5946_s9 + $0x8] sm:$0xff] }
 0x4c2   :  { %v1437_v8 = vadd.f32 1.0, %v3649_v41  ;;  %1500 = vperm.xlu1 %3593, %v3645_v26   ;;  %3664 = vrcp.f32 %v1436_v11 }
 0x4c3   :  { %v3651_v17 = vpop.eup %3650 }
 0x4c4   :  { %v3653_v48 = vpop.eup %3652  ;;  %3666 = vrcp.f32 %v1437_v8  ;;  %1505 = vperm.xlu0 %3592, %v3651_v17   ;;  %3495 = vmatmul.mubr.msk.f32.vlgmr.msra.gmra.mrb[66].mxu1 %vm1183_vm0, %v4687_v4 }
 0x4c5   :  { %v3655_v58 = vpop.eup %3654  ;;  %3497 = vmatprep.mubr.msk.f32.mxu1 %vm1183_vm0, %v4692_v59  ;;  %3668 = vrcp.f32 %v1438_v38 }
 0x4c6   :  { %v3657_v0 = vpop.eup %3656  ;;  %1510 = vperm.xlu1 %3593, %v3653_v48   ;;  %v1440_v7 = vadd.f32 1.0, %v3655_v58  ;;  %v4962_v48 = vld [vmem:[%s5946_s9 + $0x100] sm:$0xff]  ;;  %v4967_v58 = vld [vmem:[%s5946_s9 + $0x108] sm:$0xff] }
 0x4c7   :  { %v3659_v52 = vpop.eup %3658  ;;  %v1439_v23 = vadd.f32 1.0, %v3657_v0 }
 0x4c8   :  { %1515 = vperm.xlu0 %3592, %v3659_v52   ;;  %3498 = vmatmul.mubr.msk.f32.gmra.mrb[68].mxu1 %vm1183_vm0, %v4701_v16  ;;  %v3661_v61 = vpop.eup %3660 }
 0x4c9   :  { %3670 = vrcp.f32 %v1439_v23  ;;  %3500 = vmatprep.mubr.msk.f32.mxu1 %vm1183_vm0, %v4706_v49 }
 0x4ca   :  { %1520 = vperm.xlu1 %3593, %v3661_v61   ;;  %3672 = vrcp.f32 %v1440_v7  ;;  %v3743_v61 = vld [vmem:[%s5937_s0 + $0x38] sm:$0xff] }
 0x4cb   :  { %v3663_v4 = vpop.eup %3662 }
 0x4cc   :  { %1525 = vperm.xlu0 %3592, %v3663_v4   ;;  %3501 = vmatmul.mubr.msk.f32.gmra.mrb[70].mxu1 %vm1183_vm0, %v4715_v35  ;;  %v3665_v59 = vpop.eup %3664 }
 0x4cd   :  { %3503 = vmatprep.mubr.msk.f32.mxu1 %vm1183_vm0, %v4720_v40 }
 0x4ce   :  { %v3667_v22 = vpop.eup %3666  ;;  %1530 = vperm.xlu1 %3593, %v3665_v59  }
 0x4cf   :  { %v3669_v16 = vpop.eup %3668 }
 0x4d0   :  { %1535 = vperm.xlu0 %3592, %v3667_v22   ;;  %3504 = vmatmul.mubr.msk.f32.gmra.mrb[72].mxu1 %vm1183_vm0, %v4729_v14 }
 0x4d1   :  { %3506 = vmatprep.mubr.msk.f32.mxu1 %vm1183_vm0, %v4734_v6 }
 0x4d2   :  { %1540 = vperm.xlu1 %3593, %v3669_v16  }
 0x4d3   :  { %v3671_v49 = vpop.eup %3670 }
 0x4d4   :  { %1545 = vperm.xlu0 %3592, %v3671_v49   ;;  %3507 = vmatmul.mubr.msk.f32.gmra.mrb[74].mxu1 %vm1183_vm0, %v4743_v46  ;;  %v3673_v35 = vpop.eup %3672 }
 0x4d5   :  { %3509 = vmatprep.mubr.msk.f32.mxu1 %vm1183_vm0, %v4748_v36 }
 0x4d6   :  { %1550 = vperm.xlu1 %3593, %v3673_v35  }
 0x4d8   :  { %3510 = vmatmul.mubr.msk.f32.gmra.mrb[76].mxu1 %vm1183_vm0, %v4757_v62 }
 0x4d9   :  { %3512 = vmatprep.mubr.msk.f32.mxu1 %vm1183_vm0, %v4762_v60  ;;  %v3738_v60 = vld [vmem:[%s5937_s0 + $0x10] sm:$0xff] }
 0x4dc   :  { %3513 = vmatmul.mubr.msk.f32.gmra.mrb[78].mxu1 %vm1183_vm0, %v4771_v51 }
 0x4dd   :  { %3515 = vmatprep.mubr.msk.f32.mxu1 %vm1183_vm0, %v4776_v32  ;;  %v3739_v32 = vld [vmem:[%s5937_s0 + $0x18] sm:$0xff] }
 0x4e0   :  { %3516 = vmatmul.mubr.msk.f32.gmra.mrb[80].mxu1 %vm1183_vm0, %v4785_v20  ;;  %vm2750_vm0 = vcmask 1041409  }
 0x534   :  { %v1481_v40 = vpop.permute.xlu0 %1480 }
 0x535   :  { %v1555_v14 = vmul.f32 %v1481_v40, %v4289_v15  ;;  %v1556_v6 = vmul.f32 %v1481_v40, %v4294_v18  ;;  %v1476_v46 = vpop.permute.xlu1 %1475  ;;  %v3289_v15 = vld [vmem:[%s5946_s9 + $0x110] sm:$0xff] }
 0x536   :  { %v1553_v36 = vmul.f32 %v1476_v46, %v4279_v10  ;;  %v1554_v62 = vmul.f32 %v1476_v46, %v4284_v13  ;;  %v3740_v10 = vld [vmem:[%s5937_s0] sm:$0xff]  ;;  %v3741_v13 = vld [vmem:[%s5937_s0 + $0x8] sm:$0xff] }
 0x537   :  { %v1587_v51 = vadd.f32 %v3738_v60, %v1555_v14  ;;  %v1588_v20 = vadd.f32 %v3739_v32, %v1556_v6  ;;  %v6082_v60 = vld [vmem:[#allocation7_spill] sm:$0xff] }
 0x538   :  { %v1585_v18 = vadd.f32 %v3740_v10, %v1553_v36  ;;  %v1586_v30 = vadd.f32 %v3741_v13, %v1554_v62  ;;  %v6081_v36 = vld [vmem:[#allocation6_spill] sm:$0xff]  ;;  %v2344_v32 = vld [vmem:[%s5946_s9 + $0x30] sm:$0xff] }
 0x539   :  { %v1619_v19 = vmax.f32 %v1587_v51, 0.0  ;;  %v1620_v26 = vmax.f32 %v1588_v20, 0.0  ;;  %v1491_v11 = vpop.permute.xlu1 %1490  ;;  %v2345_v20 = vld [vmem:[%s5946_s9 + $0x38] sm:$0xff]  ;;  %v3745_v13 = vld [vmem:[%s5937_s0 + $0x28] sm:$0xff] }
 0x53a   :  { %v1617_v41 = vmax.f32 %v1585_v18, 0.0  ;;  %v1618_v8 = vmax.f32 %v1586_v30, 0.0  ;;  %v1559_v17 = vmul.f32 %v1491_v11, %v4319_v33  ;;  %v1560_v38 = vmul.f32 %v1491_v11, %v4322_v34  ;;  %v3742_v33 = vld [vmem:[%s5937_s0 + $0x30] sm:$0xff] }
 0x53b   :  { %v2795_v0 = vmul.f32 %v3289_v15, %v1619_v19  ;;  %v2796_v52 = vmul.f32 %v3290_v12, %v1620_v26  ;;  %v2372_v7 = vmul.f32 %v4944_v42, %v1619_v19  ;;  %v2373_v23 = vmul.f32 %v4949_v43, %v1620_v26  ;;  %v3744_v15 = vld [vmem:[%s5937_s0 + $0x20] sm:$0xff] }
 0x53c   :  { %v1591_v34 = vadd.f32 %v3742_v33, %v1559_v17  ;;  %v1592_v4 = vadd.f32 %v3743_v61, %v1560_v38  ;;  %v2370_v59 = vmul.f32 %v2338_v31, %v1617_v41  ;;  %v2371_v22 = vmul.f32 %v2339_v1, %v1618_v8  ;;  %v3293_v1 = vld [vmem:[%s5946_s9 + $0x130] sm:$0xff]  ;;  %v6083_v17 = vld [vmem:[#allocation10_spill] sm:$0xff] }
 0x53d   :  { %v1486_v16 = vpop.permute.xlu1 %1485  ;;  %v2860_v49 = vadd.f32 %v2796_v52, %v2795_v0  ;;  %v2437_v35 = vadd.f32 %v2373_v23, %v2372_v7  ;;  %v2793_v40 = vmul.f32 %v4962_v48, %v1617_v41  ;;  %v2794_v14 = vmul.f32 %v4967_v58, %v1618_v8  ;;  %v1496_v12 = vpop.permute.xlu0 %1495  ;;  %v3294_v41 = vld [vmem:[%s5946_s9 + $0x138] sm:$0xff]  ;;  %v6084_v7 = vld [vmem:[#allocation11_spill] sm:$0xff]  ;;  %v2342_v61 = vld [vmem:[%s5946_s9 + $0x20] sm:$0xff] }
 0x53e   :  { %v1623_v6 = vmax.f32 %v1591_v34, 0.0  ;;  %v1624_v46 = vmax.f32 %v1592_v4, 0.0  ;;  %v1557_v62 = vmul.f32 %v1486_v16, %v6081_v36  ;;  %v1558_v51 = vmul.f32 %v1486_v16, %v6082_v60  ;;  %v2343_v4 = vld [vmem:[%s5946_s9 + $0x28] sm:$0xff] }
 0x53f   :  { %2861 = vadd.xlane.f32.xlu0 %v2860_v49  ;;  %2438 = vadd.xlane.f32.xlu1 %v2437_v35  ;;  %v2434_v18 = vadd.f32 %v2371_v22, %v2370_v59  ;;  %v2857_v26 = vadd.f32 %v2794_v14, %v2793_v40  ;;  %v3746_v22 = vld [vmem:[%s5937_s0 + $0x50] sm:$0xff]  ;;  %v3747_v49 = vld [vmem:[%s5937_s0 + $0x58] sm:$0xff]  ;;  %v3292_v36 = vld [vmem:[%s5946_s9 + $0x128] sm:$0xff] }
 0x540   :  { %v1589_v10 = vadd.f32 %v3744_v15, %v1557_v62  ;;  %v1590_v30 = vadd.f32 %v3745_v13, %v1558_v51  ;;  %v2376_v11 = vmul.f32 %v2344_v32, %v1623_v6  ;;  %v2377_v31 = vmul.f32 %v2345_v20, %v1624_v46  ;;  %v6085_v62 = vld [vmem:[#allocation8_spill] sm:$0xff]  ;;  %v6086_v51 = vld [vmem:[#allocation9_spill] sm:$0xff] }
 0x541   :  { %v1501_v19 = vpop.permute.xlu1 %1500  ;;  %v2799_v0 = vmul.f32 %v3293_v1, %v1623_v6  ;;  %v2800_v34 = vmul.f32 %v3294_v41, %v1624_v46  ;;  %v3291_v46 = vld [vmem:[%s5946_s9 + $0x120] sm:$0xff]  ;;  %v1561_v60 = vmul.f32 %v1496_v12, %v6085_v62  ;;  %v1562_v32 = vmul.f32 %v1496_v12, %v6086_v51  ;;  %v3749_v12 = vld [vmem:[%s5937_s0 + $0x48] sm:$0xff]  ;;  %v6087_v41 = vld [vmem:[#allocation16_spill] sm:$0xff] }
 0x542   :  { %v1621_v8 = vmax.f32 %v1589_v10, 0.0  ;;  %v1563_v38 = vmul.f32 %v1501_v19, %v6083_v17  ;;  %v1622_v52 = vmax.f32 %v1590_v30, 0.0  ;;  %v1564_v23 = vmul.f32 %v1501_v19, %v6084_v7  ;;  %v2348_v19 = vld [vmem:[%s5946_s9 + $0x50] sm:$0xff]  ;;  %v5064_v51 = vld [vmem:[%s5946_s9 + $0x40] sm:$0xff] }
 0x543   :  { %2435 = vadd.xlane.f32.xlu0 %v2434_v18  ;;  %2858 = vadd.xlane.f32.xlu1 %v2857_v26  ;;  %v2443_v33 = vadd.f32 %v2377_v31, %v2376_v11  ;;  %v5007_v59 = vpop.permute.xlu0 %1505  ;;  %v2866_v40 = vadd.f32 %v2800_v34, %v2799_v0  ;;  %v2349_v26 = vld [vmem:[%s5946_s9 + $0x58] sm:$0xff]  ;;  %v3748_v11 = vld [vmem:[%s5937_s0 + $0x40] sm:$0xff]  ;;  %v1594_v1 = vadd.f32 %v3749_v12, %v1562_v32  ;;  %v5069_v32 = vld [vmem:[%s5946_s9 + $0x48] sm:$0xff] }
 0x544   :  { %v1595_v16 = vadd.f32 %v3746_v22, %v1563_v38  ;;  %v1596_v35 = vadd.f32 %v3747_v49, %v1564_v23  ;;  %v2374_v14 = vmul.f32 %v2342_v61, %v1621_v8  ;;  %v2375_v6 = vmul.f32 %v2343_v4, %v1622_v52  ;;  %v6088_v38 = vld [vmem:[#allocation17_spill] sm:$0xff]  ;;  %v6089_v22 = vld [vmem:[#allocation14_spill] sm:$0xff]  ;;  %v6090_v49 = vld [vmem:[#allocation15_spill] sm:$0xff] }
 0x545   :  { %v2797_v20 = vmul.f32 %v3291_v46, %v1621_v8  ;;  %v2798_v30 = vmul.f32 %v3292_v36, %v1622_v52  ;;  %v1593_v31 = vadd.f32 %v3748_v11, %v1561_v60  ;;  %v1511_v17 = vpop.permute.xlu1 %1510  ;;  %v5045_v34 = vld [vmem:[%s5946_s9 + $0x158] sm:$0xff]  ;;  %v1626_v4 = vmax.f32 %v1594_v1, 0.0  ;;  %v5089_v12 = vld [vmem:[%s5946_s9 + $0x148] sm:$0xff]  ;;  %v3303_v1 = vld [vmem:[%s5946_s9 + $0x180] sm:$0xff] }
 0x546   :  { %v1627_v15 = vmax.f32 %v1595_v16, 0.0  ;;  %v1628_v10 = vmax.f32 %v1596_v35, 0.0  ;;  %v2440_v13 = vadd.f32 %v2375_v6, %v2374_v14  ;;  %v1567_v16 = vmul.f32 %v1511_v17, %v6089_v22  ;;  %v3751_v6 = vld [vmem:[%s5937_s0 + $0x88] sm:$0xff] }
 0x547   :  { %2444 = vadd.xlane.f32.xlu1 %v2443_v33  ;;  %v1516_v18 = vpop.permute.xlu0 %1515  ;;  %v2863_v52 = vadd.f32 %v2798_v30, %v2797_v20  ;;  %v5040_v33 = vld [vmem:[%s5946_s9 + $0x150] sm:$0xff]  ;;  %v1625_v61 = vmax.f32 %v1593_v31, 0.0  ;;  %v1568_v35 = vmul.f32 %v1511_v17, %v6090_v49  ;;  %v2379_v11 = vmul.f32 %v5069_v32, %v1626_v4  ;;  %v5084_v31 = vld [vmem:[%s5946_s9 + $0x140] sm:$0xff] }
 0x548   :  { %v1569_v8 = vmul.f32 %v1516_v18, %v6087_v41  ;;  %v1570_v0 = vmul.f32 %v1516_v18, %v6088_v38  ;;  %v2380_v7 = vmul.f32 %v2348_v19, %v1627_v15  ;;  %v2381_v23 = vmul.f32 %v2349_v26, %v1628_v10  ;;  %v3752_v20 = vld [vmem:[%s5937_s0 + $0x70] sm:$0xff]  ;;  %v3304_v41 = vld [vmem:[%s5946_s9 + $0x188] sm:$0xff]  ;;  %v6092_v38 = vld [vmem:[#allocation13_spill] sm:$0xff] }
 0x549   :  { %v2803_v62 = vmul.f32 %v5040_v33, %v1627_v15  ;;  %v2804_v60 = vmul.f32 %v5045_v34, %v1628_v10  ;;  %v1599_v18 = vadd.f32 %v3752_v20, %v1567_v16  ;;  %v3753_v15 = vld [vmem:[%s5937_s0 + $0x78] sm:$0xff]  ;;  %v2378_v26 = vmul.f32 %v5064_v51, %v1625_v61  ;;  %v5126_v20 = vld [vmem:[%s5946_s9 + $0x170] sm:$0xff] }
 0x54a   :  { %v5057_v46 = vadd.f32 %v3751_v6, %v1570_v0  ;;  %v2449_v36 = vadd.f32 %v2381_v23, %v2380_v7  ;;  %v1600_v10 = vadd.f32 %v3753_v15, %v1568_v35  ;;  %v1566_v0 = vmul.f32 %v5007_v59, %v6092_v38  ;;  %v3755_v6 = vld [vmem:[%s5937_s0 + $0x68] sm:$0xff] }
 0x54b   :  { %2867 = vadd.xlane.f32.xlu1 %v2866_v40  ;;  %v3750_v40 = vld [vmem:[%s5937_s0 + $0x80] sm:$0xff]  ;;  %v2872_v19 = vadd.f32 %v2804_v60, %v2803_v62  ;;  %v2801_v23 = vmul.f32 %v5084_v31, %v1625_v61  ;;  %v2446_v22 = vadd.f32 %v2379_v11, %v2378_v26  ;;  %v2802_v16 = vmul.f32 %v5089_v12, %v1626_v4 }
 0x54c   :  { %v5052_v14 = vadd.f32 %v3750_v40, %v1569_v8  ;;  %v1634_v30 = vmax.f32 %v5057_v46, 0.0  ;;  %v6091_v8 = vld [vmem:[#allocation12_spill] sm:$0xff]  ;;  %v1632_v7 = vmax.f32 %v1600_v10, 0.0  ;;  %v3754_v61 = vld [vmem:[%s5937_s0 + $0x60] sm:$0xff]  ;;  %v1598_v46 = vadd.f32 %v3755_v6, %v1566_v0 }
 0x54d   :  { %v1565_v17 = vmul.f32 %v5007_v59, %v6091_v8  ;;  %v5106_v40 = vld [vmem:[%s5946_s9 + $0x70] sm:$0xff]  ;;  %v5150_v0 = vld [vmem:[%s5946_s9 + $0x160] sm:$0xff] }
 0x54e   :  { %v2810_v35 = vmul.f32 %v3304_v41, %v1634_v30  ;;  %v1630_v10 = vmax.f32 %v1598_v46, 0.0  ;;  %v5143_v41 = vld [vmem:[%s5946_s9 + $0x68] sm:$0xff] }
 0x54f   :  { %2441 = vadd.xlane.f32.xlu1 %v2440_v13  ;;  %v1633_v13 = vmax.f32 %v5052_v14, 0.0  ;;  %v5111_v14 = vld [vmem:[%s5946_s9 + $0x78] sm:$0xff]  ;;  %v1597_v4 = vadd.f32 %v3754_v61, %v1565_v17 }
 0x550   :  { %v2385_v60 = vmul.f32 %v5111_v14, %v1632_v7  ;;  %v2383_v38 = vmul.f32 %v5143_v41, %v1630_v10 }
 0x551   :  { %v2809_v49 = vmul.f32 %v3303_v1, %v1633_v13  ;;  %v1629_v15 = vmax.f32 %v1597_v4, 0.0  ;;  %v5138_v1 = vld [vmem:[%s5946_s9 + $0x60] sm:$0xff] }
 0x553   :  { %2864 = vadd.xlane.f32.xlu1 %v2863_v52  ;;  %v1631_v52 = vmax.f32 %v1599_v18, 0.0  ;;  %v5113_v59 = vadd.f32 %v2810_v35, %v2809_v49  ;;  %v5131_v18 = vld [vmem:[%s5946_s9 + $0x178] sm:$0xff]  ;;  %v2382_v17 = vmul.f32 %v5138_v1, %v1629_v15  ;;  %v5167_v49 = vld [vmem:[%s5946_s9 + $0x88] sm:$0xff] }
 0x554   :  { %v2808_v11 = vmul.f32 %v5131_v18, %v1632_v7  ;;  %6093 = vst [vmem:[#allocation6_spill] sm:$0xff] %v5167_v49  ;;  %v2387_v4 = vmul.f32 %v5167_v49, %v1634_v30 }
 0x555   :  { %v2384_v62 = vmul.f32 %v5106_v40, %v1631_v52  ;;  %v2807_v26 = vmul.f32 %v5126_v20, %v1631_v52  ;;  %v5155_v52 = vld [vmem:[%s5946_s9 + $0x168] sm:$0xff]  ;;  %v2452_v7 = vadd.f32 %v2383_v38, %v2382_v17 }
 0x557   :  { %2450 = vadd.xlane.f32.xlu1 %v2449_v36  ;;  %v2869_v36 = vadd.f32 %v2802_v16, %v2801_v23  ;;  %v2878_v8 = vadd.f32 %v2808_v11, %v2807_v26  ;;  %v2805_v23 = vmul.f32 %v5150_v0, %v1629_v15  ;;  %v5162_v16 = vld [vmem:[%s5946_s9 + $0x80] sm:$0xff] }
 0x558   :  { %v2386_v61 = vmul.f32 %v5162_v16, %v1633_v13 }
 0x55a   :  { %v2458_v6 = vadd.f32 %v2387_v4, %v2386_v61 }
 0x55b   :  { %2873 = vadd.xlane.f32.xlu1 %v2872_v19  ;;  %v2455_v19 = vadd.f32 %v2385_v60, %v2384_v62 }
 0x55f   :  { %2447 = vadd.xlane.f32.xlu1 %v2446_v22  ;;  %v2806_v22 = vmul.f32 %v5155_v52, %v1630_v10 }
 0x561   :  { %v2875_v35 = vadd.f32 %v2806_v22, %v2805_v23 }
 0x563   :  { %2870 = vadd.xlane.f32.xlu1 %v2869_v36 }
 0x567   :  { %2456 = vadd.xlane.f32.xlu1 %v2455_v19 }
 0x56b   :  { %2879 = vadd.xlane.f32.xlu1 %v2878_v8 }
 0x56f   :  { %2453 = vadd.xlane.f32.xlu1 %v2452_v7 }
 0x573   :  { %2876 = vadd.xlane.f32.xlu1 %v2875_v35 }
 0x577   :  { %2459 = vadd.xlane.f32.xlu1 %v2458_v6 }
 0x597   :  { %v3496_v46 = vpop.f32.mrb[66].mxu1 }
 0x598   :  { %v1894_v36 = vadd.f32 %v3496_v46, %v4794_v39  ;;  %v1888_v62 = vpop.f32.mrb[67].mxu1 }
 0x599   :  { %v1889_v60 = vadd.f32 %v1888_v62, %v4799_v21 }
 0x59a   :  { %v3272_v15 = vmul.f32 -1.442695, %v1894_v36 }
 0x59b   :  { %v3271_v10 = vmul.f32 -1.442695, %v1889_v60  ;;  %v3499_v19 = vpop.f32.mrb[68].mxu1 }
 0x59c   :  { %3674 = vpow2.f32 %v3272_v15  ;;  %v1904_v26 = vadd.f32 %v3499_v19, %v4806_v53  ;;  %v1898_v11 = vpop.f32.mrb[69].mxu1 }
 0x59d   :  { %3676 = vpow2.f32 %v3271_v10  ;;  %v1899_v13 = vadd.f32 %v1898_v11, %v4811_v24 }
 0x59e   :  { %v3274_v30 = vmul.f32 -1.442695, %v1904_v26 }
 0x59f   :  { %v3273_v8 = vmul.f32 -1.442695, %v1899_v13  ;;  %v3502_v17 = vpop.f32.mrb[70].mxu1 }
 0x5a0   :  { %3678 = vpow2.f32 %v3274_v30  ;;  %v1914_v38 = vadd.f32 %v3502_v17, %v4818_v5  ;;  %v1908_v39 = vpop.f32.mrb[71].mxu1 }
 0x5a1   :  { %3680 = vpow2.f32 %v3273_v8  ;;  %v1909_v21 = vadd.f32 %v1908_v39, %v4823_v9 }
 0x5a2   :  { %v3276_v7 = vmul.f32 -1.442695, %v1914_v38 }
 0x5a3   :  { %v3275_v23 = vmul.f32 -1.442695, %v1909_v21  ;;  %v3505_v22 = vpop.f32.mrb[72].mxu1 }
 0x5a4   :  { %3682 = vpow2.f32 %v3276_v7  ;;  %v1924_v53 = vadd.f32 %v3505_v22, %v4830_v29  ;;  %v1918_v35 = vpop.f32.mrb[73].mxu1 }
 0x5a5   :  { %3684 = vpow2.f32 %v3275_v23  ;;  %v1919_v24 = vadd.f32 %v1918_v35, %v4835_v27 }
 0x5a6   :  { %v3675_v61 = vpop.eup %3674  ;;  %v3278_v4 = vmul.f32 -1.442695, %v1924_v53 }
 0x5a7   :  { %v3677_v6 = vpop.eup %3676  ;;  %v2016_v46 = vadd.f32 1.0, %v3675_v61  ;;  %v3277_v36 = vmul.f32 -1.442695, %v1919_v24  ;;  %v3508_v5 = vpop.f32.mrb[74].mxu1 }
 0x5a8   :  { %v2015_v62 = vadd.f32 1.0, %v3677_v6  ;;  %3686 = vpow2.f32 %v3278_v4  ;;  %v1934_v9 = vadd.f32 %v3508_v5, %v4842_v2  ;;  %v1928_v60 = vpop.f32.mrb[75].mxu1 }
 0x5a9   :  { %3688 = vrcp.f32 %v2016_v46  ;;  %v1929_v15 = vadd.f32 %v1928_v60, %v4847_v54 }
 0x5aa   :  { %v3679_v10 = vpop.eup %3678  ;;  %3690 = vrcp.f32 %v2015_v62  ;;  %v3280_v29 = vmul.f32 -1.442695, %v1934_v9  ;;  %v5187_v9 = vpop.permute.xlu1 %1520 }
 0x5ab   :  { %v3681_v19 = vpop.eup %3680  ;;  %v2018_v26 = vadd.f32 1.0, %v3679_v10  ;;  %3692 = vpow2.f32 %v3277_v36  ;;  %v3279_v27 = vmul.f32 -1.442695, %v1929_v15  ;;  %v3511_v11 = vpop.f32.mrb[76].mxu1 }
 0x5ac   :  { %v2017_v13 = vadd.f32 1.0, %v3681_v19  ;;  %3694 = vpow2.f32 %v3280_v29  ;;  %v1944_v30 = vadd.f32 %v3511_v11, %v4854_v3  ;;  %v1938_v8 = vpop.f32.mrb[77].mxu1 }
 0x5ad   :  { %3696 = vrcp.f32 %v2018_v26  ;;  %v1939_v2 = vadd.f32 %v1938_v8, %v4859_v47 }
 0x5ae   :  { %v3683_v17 = vpop.eup %3682  ;;  %3698 = vrcp.f32 %v2017_v13  ;;  %v3282_v38 = vmul.f32 -1.442695, %v1944_v30  ;;  %v5189_v8 = vpop.permute.xlu1 %1530 }
 0x5af   :  { %v3685_v54 = vpop.eup %3684  ;;  %v2020_v39 = vadd.f32 1.0, %v3683_v17  ;;  %3700 = vpow2.f32 %v3279_v27  ;;  %v3281_v21 = vmul.f32 -1.442695, %v1939_v2  ;;  %v3514_v7 = vpop.f32.mrb[78].mxu1 }
 0x5b0   :  { %v2019_v23 = vadd.f32 1.0, %v3685_v54  ;;  %3702 = vpow2.f32 %v3282_v38  ;;  %v1954_v22 = vadd.f32 %v3514_v7, %v4866_v55  ;;  %v1948_v53 = vpop.f32.mrb[79].mxu1  ;;  %v5191_v38 = vpop.permute.xlu0 %1525 }
 0x5b1   :  { %3704 = vrcp.f32 %v2020_v39  ;;  %v1949_v3 = vadd.f32 %v1948_v53, %v4871_v37 }
 0x5b2   :  { %v3687_v35 = vpop.eup %3686  ;;  %3706 = vrcp.f32 %v2019_v23  ;;  %v3284_v24 = vmul.f32 -1.442695, %v1954_v22  ;;  %v2336_v22 = vlaneseq }
 0x5b3   :  { %v3689_v47 = vpop.eup %3688  ;;  %v2022_v61 = vadd.f32 1.0, %v3687_v35  ;;  %3708 = vpow2.f32 %v3281_v21  ;;  %v3283_v4 = vmul.f32 -1.442695, %v1949_v3  ;;  %v3517_v6 = vpop.f32.mrb[80].mxu1 }
 0x5b4   :  { %v3691_v46 = vpop.eup %3690  ;;  %3710 = vpow2.f32 %v3284_v24  ;;  %v1964_v36 = vadd.f32 %v3517_v6, %v4878_v45  ;;  %v1958_v5 = vpop.f32.mrb[81].mxu1  ;;  %2070 = vperm.xlu1 %3593, %v3689_v47   ;;  %v5197_v6 = vand.u32 127, %v2336_v22 }
 0x5b5   :  { %v3693_v62 = vpop.eup %3692  ;;  %3712 = vrcp.f32 %v2022_v61  ;;  %v1959_v55 = vadd.f32 %v1958_v5, %v4883_v28  ;;  %2065 = vperm.xlu0 %3592, %v3691_v46   ;;  %v5193_v3 = vpop.permute.xlu1 %1540 }
 0x5b6   :  { %v3695_v37 = vpop.eup %3694  ;;  %v2021_v60 = vadd.f32 1.0, %v3693_v62  ;;  %3714 = vpow2.f32 %v3283_v4  ;;  %v3286_v15 = vmul.f32 -1.442695, %v1964_v36  ;;  %v5195_v47 = vpop.permute.xlu0 %1535  ;;  %6094 = vst [vmem:[#allocation7_spill] sm:$0xff] %v5197_v6 }
 0x5b7   :  { %v3697_v10 = vpop.eup %3696  ;;  %v2024_v29 = vadd.f32 1.0, %v3695_v37  ;;  %v3285_v19 = vmul.f32 -1.442695, %v1959_v55  ;;  %v5201_v55 = vshrl.u32 %v2336_v22, 7  ;;  %v2566_v37 = vadd.s32 4294967288, %v5197_v6 }
 0x5b8   :  { %v3699_v26 = vpop.eup %3698  ;;  %3716 = vrcp.f32 %v2021_v60  ;;  %2080 = vperm.xlu1 %3593, %v3697_v10  }
 0x5b9   :  { %v3701_v45 = vpop.eup %3700  ;;  %3718 = vrcp.f32 %v2024_v29  ;;  %2075 = vperm.xlu0 %3592, %v3699_v26   ;;  %v5199_v62 = vpop.permute.xlu1 %1550  ;;  %6095 = vst [vmem:[#allocation10_spill] sm:$0xff] %v5201_v55  ;;  %v5207_v26 = vsub.s32 %v2566_v37, %v5201_v55 }
 0x5ba   :  { %v3703_v27 = vpop.eup %3702  ;;  %v2023_v11 = vadd.f32 1.0, %v3701_v45  ;;  %3720 = vpow2.f32 %v3286_v15  ;;  %v5204_v15 = vpop.permute.xlu0 %1545  ;;  %v5211_v45 = vsub.s32 %v5197_v6, %v5201_v55 }
 0x5bb   :  { %v3705_v28 = vpop.eup %3704  ;;  %v2026_v13 = vadd.f32 1.0, %v3703_v27  ;;  %3722 = vpow2.f32 %v3285_v19  ;;  %6096 = vst [vmem:[#allocation11_spill] sm:$0xff] %v5207_v26 }
 0x5bc   :  { %v3707_v30 = vpop.eup %3706  ;;  %3724 = vrcp.f32 %v2023_v11  ;;  %2090 = vperm.xlu1 %3593, %v3705_v28   ;;  %6097 = vst [vmem:[#allocation8_spill] sm:$0xff] %v5211_v45 }
 0x5bd   :  { %v3709_v2 = vpop.eup %3708  ;;  %3726 = vrcp.f32 %v2026_v13  ;;  %2085 = vperm.xlu0 %3592, %v3707_v30  }
 0x5be   :  { %v3711_v17 = vpop.eup %3710  ;;  %v2025_v54 = vadd.f32 1.0, %v3709_v2 }
 0x5bf   :  { %v3713_v39 = vpop.eup %3712  ;;  %v2028_v21 = vadd.f32 1.0, %v3711_v17 }
 0x5c0   :  { %v3715_v7 = vpop.eup %3714  ;;  %3728 = vrcp.f32 %v2025_v54  ;;  %2100 = vperm.xlu1 %3593, %v3713_v39   ;;  %v2573_v39 = vadd.s32 4294967280, %v5197_v6 }
 0x5c1   :  { %3730 = vrcp.f32 %v2028_v21  ;;  %v2027_v23 = vadd.f32 1.0, %v3715_v7  ;;  %v2580_v21 = vadd.s32 4294967272, %v5197_v6 }
 0x5c2   :  { %v3717_v53 = vpop.eup %3716  ;;  %v5219_v22 = vsub.s32 %v2573_v39, %v5201_v55 }
 0x5c3   :  { %v3719_v35 = vpop.eup %3718  ;;  %3732 = vrcp.f32 %v2027_v23  ;;  %2095 = vperm.xlu0 %3592, %v3717_v53  }
 0x5c4   :  { %v3721_v24 = vpop.eup %3720  ;;  %2110 = vperm.xlu1 %3593, %v3719_v35   ;;  %6098 = vst [vmem:[#allocation9_spill] sm:$0xff] %v5219_v22  ;;  %v5223_v35 = vsub.s32 %v2580_v21, %v5201_v55 }
 0x5c5   :  { %v3723_v61 = vpop.eup %3722  ;;  %v2030_v4 = vadd.f32 1.0, %v3721_v24 }
 0x5c6   :  { %v3725_v46 = vpop.eup %3724  ;;  %v2029_v36 = vadd.f32 1.0, %v3723_v61  ;;  %6099 = vst [vmem:[#allocation16_spill] sm:$0xff] %v5223_v35 }
 0x5c7   :  { %v3727_v5 = vpop.eup %3726  ;;  %3734 = vrcp.f32 %v2030_v4  ;;  %2105 = vperm.xlu0 %3592, %v3725_v46  }
 0x5c8   :  { %3736 = vrcp.f32 %v2029_v36  ;;  %2120 = vperm.xlu1 %3593, %v3727_v5  }
 0x5ca   :  { %v3729_v60 = vpop.eup %3728 }
 0x5cb   :  { %v3731_v10 = vpop.eup %3730  ;;  %2115 = vperm.xlu0 %3592, %v3729_v60  }
 0x5cc   :  { %v2439_v29 = vpop.xlane.xlu1 %2438  ;;  %2130 = vperm.xlu1 %3593, %v3731_v10   ;;  %v2862_v27 = vpop.xlane.xlu0 %2861 }
 0x5cd   :  { %v3733_v19 = vpop.eup %3732  ;;  %v2992_v13 = vrot.slane %v2862_v27, %v5207_v26  ;;  %v2570_v24 = vrot.slane %v2439_v29, %v5207_v26 }
 0x5cf   :  { %2125 = vperm.xlu0 %3592, %v3733_v19  }
 0x5d0   :  { %v2859_v11 = vpop.xlane.xlu1 %2858  ;;  %v2436_v7 = vpop.xlane.xlu0 %2435 }
 0x5d1   :  { %v3735_v28 = vpop.eup %3734  ;;  %v2988_v30 = vrot.slane %v2859_v11, %v5211_v45  ;;  %v2565_v53 = vrot.slane %v2436_v7, %v5211_v45 }
 0x5d2   :  { %v3737_v2 = vpop.eup %3736  ;;  %2140 = vperm.xlu1 %3593, %v3735_v28   ;;  %v2587_v28 = vadd.s32 4294967264, %v5197_v6 }
 0x5d3   :  { %v2993_v17 = vsel %vm2571_vm1, %v2992_v13, %v2988_v30  ;;  %2135 = vperm.xlu0 %3592, %v3737_v2   ;;  %v2572_v46 = vsel %vm2571_vm1, %v2570_v24, %v2565_v53  ;;  %v2594_v13 = vadd.s32 4294967256, %v5197_v6  ;;  %v6100_v30 = vld [vmem:[#allocation18_spill] sm:$0xff]  ;;  %v3757_v24 = vld [vmem:[%s5937_s0 + $0x98] sm:$0xff] }
 0x5d4   :  { %v2445_v54 = vpop.xlane.xlu1 %2444  ;;  %v1571_v2 = vmul.f32 %v5187_v9, %v6100_v30  ;;  %v5242_v7 = vsub.s32 %v2587_v28, %v5201_v55 }
 0x5d5   :  { %v2584_v36 = vrot.slane %v2445_v54, %v5223_v35  ;;  %v6101_v54 = vld [vmem:[#allocation19_spill] sm:$0xff] }
 0x5d6   :  { %v1572_v39 = vmul.f32 %v5187_v9, %v6101_v54  ;;  %6102 = vst [vmem:[#allocation17_spill] sm:$0xff] %v5242_v7  ;;  %v5265_v54 = vld [vmem:[%s5946_s9 + $0x90] sm:$0xff] }
 0x5d8   :  { %v2868_v23 = vpop.xlane.xlu1 %2867 }
 0x5d9   :  { %v3002_v19 = vrot.slane %v2868_v23, %v5223_v35  ;;  %v5245_v23 = vsub.s32 %v2594_v13, %v5201_v55  ;;  %v6113_v35 = vld [vmem:[#allocation25_spill] sm:$0xff] }
 0x5db   :  { %6103 = vst [vmem:[#allocation14_spill] sm:$0xff] %v5245_v23 }
 0x5dc   :  { %v2442_v61 = vpop.xlane.xlu1 %2441 }
 0x5dd   :  { %v2577_v4 = vrot.slane %v2442_v61, %v5219_v22  ;;  %v1604_v61 = vadd.f32 %v3757_v24, %v1572_v39 }
 0x5df   :  { %v2579_v5 = vsel %vm2578_vm2, %v2577_v4, %v2572_v46 }
 0x5e0   :  { %v2865_v37 = vpop.xlane.xlu1 %2864  ;;  %v2586_v60 = vsel %vm2585_vm3, %v2584_v36, %v2579_v5  ;;  %v6104_v36 = vld [vmem:[#allocation20_spill] sm:$0xff] }
 0x5e1   :  { %v2997_v10 = vrot.slane %v2865_v37, %v5219_v22  ;;  %v1573_v5 = vmul.f32 %v5191_v38, %v6104_v36  ;;  %v5287_v36 = vld [vmem:[%s5946_s9 + $0x190] sm:$0xff] }
 0x5e3   :  { %v2998_v29 = vsel %vm2578_vm2, %v2997_v10, %v2993_v17  ;;  %v3756_v17 = vld [vmem:[%s5937_s0 + $0x90] sm:$0xff] }
 0x5e4   :  { %v2451_v27 = vpop.xlane.xlu1 %2450  ;;  %v3003_v11 = vsel %vm2585_vm3, %v3002_v19, %v2998_v29  ;;  %v1603_v53 = vadd.f32 %v3756_v17, %v1571_v2  ;;  %v1636_v19 = vmax.f32 %v1604_v61, 0.0  ;;  %v6105_v29 = vld [vmem:[#allocation21_spill] sm:$0xff] }
 0x5e5   :  { %v2598_v46 = vrot.slane %v2451_v27, %v5245_v23  ;;  %v1574_v28 = vmul.f32 %v5191_v38, %v6105_v29  ;;  %v5270_v27 = vld [vmem:[%s5946_s9 + $0x98] sm:$0xff]  ;;  %v3758_v38 = vld [vmem:[%s5937_s0 + $0xa0] sm:$0xff] }
 0x5e6   :  { %v1635_v10 = vmax.f32 %v1603_v53, 0.0  ;;  %v1605_v39 = vadd.f32 %v3758_v38, %v1573_v5  ;;  %v3759_v53 = vld [vmem:[%s5937_s0 + $0xa8] sm:$0xff]  ;;  %v2608_v5 = vadd.s32 4294967240, %v5197_v6 }
 0x5e7   :  { %v1606_v24 = vadd.f32 %v3759_v53, %v1574_v28  ;;  %v6106_v29 = vld [vmem:[#allocation22_spill] sm:$0xff] }
 0x5e8   :  { %v2874_v21 = vpop.xlane.xlu1 %2873  ;;  %v1575_v28 = vmul.f32 %v5189_v8, %v6106_v29  ;;  %v2811_v53 = vmul.f32 %v5287_v36, %v1635_v10 }
 0x5ec   :  { %v2448_v4 = vpop.xlane.xlu1 %2447 }
 0x5ed   :  { %v2591_v9 = vrot.slane %v2448_v4, %v5242_v7  ;;  %v2388_v4 = vmul.f32 %v5265_v54, %v1635_v10  ;;  %v3760_v10 = vld [vmem:[%s5937_s0 + $0xb0] sm:$0xff] }
 0x5ef   :  { %v2593_v37 = vsel %vm2592_vm4, %v2591_v9, %v2586_v60  ;;  %v3012_v60 = vrot.slane %v2874_v21, %v5245_v23  ;;  %v2389_v9 = vmul.f32 %v5270_v27, %v1636_v19  ;;  %v2601_v21 = vadd.s32 4294967248, %v5197_v6 }
 0x5f0   :  { %v2871_v13 = vpop.xlane.xlu1 %2870  ;;  %v2600_v30 = vsel %vm2599_vm5, %v2598_v46, %v2593_v37  ;;  %v1637_v37 = vmax.f32 %v1605_v39, 0.0  ;;  %v5313_v39 = vld [vmem:[%s5946_s9 + $0xa8] sm:$0xff] }
 0x5f1   :  { %v3007_v2 = vrot.slane %v2871_v13, %v5242_v7  ;;  %v6107_v13 = vld [vmem:[#allocation23_spill] sm:$0xff]  ;;  %v5303_v7 = vsub.s32 %v2601_v21, %v5201_v55  ;;  %6110 = vst [vmem:[#allocation13_spill] sm:$0xff] %v5313_v39 }
 0x5f3   :  { %v3008_v17 = vsel %vm2592_vm4, %v3007_v2, %v3003_v11  ;;  %v5292_v11 = vld [vmem:[%s5946_s9 + $0x198] sm:$0xff]  ;;  %v1576_v2 = vmul.f32 %v5189_v8, %v6107_v13  ;;  %6108 = vst [vmem:[#allocation15_spill] sm:$0xff] %v5303_v7  ;;  %v5316_v8 = vsub.s32 %v2608_v5, %v5201_v55 }
 0x5f4   :  { %v2457_v61 = vpop.xlane.xlu1 %2456  ;;  %v3013_v46 = vsel %vm2599_vm5, %v3012_v60, %v3008_v17  ;;  %v1638_v60 = vmax.f32 %v1606_v24, 0.0  ;;  %v2461_v17 = vadd.f32 %v2389_v9, %v2388_v4  ;;  %v2812_v23 = vmul.f32 %v5292_v11, %v1636_v19  ;;  %v3761_v24 = vld [vmem:[%s5937_s0 + $0xb8] sm:$0xff] }
 0x5f5   :  { %6111 = vst [vmem:[#allocation18_spill] sm:$0xff] %v5316_v8  ;;  %v1607_v19 = vadd.f32 %v3760_v10, %v1575_v28  ;;  %v1608_v4 = vadd.f32 %v3761_v24, %v1576_v2  ;;  %v5331_v28 = vld [vmem:[%s5946_s9 + $0x1a0] sm:$0xff]  ;;  %v5336_v2 = vld [vmem:[%s5946_s9 + $0x1a8] sm:$0xff]  ;;  %v2612_v10 = vrot.slane %v2457_v61, %v5316_v8  ;;  %v5350_v61 = vld [vmem:[%s5946_s9 + $0xb0] sm:$0xff] }
 0x5f6   :  { %2882 = vadd.xlane.f32.xlu1 %v5113_v59  ;;  %v5308_v59 = vld [vmem:[%s5946_s9 + $0xa0] sm:$0xff]  ;;  %v2884_v21 = vadd.f32 %v2812_v23, %v2811_v53  ;;  %v2391_v13 = vmul.f32 %v5313_v39, %v1638_v60  ;;  %v6112_v23 = vld [vmem:[#allocation24_spill] sm:$0xff]  ;;  %v2814_v49 = vmul.f32 %v5336_v2, %v1638_v60 }
 0x5f7   :  { %6109 = vst [vmem:[#allocation12_spill] sm:$0xff] %v5308_v59  ;;  %v2390_v29 = vmul.f32 %v5308_v59, %v1637_v37  ;;  %v1577_v53 = vmul.f32 %v5195_v47, %v6112_v23  ;;  %v1639_v24 = vmax.f32 %v1607_v19, 0.0  ;;  %v2813_v59 = vmul.f32 %v5331_v28, %v1637_v37  ;;  %v6117_v23 = vld [vmem:[#allocation27_spill] sm:$0xff] }
 0x5f8   :  { %v2880_v38 = vpop.xlane.xlu1 %2879 }
 0x5f9   :  { %v2464_v26 = vadd.f32 %v2391_v13, %v2390_v29  ;;  %v2887_v13 = vadd.f32 %v2814_v49, %v2813_v59  ;;  %v6116_v49 = vld [vmem:[#allocation26_spill] sm:$0xff] }
 0x5fa   :  { %2462 = vadd.xlane.f32.xlu1 %v2461_v17  ;;  %v2615_v17 = vadd.s32 4294967232, %v5197_v6  ;;  %v1578_v6 = vmul.f32 %v5195_v47, %v6113_v35  ;;  %v5359_v47 = vld [vmem:[%s5946_s9 + $0xb8] sm:$0xff]  ;;  %v3762_v35 = vld [vmem:[%s5937_s0 + $0xc0] sm:$0xff]  ;;  %v1579_v59 = vmul.f32 %v5193_v3, %v6116_v49 }
 0x5fc   :  { %v2454_v9 = vpop.xlane.xlu1 %2453 }
 0x5fd   :  { %v2605_v5 = vrot.slane %v2454_v9, %v5303_v7  ;;  %v1640_v9 = vmax.f32 %v1608_v4, 0.0  ;;  %v5354_v4 = vsub.s32 %v2615_v17, %v5201_v55  ;;  %v5378_v17 = vld [vmem:[%s5946_s9 + $0x1b0] sm:$0xff]  ;;  %v6122_v55 = vld [vmem:[#allocation33_spill] sm:$0xff] }
 0x5fe   :  { %2885 = vadd.xlane.f32.xlu1 %v2884_v21  ;;  %v2392_v21 = vmul.f32 %v5350_v61, %v1639_v24 }
 0x5ff   :  { %v2607_v22 = vsel %vm2606_vm6, %v2605_v5, %v2600_v30  ;;  %6114 = vst [vmem:[#allocation19_spill] sm:$0xff] %v5354_v4  ;;  %v1609_v30 = vadd.f32 %v3762_v35, %v1577_v53  ;;  %v1580_v53 = vmul.f32 %v5193_v3, %v6117_v23  ;;  %v2815_v35 = vmul.f32 %v5378_v17, %v1639_v24  ;;  %v3764_v3 = vld [vmem:[%s5937_s0 + $0xd0] sm:$0xff]  ;;  %v3765_v24 = vld [vmem:[%s5937_s0 + $0xd8] sm:$0xff] }
 0x600   :  { %v2877_v45 = vpop.xlane.xlu1 %2876  ;;  %v2614_v39 = vsel %vm2613_vm7, %v2612_v10, %v2607_v22  ;;  %v3022_v22 = vrot.slane %v2880_v38, %v5316_v8  ;;  %v2393_v38 = vmul.f32 %v5359_v47, %v1640_v9 }
 0x601   :  { %v3017_v19 = vrot.slane %v2877_v45, %v5303_v7  ;;  %v3763_v45 = vld [vmem:[%s5937_s0 + $0xc8] sm:$0xff] }
 0x602   :  { %2465 = vadd.xlane.f32.xlu1 %v2464_v26  ;;  %v1610_v37 = vadd.f32 %v3763_v45, %v1578_v6  ;;  %v5383_v6 = vld [vmem:[%s5946_s9 + $0x1b8] sm:$0xff] }
 0x603   :  { %v3018_v60 = vsel %vm2606_vm6, %v3017_v19, %v3013_v46  ;;  %v1641_v46 = vmax.f32 %v1609_v30, 0.0  ;;  %v2816_v45 = vmul.f32 %v5383_v6, %v1640_v9  ;;  %v5402_v30 = vld [vmem:[%s5946_s9 + $0xc8] sm:$0xff]  ;;  %v1612_v9 = vadd.f32 %v3765_v24, %v1580_v53 }
 0x604   :  { %v2460_v29 = vpop.xlane.xlu1 %2459  ;;  %v5372_v26 = vsel %vm2613_vm7, %v3022_v22, %v3018_v60  ;;  %v1642_v19 = vmax.f32 %v1610_v37, 0.0  ;;  %v2467_v22 = vadd.f32 %v2393_v38, %v2392_v21  ;;  %v5397_v60 = vld [vmem:[%s5946_s9 + $0xc0] sm:$0xff]  ;;  %v5420_v38 = vld [vmem:[%s5946_s9 + $0x1c8] sm:$0xff] }
 0x605   :  { %6115 = vst [vmem:[#allocation20_spill] sm:$0xff] %v5372_v26  ;;  %v2619_v5 = vrot.slane %v2460_v29, %v5354_v4  ;;  %v2890_v37 = vadd.f32 %v2816_v45, %v2815_v35  ;;  %v2394_v21 = vmul.f32 %v5397_v60, %v1641_v46  ;;  %v1644_v49 = vmax.f32 %v1612_v9, 0.0  ;;  %v5432_v35 = vld [vmem:[%s5946_s9 + $0xd8] sm:$0xff] }
 0x606   :  { %2888 = vadd.xlane.f32.xlu1 %v2887_v13  ;;  %v2395_v29 = vmul.f32 %v5402_v30, %v1642_v19  ;;  %v5415_v13 = vld [vmem:[%s5946_s9 + $0x1c0] sm:$0xff]  ;;  %v2818_v53 = vmul.f32 %v5420_v38, %v1642_v19  ;;  %v5444_v19 = vld [vmem:[%s5946_s9 + $0x1d8] sm:$0xff] }
 0x607   :  { %v5390_v10 = vsel %vm2620_vm8, %v2619_v5, %v2614_v39  ;;  %v1611_v39 = vadd.f32 %v3764_v3, %v1579_v59  ;;  %v2817_v23 = vmul.f32 %v5415_v13, %v1641_v46  ;;  %v5439_v46 = vld [vmem:[%s5946_s9 + $0x1d0] sm:$0xff] }
 0x608   :  { %6118 = vst [vmem:[#allocation21_spill] sm:$0xff] %v5390_v10  ;;  %v2470_v59 = vadd.f32 %v2395_v29, %v2394_v21  ;;  %v1581_v29 = vmul.f32 %v5204_v15, %v4475_v44  ;;  %v6121_v26 = vld [vmem:[#allocation32_spill] sm:$0xff] }
 0x609   :  { %v1643_v5 = vmax.f32 %v1611_v39, 0.0  ;;  %v2893_v45 = vadd.f32 %v2818_v53, %v2817_v23  ;;  %v2397_v39 = vmul.f32 %v5432_v35, %v1644_v49  ;;  %v3766_v53 = vld [vmem:[%s5937_s0 + $0xe0] sm:$0xff] }
 0x60a   :  { %2468 = vadd.xlane.f32.xlu1 %v2467_v22  ;;  %v5427_v22 = vld [vmem:[%s5946_s9 + $0xd0] sm:$0xff] }
 0x60b   :  { %v2396_v3 = vmul.f32 %v5427_v22, %v1643_v5  ;;  %v2819_v9 = vmul.f32 %v5439_v46, %v1643_v5 }
 0x60d   :  { %v2473_v24 = vadd.f32 %v2397_v39, %v2396_v3  ;;  %v3767_v39 = vld [vmem:[%s5937_s0 + $0xe8] sm:$0xff] }
 0x60e   :  { %2891 = vadd.xlane.f32.xlu1 %v2890_v37  ;;  %v2820_v37 = vmul.f32 %v5444_v19, %v1644_v49 }
 0x610   :  { %v2896_v21 = vadd.f32 %v2820_v37, %v2819_v9  ;;  %v6119_v37 = vld [vmem:[#allocation28_spill] sm:$0xff] }
 0x612   :  { %2471 = vadd.xlane.f32.xlu1 %v2470_v59  ;;  %v1582_v59 = vmul.f32 %v5204_v15, %v4480_v50  ;;  %v3768_v15 = vld [vmem:[%s5937_s0 + $0x110] sm:$0xff] }
 0x616   :  { %2894 = vadd.xlane.f32.xlu1 %v2893_v45  ;;  %v1613_v45 = vadd.f32 %v3766_v53, %v1581_v29  ;;  %v3770_v29 = vld [vmem:[%s5937_s0 + $0x100] sm:$0xff] }
 0x618   :  { %v1645_v53 = vmax.f32 %v1613_v45, 0.0  ;;  %v5485_v45 = vld [vmem:[%s5946_s9 + $0xe0] sm:$0xff] }
 0x619   :  { %6123 = vst [vmem:[#allocation22_spill] sm:$0xff] %v5485_v45 }
 0x61a   :  { %2474 = vadd.xlane.f32.xlu1 %v2473_v24  ;;  %v1614_v24 = vadd.f32 %v3767_v39, %v1582_v59 }
 0x61e   :  { %2897 = vadd.xlane.f32.xlu1 %v2896_v21  ;;  %v1583_v21 = vmul.f32 %v5199_v62, %v6119_v37 }
 0x633   :  { %v2071_v23 = vpop.permute.xlu1 %2070 }
 0x634   :  { %v2145_v3 = vmul.f32 %v2071_v23, %v4504_v63  ;;  %v2146_v5 = vmul.f32 %v2071_v23, %v4508_v25  ;;  %v2066_v49 = vpop.permute.xlu0 %2065  ;;  %v3769_v63 = vld [vmem:[%s5937_s0 + $0x118] sm:$0xff] }
 0x635   :  { %v2143_v44 = vmul.f32 %v2066_v49, %v4491_v57  ;;  %v2144_v50 = vmul.f32 %v2066_v49, %v4495_v56  ;;  %v3771_v56 = vld [vmem:[%s5937_s0 + $0x108] sm:$0xff] }
 0x636   :  { %v2177_v9 = vadd.f32 %v3768_v15, %v2145_v3  ;;  %v2178_v25 = vadd.f32 %v3769_v63, %v2146_v5  ;;  %v6120_v3 = vld [vmem:[#allocation29_spill] sm:$0xff]  ;;  %v1646_v15 = vmax.f32 %v1614_v24, 0.0 }
 0x637   :  { %v2175_v57 = vadd.f32 %v3770_v29, %v2143_v44  ;;  %v2176_v59 = vadd.f32 %v3771_v56, %v2144_v50  ;;  %v2081_v23 = vpop.permute.xlu1 %2080  ;;  %v1584_v49 = vmul.f32 %v5199_v62, %v6120_v3  ;;  %v5490_v62 = vld [vmem:[%s5946_s9 + $0xe8] sm:$0xff]  ;;  %v3775_v56 = vld [vmem:[%s5937_s0 + $0x138] sm:$0xff] }
 0x638   :  { %v2209_v39 = vmax.f32 %v2177_v9, 0.0  ;;  %v2210_v5 = vmax.f32 %v2178_v25, 0.0  ;;  %v2149_v10 = vmul.f32 %v2081_v23, %v6121_v26  ;;  %v2150_v4 = vmul.f32 %v2081_v23, %v6122_v55  ;;  %6124 = vst [vmem:[#allocation23_spill] sm:$0xff] %v5490_v62  ;;  %v3774_v9 = vld [vmem:[%s5937_s0 + $0x130] sm:$0xff] }
 0x639   :  { %v2207_v63 = vmax.f32 %v2175_v57, 0.0  ;;  %v2208_v37 = vmax.f32 %v2176_v59, 0.0  ;;  %v2398_v57 = vmul.f32 %v5485_v45, %v1645_v53 }
 0x63a   :  { %v2404_v44 = vmul.f32 %v4944_v42, %v2209_v39  ;;  %v2405_v29 = vmul.f32 %v4949_v43, %v2210_v5  ;;  %v3772_v42 = vld [vmem:[%s5937_s0 + $0xf0] sm:$0xff]  ;;  %v3773_v43 = vld [vmem:[%s5937_s0 + $0xf8] sm:$0xff]  ;;  %v2181_v25 = vadd.f32 %v3774_v9, %v2149_v10  ;;  %v2182_v59 = vadd.f32 %v3775_v56, %v2150_v4  ;;  %v2076_v10 = vpop.permute.xlu0 %2075 }
 0x63b   :  { %v2825_v24 = vmul.f32 %v4962_v48, %v2207_v63  ;;  %v2826_v26 = vmul.f32 %v4967_v58, %v2208_v37  ;;  %v1615_v55 = vadd.f32 %v3772_v42, %v1583_v21  ;;  %v1616_v50 = vadd.f32 %v3773_v43, %v1584_v49  ;;  %v5508_v58 = vld [vmem:[%s5946_s9 + $0x1e0] sm:$0xff]  ;;  %v5513_v21 = vld [vmem:[%s5946_s9 + $0x1e8] sm:$0xff]  ;;  %v3776_v49 = vld [vmem:[%s5946_s9 + $0x110] sm:$0xff] }
 0x63c   :  { %v2399_v48 = vmul.f32 %v5490_v62, %v1646_v15  ;;  %6125 = vst [vmem:[#allocation24_spill] sm:$0xff] %v5513_v21  ;;  %v2485_v23 = vadd.f32 %v2405_v29, %v2404_v44  ;;  %v2827_v42 = vmul.f32 %v3776_v49, %v2209_v39  ;;  %v3777_v43 = vld [vmem:[%s5946_s9 + $0x118] sm:$0xff]  ;;  %v2821_v62 = vmul.f32 %v5508_v58, %v1645_v53  ;;  %v6126_v29 = vld [vmem:[#allocation30_spill] sm:$0xff] }
 0x63d   :  { %v2905_v3 = vadd.f32 %v2826_v26, %v2825_v24  ;;  %v2828_v9 = vmul.f32 %v3777_v43, %v2210_v5  ;;  %v1647_v8 = vmax.f32 %v1615_v55, 0.0  ;;  %v1648_v7 = vmax.f32 %v1616_v50, 0.0  ;;  %v6127_v26 = vld [vmem:[#allocation31_spill] sm:$0xff]  ;;  %v3778_v5 = vld [vmem:[%s5946_s9] sm:$0xff] }
 0x63e   :  { %2486 = vadd.xlane.f32.xlu0 %v2485_v23  ;;  %v2822_v4 = vmul.f32 %v5513_v21, %v1646_v15  ;;  %v2213_v44 = vmax.f32 %v2181_v25, 0.0  ;;  %v2147_v24 = vmul.f32 %v2076_v10, %v6126_v29  ;;  %v2148_v56 = vmul.f32 %v2076_v10, %v6127_v26  ;;  %v3779_v50 = vld [vmem:[%s5946_s9 + $0x8] sm:$0xff]  ;;  %v5537_v15 = vld [vmem:[%s5946_s9 + $0xf0] sm:$0xff]  ;;  %v5542_v25 = vld [vmem:[%s5946_s9 + $0xf8] sm:$0xff] }
 0x63f   :  { %2906 = vadd.xlane.f32.xlu1 %v2905_v3  ;;  %v2476_v45 = vadd.f32 %v2399_v48, %v2398_v57  ;;  %v2214_v39 = vmax.f32 %v2182_v59, 0.0  ;;  %v2908_v49 = vadd.f32 %v2828_v9, %v2827_v42  ;;  %v2402_v55 = vmul.f32 %v3778_v5, %v2207_v63  ;;  %v3780_v63 = vld [vmem:[%s5937_s0 + $0x120] sm:$0xff]  ;;  %v5552_v10 = vld [vmem:[%s5946_s9 + $0x1f0] sm:$0xff]  ;;  %v5557_v23 = vld [vmem:[%s5946_s9 + $0x1f8] sm:$0xff] }
 0x640   :  { %v2403_v53 = vmul.f32 %v3779_v50, %v2208_v37  ;;  %v2179_v57 = vadd.f32 %v3780_v63, %v2147_v24  ;;  %v2899_v48 = vadd.f32 %v2822_v4, %v2821_v62  ;;  %v2400_v37 = vmul.f32 %v5537_v15, %v1647_v8  ;;  %v2091_v62 = vpop.permute.xlu1 %2090  ;;  %v3782_v43 = vld [vmem:[%s5946_s9 + $0x30] sm:$0xff]  ;;  %v3783_v4 = vld [vmem:[%s5946_s9 + $0x38] sm:$0xff] }
 0x641   :  { %v2401_v59 = vmul.f32 %v5542_v25, %v1648_v7  ;;  %v2408_v9 = vmul.f32 %v3782_v43, %v2213_v44  ;;  %v2409_v29 = vmul.f32 %v3783_v4, %v2214_v39  ;;  %v2823_v24 = vmul.f32 %v5552_v10, %v1647_v8  ;;  %v3784_v43 = vld [vmem:[%s5946_s9 + $0x130] sm:$0xff] }
 0x642   :  { %2909 = vadd.xlane.f32.xlu0 %v2908_v49  ;;  %v2482_v42 = vadd.f32 %v2403_v53, %v2402_v55  ;;  %v2824_v26 = vmul.f32 %v5557_v23, %v1648_v7  ;;  %v2211_v49 = vmax.f32 %v2179_v57, 0.0  ;;  %v6129_v55 = vld [vmem:[#allocation37_spill] sm:$0xff]  ;;  %v2831_v21 = vmul.f32 %v3784_v43, %v2213_v44  ;;  %v3786_v7 = vld [vmem:[%s5937_s0 + $0x150] sm:$0xff] }
 0x643   :  { %2477 = vadd.xlane.f32.xlu1 %v2476_v45  ;;  %v3781_v45 = vld [vmem:[%s5937_s0 + $0x128] sm:$0xff]  ;;  %v2154_v50 = vmul.f32 %v2091_v62, %v6129_v55  ;;  %v2479_v53 = vadd.f32 %v2401_v59, %v2400_v37  ;;  %v3787_v59 = vld [vmem:[%s5937_s0 + $0x158] sm:$0xff] }
 0x644   :  { %v2180_v3 = vadd.f32 %v3781_v45, %v2148_v56  ;;  %v6128_v56 = vld [vmem:[#allocation36_spill] sm:$0xff]  ;;  %v2491_v45 = vadd.f32 %v2409_v29, %v2408_v9  ;;  %v2902_v37 = vadd.f32 %v2824_v26, %v2823_v24  ;;  %v3789_v9 = vld [vmem:[%s5946_s9 + $0x28] sm:$0xff] }
 0x645   :  { %v2153_v5 = vmul.f32 %v2091_v62, %v6128_v56  ;;  %v2086_v62 = vpop.permute.xlu0 %2085  ;;  %v6130_v24 = vld [vmem:[#allocation34_spill] sm:$0xff]  ;;  %v6131_v56 = vld [vmem:[#allocation35_spill] sm:$0xff] }
 0x646   :  { %2483 = vadd.xlane.f32.xlu0 %v2482_v42  ;;  %v2212_v63 = vmax.f32 %v2180_v3, 0.0  ;;  %v2186_v3 = vadd.f32 %v3787_v59, %v2154_v50  ;;  %v3788_v42 = vld [vmem:[%s5946_s9 + $0x20] sm:$0xff]  ;;  %v2151_v26 = vmul.f32 %v2086_v62, %v6130_v24 }
 0x647   :  { %2900 = vadd.xlane.f32.xlu1 %v2899_v48  ;;  %v3785_v48 = vld [vmem:[%s5946_s9 + $0x138] sm:$0xff]  ;;  %v2185_v57 = vadd.f32 %v3786_v7, %v2153_v5  ;;  %v2152_v5 = vmul.f32 %v2086_v62, %v6131_v56  ;;  %v3793_v7 = vld [vmem:[%s5937_s0 + $0x148] sm:$0xff] }
 0x648   :  { %v2832_v8 = vmul.f32 %v3785_v48, %v2214_v39  ;;  %v2406_v39 = vmul.f32 %v3788_v42, %v2211_v49  ;;  %v2407_v4 = vmul.f32 %v3789_v9, %v2212_v63  ;;  %v2218_v55 = vmax.f32 %v2186_v3, 0.0  ;;  %v3792_v48 = vld [vmem:[%s5937_s0 + $0x140] sm:$0xff]  ;;  %v6132_v42 = vld [vmem:[#allocation40_spill] sm:$0xff] }
 0x649   :  { %v2217_v29 = vmax.f32 %v2185_v57, 0.0  ;;  %v2184_v57 = vadd.f32 %v3793_v7, %v2152_v5  ;;  %v6133_v9 = vld [vmem:[#allocation41_spill] sm:$0xff] }
 0x64a   :  { %2492 = vadd.xlane.f32.xlu0 %v2491_v45  ;;  %v2914_v44 = vadd.f32 %v2832_v8, %v2831_v21  ;;  %v2488_v50 = vadd.f32 %v2407_v4, %v2406_v39  ;;  %v3790_v21 = vld [vmem:[%s5946_s9 + $0x120] sm:$0xff]  ;;  %v3791_v45 = vld [vmem:[%s5946_s9 + $0x128] sm:$0xff]  ;;  %v2183_v8 = vadd.f32 %v3792_v48, %v2151_v26  ;;  %v2836_v5 = vmul.f32 %v5045_v34, %v2218_v55 }
 0x64b   :  { %2480 = vadd.xlane.f32.xlu1 %v2479_v53  ;;  %v2829_v53 = vmul.f32 %v3790_v21, %v2211_v49  ;;  %v2830_v43 = vmul.f32 %v3791_v45, %v2212_v63  ;;  %v3794_v49 = vld [vmem:[%s5946_s9 + $0x50] sm:$0xff]  ;;  %v3795_v63 = vld [vmem:[%s5946_s9 + $0x58] sm:$0xff]  ;;  %v2216_v24 = vmax.f32 %v2184_v57, 0.0  ;;  %v2835_v56 = vmul.f32 %v5040_v33, %v2217_v29  ;;  %v6134_v34 = vld [vmem:[#allocation38_spill] sm:$0xff] }
 0x64c   :  { %v2412_v3 = vmul.f32 %v3794_v49, %v2217_v29  ;;  %v2413_v62 = vmul.f32 %v3795_v63, %v2218_v55  ;;  %v6135_v55 = vld [vmem:[#allocation39_spill] sm:$0xff]  ;;  %v3798_v63 = vld [vmem:[%s5937_s0 + $0x160] sm:$0xff] }
 0x64d   :  { %v2911_v59 = vadd.f32 %v2830_v43, %v2829_v53  ;;  %v3797_v53 = vld [vmem:[%s5937_s0 + $0x178] sm:$0xff]  ;;  %v2096_v43 = vpop.permute.xlu0 %2095  ;;  %v2920_v48 = vadd.f32 %v2836_v5, %v2835_v56  ;;  %v2411_v7 = vmul.f32 %v5069_v32, %v2216_v24  ;;  %v3799_v32 = vld [vmem:[%s5937_s0 + $0x168] sm:$0xff] }
 0x64e   :  { %2915 = vadd.xlane.f32.xlu0 %v2914_v44  ;;  %v2215_v44 = vmax.f32 %v2183_v8, 0.0  ;;  %v2497_v26 = vadd.f32 %v2413_v62, %v2412_v3  ;;  %v2155_v29 = vmul.f32 %v2096_v43, %v6134_v34  ;;  %v2156_v57 = vmul.f32 %v2096_v43, %v6135_v55  ;;  %v6139_v34 = vld [vmem:[#allocation43_spill] sm:$0xff] }
 0x64f   :  { %2903 = vadd.xlane.f32.xlu1 %v2902_v37  ;;  %v2101_v37 = vpop.permute.xlu1 %2100  ;;  %v2834_v3 = vmul.f32 %v5089_v12, %v2216_v24  ;;  %v6136_v12 = vld [vmem:[#allocation44_spill] sm:$0xff]  ;;  %v6137_v24 = vld [vmem:[#allocation45_spill] sm:$0xff] }
 0x650   :  { %v2157_v39 = vmul.f32 %v2101_v37, %v6132_v42  ;;  %v2158_v4 = vmul.f32 %v2101_v37, %v6133_v9  ;;  %v2410_v8 = vmul.f32 %v5064_v51, %v2215_v44  ;;  %v2833_v49 = vmul.f32 %v5084_v31, %v2215_v44 }
 0x651   :  { %v2187_v51 = vadd.f32 %v3798_v63, %v2155_v29  ;;  %v2188_v62 = vadd.f32 %v3799_v32, %v2156_v57  ;;  %v2106_v43 = vpop.permute.xlu0 %2105 }
 0x652   :  { %2489 = vadd.xlane.f32.xlu0 %v2488_v50  ;;  %v3796_v50 = vld [vmem:[%s5937_s0 + $0x170] sm:$0xff]  ;;  %v2190_v45 = vadd.f32 %v3797_v53, %v2158_v4  ;;  %v2160_v29 = vmul.f32 %v2106_v43, %v6139_v34  ;;  %v3809_v34 = vld [vmem:[%s5937_s0 + $0x1a8] sm:$0xff] }
 0x653   :  { %v2189_v21 = vadd.f32 %v3796_v50, %v2157_v39  ;;  %v2111_v42 = vpop.permute.xlu1 %2110  ;;  %v2917_v39 = vadd.f32 %v2834_v3, %v2833_v49  ;;  %v2219_v31 = vmax.f32 %v2187_v51, 0.0  ;;  %v2220_v56 = vmax.f32 %v2188_v62, 0.0  ;;  %v3800_v53 = vld [vmem:[%s5937_s0 + $0x190] sm:$0xff]  ;;  %v3802_v49 = vld [vmem:[%s5937_s0 + $0x180] sm:$0xff] }
 0x654   :  { %v2222_v37 = vmax.f32 %v2190_v45, 0.0  ;;  %v2161_v44 = vmul.f32 %v2111_v42, %v6136_v12 }
 0x655   :  { %v2221_v33 = vmax.f32 %v2189_v21, 0.0 }
 0x656   :  { %2912 = vadd.xlane.f32.xlu0 %v2911_v59  ;;  %v2494_v59 = vadd.f32 %v2411_v7, %v2410_v8  ;;  %v2417_v4 = vmul.f32 %v5111_v14, %v2222_v37  ;;  %v2840_v21 = vmul.f32 %v5131_v18, %v2222_v37  ;;  %v3801_v14 = vld [vmem:[%s5937_s0 + $0x198] sm:$0xff]  ;;  %v2414_v8 = vmul.f32 %v5138_v1, %v2219_v31  ;;  %v6138_v18 = vld [vmem:[#allocation42_spill] sm:$0xff] }
 0x657   :  { %v2416_v9 = vmul.f32 %v5106_v40, %v2221_v33  ;;  %v2839_v50 = vmul.f32 %v5126_v20, %v2221_v33  ;;  %v2193_v40 = vadd.f32 %v3800_v53, %v2161_v44  ;;  %v2415_v7 = vmul.f32 %v5143_v41, %v2220_v56  ;;  %v3803_v41 = vld [vmem:[%s5937_s0 + $0x188] sm:$0xff]  ;;  %v2121_v63 = vpop.permute.xlu1 %2120 }
 0x658   :  { %v2159_v33 = vmul.f32 %v2106_v43, %v6138_v18  ;;  %v2837_v37 = vmul.f32 %v5150_v0, %v2219_v31  ;;  %v2192_v3 = vadd.f32 %v3803_v41, %v2160_v29  ;;  %v3808_v18 = vld [vmem:[%s5937_s0 + $0x1a0] sm:$0xff] }
 0x659   :  { %v2503_v5 = vadd.f32 %v2417_v4, %v2416_v9  ;;  %v2225_v20 = vmax.f32 %v2193_v40, 0.0  ;;  %v2500_v57 = vadd.f32 %v2415_v7, %v2414_v8  ;;  %v3806_v8 = vld [vmem:[%s5946_s9 + $0x180] sm:$0xff] }
 0x65a   :  { %2498 = vadd.xlane.f32.xlu0 %v2497_v26  ;;  %v2162_v26 = vmul.f32 %v2111_v42, %v6137_v24  ;;  %v2191_v1 = vadd.f32 %v3802_v49, %v2159_v33  ;;  %v2224_v4 = vmax.f32 %v2192_v3, 0.0  ;;  %v3804_v24 = vld [vmem:[%s5937_s0 + $0x1b0] sm:$0xff]  ;;  %v6146_v3 = vld [vmem:[#allocation53_spill] sm:$0xff] }
 0x65b   :  { %v2420_v32 = vmul.f32 %v5265_v54, %v2225_v20  ;;  %v2843_v12 = vmul.f32 %v5287_v36, %v2225_v20  ;;  %v3807_v20 = vld [vmem:[%s5946_s9 + $0x188] sm:$0xff] }
 0x65c   :  { %v2194_v45 = vadd.f32 %v3801_v14, %v2162_v26  ;;  %v2223_v0 = vmax.f32 %v2191_v1, 0.0  ;;  %v6144_v14 = vld [vmem:[#allocation47_spill] sm:$0xff]  ;;  %v6145_v1 = vld [vmem:[#allocation52_spill] sm:$0xff] }
 0x65e   :  { %2921 = vadd.xlane.f32.xlu0 %v2920_v48  ;;  %v2926_v48 = vadd.f32 %v2840_v21, %v2839_v50  ;;  %v2226_v55 = vmax.f32 %v2194_v45, 0.0  ;;  %v2418_v50 = vmul.f32 %v5162_v16, %v2223_v0  ;;  %v6142_v21 = vld [vmem:[#allocation6_spill] sm:$0xff]  ;;  %v2841_v7 = vmul.f32 %v3806_v8, %v2223_v0  ;;  %v6152_v8 = vld [vmem:[#allocation57_spill] sm:$0xff] }
 0x65f   :  { %v2419_v53 = vmul.f32 %v6142_v21, %v2224_v4  ;;  %v2842_v16 = vmul.f32 %v3807_v20, %v2224_v4  ;;  %v6147_v4 = vld [vmem:[#allocation12_spill] sm:$0xff]  ;;  %v3812_v21 = vld [vmem:[%s5937_s0 + $0x1c0] sm:$0xff] }
 0x660   :  { %v2421_v62 = vmul.f32 %v5270_v27, %v2226_v55  ;;  %v2844_v44 = vmul.f32 %v5292_v11, %v2226_v55  ;;  %v3805_v27 = vld [vmem:[%s5937_s0 + $0x1b8] sm:$0xff]  ;;  %v6143_v11 = vld [vmem:[#allocation46_spill] sm:$0xff]  ;;  %v2131_v55 = vpop.permute.xlu1 %2130 }
 0x661   :  { %v2169_v41 = vmul.f32 %v2131_v55, %v6145_v1 }
 0x662   :  { %2495 = vadd.xlane.f32.xlu0 %v2494_v59  ;;  %v2838_v59 = vmul.f32 %v5155_v52, %v2220_v56  ;;  %v6140_v52 = vld [vmem:[#allocation48_spill] sm:$0xff]  ;;  %v2509_v31 = vadd.f32 %v2421_v62, %v2420_v32  ;;  %v2116_v56 = vpop.permute.xlu0 %2115 }
 0x663   :  { %v2165_v42 = vmul.f32 %v2121_v63, %v6140_v52  ;;  %v2163_v40 = vmul.f32 %v2116_v56, %v6143_v11  ;;  %v2164_v45 = vmul.f32 %v2116_v56, %v6144_v14  ;;  %v3810_v52 = vld [vmem:[%s5937_s0 + $0x1d0] sm:$0xff] }
 0x664   :  { %v2923_v51 = vadd.f32 %v2838_v59, %v2837_v37 }
 0x665   :  { %v2197_v54 = vadd.f32 %v3804_v24, %v2165_v42  ;;  %v2195_v33 = vadd.f32 %v3808_v18, %v2163_v40  ;;  %v2196_v29 = vadd.f32 %v3809_v34, %v2164_v45  ;;  %v2141_v40 = vpop.permute.xlu1 %2140 }
 0x666   :  { %2918 = vadd.xlane.f32.xlu0 %v2917_v39  ;;  %v6141_v39 = vld [vmem:[#allocation49_spill] sm:$0xff] }
 0x667   :  { %v2166_v9 = vmul.f32 %v2121_v63, %v6141_v39  ;;  %v2229_v36 = vmax.f32 %v2197_v54, 0.0  ;;  %v2227_v49 = vmax.f32 %v2195_v33, 0.0  ;;  %v2170_v63 = vmul.f32 %v2131_v55, %v6146_v3  ;;  %v2126_v39 = vpop.permute.xlu0 %2125  ;;  %v6150_v54 = vld [vmem:[#allocation51_spill] sm:$0xff]  ;;  %v3816_v3 = vld [vmem:[%s5937_s0 + $0x1e0] sm:$0xff] }
 0x669   :  { %v2198_v26 = vadd.f32 %v3805_v27, %v2166_v9  ;;  %v2424_v37 = vmul.f32 %v5350_v61, %v2229_v36  ;;  %v2847_v62 = vmul.f32 %v5378_v17, %v2229_v36  ;;  %v2201_v61 = vadd.f32 %v3810_v52, %v2169_v41  ;;  %v3813_v36 = vld [vmem:[%s5937_s0 + $0x1c8] sm:$0xff] }
 0x66a   :  { %2504 = vadd.xlane.f32.xlu0 %v2503_v5  ;;  %v2932_v5 = vadd.f32 %v2844_v44, %v2843_v12  ;;  %v6148_v12 = vld [vmem:[#allocation13_spill] sm:$0xff]  ;;  %v2168_v27 = vmul.f32 %v2126_v39, %v6150_v54  ;;  %v6157_v54 = vld [vmem:[#allocation24_spill] sm:$0xff] }
 0x66b   :  { %v2230_v43 = vmax.f32 %v2198_v26, 0.0  ;;  %v2233_v17 = vmax.f32 %v2201_v61, 0.0 }
 0x66c   :  { %v2200_v11 = vadd.f32 %v3813_v36, %v2168_v27 }
 0x66d   :  { %v2425_v59 = vmul.f32 %v5359_v47, %v2230_v43  ;;  %v2848_v0 = vmul.f32 %v5383_v6, %v2230_v43  ;;  %v3811_v47 = vld [vmem:[%s5937_s0 + $0x1d8] sm:$0xff]  ;;  %v6149_v6 = vld [vmem:[#allocation50_spill] sm:$0xff]  ;;  %v2428_v45 = vmul.f32 %v5427_v22, %v2233_v17  ;;  %v2851_v33 = vmul.f32 %v5439_v46, %v2233_v17  ;;  %v3814_v22 = vld [vmem:[%s5937_s0 + $0x1f0] sm:$0xff] }
 0x66e   :  { %2927 = vadd.xlane.f32.xlu0 %v2926_v48  ;;  %v2506_v48 = vadd.f32 %v2419_v53, %v2418_v50  ;;  %v2202_v42 = vadd.f32 %v3811_v47, %v2170_v63  ;;  %v2167_v24 = vmul.f32 %v2126_v39, %v6149_v6  ;;  %v2232_v20 = vmax.f32 %v2200_v11, 0.0  ;;  %v6156_v17 = vld [vmem:[#allocation23_spill] sm:$0xff] }
 0x66f   :  { %v2515_v32 = vadd.f32 %v2425_v59, %v2424_v37  ;;  %v2938_v9 = vadd.f32 %v2848_v0, %v2847_v62  ;;  %v3815_v59 = vld [vmem:[%s5937_s0 + $0x1f8] sm:$0xff] }
 0x670   :  { %v2234_v26 = vmax.f32 %v2202_v42, 0.0  ;;  %v2199_v53 = vadd.f32 %v3812_v21, %v2167_v24 }
 0x672   :  { %2501 = vadd.xlane.f32.xlu0 %v2500_v57  ;;  %v2929_v57 = vadd.f32 %v2842_v16, %v2841_v7  ;;  %v2429_v43 = vmul.f32 %v5432_v35, %v2234_v26  ;;  %v2174_v7 = vmul.f32 %v2141_v40, %v6152_v8  ;;  %v2136_v16 = vpop.permute.xlu0 %2135  ;;  %v2852_v34 = vmul.f32 %v5444_v19, %v2234_v26  ;;  %v6153_v35 = vld [vmem:[#allocation54_spill] sm:$0xff] }
 0x673   :  { %v2171_v55 = vmul.f32 %v2136_v16, %v6153_v35  ;;  %v2427_v19 = vmul.f32 %v5402_v30, %v2232_v20  ;;  %v2850_v30 = vmul.f32 %v5420_v38, %v2232_v20 }
 0x674   :  { %v2521_v18 = vadd.f32 %v2429_v43, %v2428_v45  ;;  %v2944_v1 = vadd.f32 %v2852_v34, %v2851_v33  ;;  %v6159_v45 = vld [vmem:[#allocation8_spill] sm:$0xff] }
 0x675   :  { %v2203_v63 = vadd.f32 %v3816_v3, %v2171_v55 }
 0x676   :  { %2924 = vadd.xlane.f32.xlu0 %v2923_v51  ;;  %v2228_v51 = vmax.f32 %v2196_v29, 0.0 }
 0x677   :  { %v2235_v61 = vmax.f32 %v2203_v63, 0.0 }
 0x678   :  { %v2423_v44 = vmul.f32 %v6148_v12, %v2228_v51  ;;  %v2846_v50 = vmul.f32 %v5336_v2, %v2228_v51  ;;  %v6151_v2 = vld [vmem:[#allocation56_spill] sm:$0xff]  ;;  %v3817_v51 = vld [vmem:[%s5937_s0 + $0x1e8] sm:$0xff] }
 0x679   :  { %v6155_v12 = vld [vmem:[#allocation22_spill] sm:$0xff]  ;;  %v2853_v24 = vmul.f32 %v5508_v58, %v2235_v61 }
 0x67a   :  { %2510 = vadd.xlane.f32.xlu0 %v2509_v31  ;;  %v2422_v31 = vmul.f32 %v6147_v4, %v2227_v49 }
 0x67c   :  { %v2512_v56 = vadd.f32 %v2423_v44, %v2422_v31  ;;  %v2430_v44 = vmul.f32 %v6155_v12, %v2235_v61 }
 0x67e   :  { %2933 = vadd.xlane.f32.xlu0 %v2932_v5  ;;  %v2845_v5 = vmul.f32 %v5331_v28, %v2227_v49  ;;  %v2231_v28 = vmax.f32 %v2199_v53, 0.0  ;;  %v2206_v49 = vadd.f32 %v3815_v59, %v2174_v7 }
 0x680   :  { %v2935_v14 = vadd.f32 %v2846_v50, %v2845_v5  ;;  %v2426_v46 = vmul.f32 %v5397_v60, %v2231_v28  ;;  %v2238_v62 = vmax.f32 %v2206_v49, 0.0  ;;  %v2849_v60 = vmul.f32 %v5415_v13, %v2231_v28 }
 0x682   :  { %2507 = vadd.xlane.f32.xlu0 %v2506_v48  ;;  %v2173_v48 = vmul.f32 %v2141_v40, %v6151_v2  ;;  %v2518_v52 = vadd.f32 %v2427_v19, %v2426_v46  ;;  %v2941_v42 = vadd.f32 %v2850_v30, %v2849_v60  ;;  %v2856_v26 = vmul.f32 %v5557_v23, %v2238_v62 }
 0x683   :  { %v5730_v0 = vpop.xlane.xlu1 %2882 }
 0x684   :  { %v2205_v29 = vadd.f32 %v3814_v22, %v2173_v48  ;;  %v6161_v22 = vld [vmem:[#allocation16_spill] sm:$0xff] }
 0x686   :  { %2930 = vadd.xlane.f32.xlu0 %v2929_v57  ;;  %v6154_v57 = vld [vmem:[#allocation55_spill] sm:$0xff]  ;;  %v2237_v41 = vmax.f32 %v2205_v29, 0.0 }
 0x687   :  { %v2172_v37 = vmul.f32 %v2136_v16, %v6154_v57  ;;  %v5736_v4 = vpop.xlane.xlu1 %2462 }
 0x688   :  { %v2432_v39 = vmul.f32 %v5537_v15, %v2237_v41 }
 0x68a   :  { %2516 = vadd.xlane.f32.xlu0 %v2515_v32  ;;  %v2204_v32 = vadd.f32 %v3817_v51, %v2172_v37  ;;  %v6162_v51 = vld [vmem:[#allocation17_spill] sm:$0xff] }
 0x68b   :  { %v5740_v13 = vpop.xlane.xlu1 %2885 }
 0x68c   :  { %v2236_v47 = vmax.f32 %v2204_v32, 0.0 }
 0x68e   :  { %2939 = vadd.xlane.f32.xlu0 %v2938_v9  ;;  %v2433_v9 = vmul.f32 %v5542_v25, %v2238_v62  ;;  %v2431_v6 = vmul.f32 %v6156_v17, %v2236_v47  ;;  %v2854_v27 = vmul.f32 %v6157_v54, %v2236_v47  ;;  %v2855_v25 = vmul.f32 %v5552_v10, %v2237_v41  ;;  %v6163_v62 = vld [vmem:[#allocation14_spill] sm:$0xff] }
 0x690   :  { %v2527_v31 = vadd.f32 %v2433_v9, %v2432_v39  ;;  %v2524_v38 = vadd.f32 %v2431_v6, %v2430_v44  ;;  %v2947_v15 = vadd.f32 %v2854_v27, %v2853_v24  ;;  %v2950_v5 = vadd.f32 %v2856_v26, %v2855_v25  ;;  %v6164_v6 = vld [vmem:[#allocation15_spill] sm:$0xff]  ;;  %v6165_v24 = vld [vmem:[#allocation18_spill] sm:$0xff] }
 0x692   :  { %2513 = vadd.xlane.f32.xlu0 %v2512_v56  ;;  %v5746_v56 = vpop.xlane.xlu1 %2465 }
 0x696   :  { %2936 = vadd.xlane.f32.xlu0 %v2935_v14  ;;  %v5748_v50 = vpop.xlane.xlu1 %2888  ;;  %v6158_v14 = vld [vmem:[#allocation11_spill] sm:$0xff] }
 0x69a   :  { %2522 = vadd.xlane.f32.xlu0 %v2521_v18  ;;  %v5750_v21 = vpop.xlane.xlu1 %2468  ;;  %v6160_v18 = vld [vmem:[#allocation9_spill] sm:$0xff] }
 0x69e   :  { %2945 = vadd.xlane.f32.xlu0 %v2944_v1  ;;  %v5752_v53 = vpop.xlane.xlu1 %2891 }
 0x6a2   :  { %2519 = vadd.xlane.f32.xlu0 %v2518_v52  ;;  %v5754_v58 = vpop.xlane.xlu1 %2471 }
 0x6a6   :  { %2942 = vadd.xlane.f32.xlu0 %v2941_v42  ;;  %v5756_v40 = vpop.xlane.xlu1 %2894 }
 0x6aa   :  { %2528 = vadd.xlane.f32.xlu0 %v2527_v31  ;;  %v5760_v28 = vpop.xlane.xlu1 %2474 }
 0x6ae   :  { %2525 = vadd.xlane.f32.xlu0 %v2524_v38  ;;  %v5763_v7 = vpop.xlane.xlu1 %2897 }
 0x6b2   :  { %2948 = vadd.xlane.f32.xlu0 %v2947_v15 }
 0x6b6   :  { %2951 = vadd.xlane.f32.xlu0 %v2950_v5 }
 0x6cb   :  { %v2487_v36 = vpop.xlane.xlu0 %2486 }
 0x6cc   :  { %v2678_v23 = vrot.slane %v2487_v36, %v6158_v14  ;;  %v2907_v16 = vpop.xlane.xlu1 %2906 }
 0x6cd   :  { %v3067_v55 = vrot.slane %v2907_v16, %v6159_v45 }
 0x6cf   :  { %v2910_v11 = vpop.xlane.xlu0 %2909 }
 0x6d0   :  { %v3071_v34 = vrot.slane %v2910_v11, %v6158_v14  ;;  %v5801_v16 = vpop.xlane.xlu1 %2477 }
 0x6d2   :  { %v3072_v49 = vsel %vm2571_vm1, %v3071_v34, %v3067_v55  ;;  %v6167_v34 = vld [vmem:[#allocation19_spill] sm:$0xff] }
 0x6d3   :  { %v2484_v10 = vpop.xlane.xlu0 %2483 }
 0x6d4   :  { %v2674_v43 = vrot.slane %v2484_v10, %v6159_v45 }
 0x6d6   :  { %v2679_v2 = vsel %vm2571_vm1, %v2678_v23, %v2674_v43  ;;  %vm2753_vm1 = vcmask 1041408  }
 0x6d7   :  { %v2493_v48 = vpop.xlane.xlu0 %2492 }
 0x6d8   :  { %v2688_v29 = vrot.slane %v2493_v48, %v6161_v22 }
 0x6db   :  { %v2916_v8 = vpop.xlane.xlu0 %2915 }
 0x6dc   :  { %v3081_v1 = vrot.slane %v2916_v8, %v6161_v22 }
 0x6df   :  { %v2490_v20 = vpop.xlane.xlu0 %2489 }
 0x6e0   :  { %v2683_v33 = vrot.slane %v2490_v20, %v6160_v18 }
 0x6e2   :  { %v2684_v35 = vsel %vm2578_vm2, %v2683_v33, %v2679_v2  ;;  %v6166_v2 = vld [vmem:[#allocation7_spill] sm:$0xff] }
 0x6e3   :  { %v2913_v57 = vpop.xlane.xlu0 %2912  ;;  %v2689_v37 = vsel %vm2585_vm3, %v2688_v29, %v2684_v35  ;;  %v2622_v48 = vadd.s32 4294967224, %v6166_v2  ;;  %v2629_v20 = vadd.s32 4294967216, %v6166_v2  ;;  %v6168_v29 = vld [vmem:[#allocation10_spill] sm:$0xff]  ;;  %v2643_v55 = vadd.s32 4294967200, %v6166_v2 }
 0x6e4   :  { %v3076_v59 = vrot.slane %v2913_v57, %v6160_v18  ;;  %v2636_v18 = vadd.s32 4294967208, %v6166_v2 }
 0x6e5   :  { %v5807_v35 = vsub.s32 %v2622_v48, %v6168_v29 }
 0x6e6   :  { %v3077_v46 = vsel %vm2578_vm2, %v3076_v59, %v3072_v49  ;;  %v5812_v59 = vsub.s32 %v2629_v20, %v6168_v29  ;;  %v2650_v49 = vadd.s32 4294967192, %v6166_v2  ;;  %vm2757_vm2 = vcmp.eq.s32.totalorder %v6166_v2, 0 }
 0x6e7   :  { %v2499_v19 = vpop.xlane.xlu0 %2498  ;;  %v3082_v41 = vsel %vm2585_vm3, %v3081_v1, %v3077_v46  ;;  %v2657_v1 = vadd.s32 4294967184, %v6166_v2  ;;  %vm3148_vm3 = vcmp.eq.s32.totalorder %v6166_v2, 1 }
 0x6e8   :  { %v2698_v52 = vrot.slane %v2499_v19, %v6163_v62  ;;  %v5818_v19 = vsub.s32 %v2636_v18, %v6168_v29 }
 0x6eb   :  { %v2922_v3 = vpop.xlane.xlu0 %2921 }
 0x6ec   :  { %v3091_v42 = vrot.slane %v2922_v3, %v6163_v62  ;;  %v2664_v3 = vadd.s32 4294967176, %v6166_v2  ;;  %v5828_v62 = vsub.s32 %v2643_v55, %v6168_v29 }
 0x6ef   :  { %v2496_v63 = vpop.xlane.xlu0 %2495 }
 0x6f0   :  { %v2693_v32 = vrot.slane %v2496_v63, %v6162_v51 }
 0x6f2   :  { %v2694_v60 = vsel %vm2592_vm4, %v2693_v32, %v2689_v37  ;;  %v2626_v32 = vrot.slane %v5736_v4, %v5807_v35 }
 0x6f3   :  { %v2919_v30 = vpop.xlane.xlu0 %2918  ;;  %v2699_v61 = vsel %vm2599_vm5, %v2698_v52, %v2694_v60 }
 0x6f4   :  { %v3086_v47 = vrot.slane %v2919_v30, %v6162_v51  ;;  %v3027_v30 = vrot.slane %v5730_v0, %v6167_v34  ;;  %v5846_v0 = vsub.s32 %v2664_v3, %v6168_v29 }
 0x6f6   :  { %v3087_v39 = vsel %vm2592_vm4, %v3086_v47, %v3082_v41  ;;  %v5820_v41 = vpop.xlane.xlu1 %2900  ;;  %v5836_v47 = vsub.s32 %v2650_v49, %v6168_v29  ;;  %vm3159_vm4 = vcmask 9216  }
 0x6f7   :  { %v2505_v9 = vpop.xlane.xlu0 %2504  ;;  %v3092_v31 = vsel %vm2599_vm5, %v3091_v42, %v3087_v39  ;;  %v5839_v42 = vsub.s32 %v2657_v1, %v6168_v29 }
 0x6f8   :  { %v2708_v57 = vrot.slane %v2505_v9, %v6165_v24  ;;  %v2640_v9 = vrot.slane %v5750_v21, %v5818_v19 }
 0x6fb   :  { %v2928_v12 = vpop.xlane.xlu0 %2927 }
 0x6fc   :  { %v3101_v54 = vrot.slane %v2928_v12, %v6165_v24  ;;  %v6169_v12 = vld [vmem:[#allocation21_spill] sm:$0xff]  ;;  %v6170_v24 = vld [vmem:[#allocation20_spill] sm:$0xff] }
 0x6fd   :  { %v3028_v21 = vsel %vm2620_vm8, %v3027_v30, %v6170_v24 }
 0x6ff   :  { %v2502_v44 = vpop.xlane.xlu0 %2501 }
 0x700   :  { %v2703_v43 = vrot.slane %v2502_v44, %v6164_v6  ;;  %v2628_v44 = vsel %vm2627_vm9, %v2626_v32, %v6169_v12 }
 0x702   :  { %v2704_v33 = vsel %vm2606_vm6, %v2703_v43, %v2699_v61  ;;  %v2633_v61 = vrot.slane %v5746_v56, %v5812_v59 }
 0x703   :  { %v2925_v17 = vpop.xlane.xlu0 %2924  ;;  %v2709_v46 = vsel %vm2613_vm7, %v2708_v57, %v2704_v33 }
 0x704   :  { %v3096_v38 = vrot.slane %v2925_v17, %v6164_v6  ;;  %v2647_v17 = vrot.slane %v5754_v58, %v5828_v62 }
 0x706   :  { %v3097_v27 = vsel %vm2606_vm6, %v3096_v38, %v3092_v31 }
 0x707   :  { %v2511_v15 = vpop.xlane.xlu0 %2510  ;;  %v3102_v25 = vsel %vm2613_vm7, %v3101_v54, %v3097_v27  ;;  %v3032_v54 = vrot.slane %v5740_v13, %v5807_v35  ;;  %v2635_v27 = vsel %vm2634_vm10, %v2633_v61, %v2628_v44  ;;  %v2661_v13 = vrot.slane %v5801_v16, %v5839_v42 }
 0x708   :  { %v2718_v52 = vrot.slane %v2511_v15, %v5807_v35  ;;  %v2654_v15 = vrot.slane %v5760_v28, %v5836_v47  ;;  %v2642_v43 = vsel %vm2641_vm11, %v2640_v9, %v2635_v27 }
 0x709   :  { %v3033_v57 = vsel %vm2627_vm9, %v3032_v54, %v3028_v21 }
 0x70b   :  { %v5788_v26 = vpop.xlane.xlu0 %2933 }
 0x70c   :  { %v3111_v48 = vrot.slane %v5788_v26, %v5807_v35 }
 0x70f   :  { %v2508_v5 = vpop.xlane.xlu0 %2507 }
 0x710   :  { %v2713_v22 = vrot.slane %v2508_v5, %v6167_v34  ;;  %v2481_v5 = vpop.xlane.xlu1 %2480 }
 0x711   :  { %v2668_v20 = vrot.slane %v2481_v5, %v5846_v0 }
 0x712   :  { %v2714_v63 = vsel %vm2620_vm8, %v2713_v22, %v2709_v46 }
 0x713   :  { %v2931_v36 = vpop.xlane.xlu0 %2930  ;;  %v2719_v39 = vsel %vm2627_vm9, %v2718_v52, %v2714_v63  ;;  %v3052_v63 = vrot.slane %v5763_v7, %v5836_v47 }
 0x714   :  { %v3106_v4 = vrot.slane %v2931_v36, %v6167_v34  ;;  %v3037_v36 = vrot.slane %v5748_v50, %v5812_v59  ;;  %v3042_v50 = vrot.slane %v5752_v53, %v5818_v19 }
 0x716   :  { %v3107_v58 = vsel %vm2620_vm8, %v3106_v4, %v3102_v25  ;;  %v2649_v25 = vsel %vm2648_vm12, %v2647_v17, %v2642_v43  ;;  %v3038_v3 = vsel %vm2634_vm10, %v3037_v36, %v3033_v57  ;;  %v3319_v17 = vld [vmem:[%s5947_s10] ss:$0 sm:$0xff] }
 0x717   :  { %v2517_v11 = vpop.xlane.xlu0 %2516  ;;  %v2656_v33 = vsel %vm2655_vm13, %v2654_v15, %v2649_v25  ;;  %v3112_v16 = vsel %vm2627_vm9, %v3111_v48, %v3107_v58  ;;  %v3043_v52 = vsel %vm2641_vm11, %v3042_v50, %v3038_v3 }
 0x718   :  { %v2728_v6 = vrot.slane %v2517_v11, %v5818_v19  ;;  %v2663_v35 = vsel %vm2662_vm14, %v2661_v13, %v2656_v33 }
 0x719   :  { %v2670_v1 = vsel %vm2669_vm15, %v2668_v20, %v2663_v35 }
 0x71b   :  { %v5790_v10 = vpop.xlane.xlu0 %2939 }
 0x71f   :  { %v2514_v14 = vpop.xlane.xlu0 %2513 }
 0x720   :  { %v2723_v51 = vrot.slane %v2514_v14, %v5812_v59 }
 0x722   :  { %v2724_v56 = vsel %vm2634_vm10, %v2723_v51, %v2719_v39  ;;  %v3057_v51 = vrot.slane %v5820_v41, %v5839_v42 }
 0x723   :  { %v5792_v23 = vpop.xlane.xlu0 %2936  ;;  %v2729_v14 = vsel %vm2641_vm11, %v2728_v6, %v2724_v56 }
 0x724   :  { %v3116_v11 = vrot.slane %v5792_v23, %v5812_v59  ;;  %v2904_v59 = vpop.xlane.xlu1 %2903 }
 0x726   :  { %v3117_v26 = vsel %vm2634_vm10, %v3116_v11, %v3112_v16 }
 0x727   :  { %v5794_v45 = vpop.xlane.xlu0 %2522 }
 0x728   :  { %v2738_v23 = vrot.slane %v5794_v45, %v5836_v47  ;;  %v3121_v45 = vrot.slane %v5790_v10, %v5818_v19 }
 0x72a   :  { %v3122_v10 = vsel %vm2641_vm11, %v3121_v45, %v3117_v26 }
 0x72b   :  { %v5798_v8 = vpop.xlane.xlu0 %2945 }
 0x72c   :  { %v3131_v7 = vrot.slane %v5798_v8, %v5836_v47 }
 0x72f   :  { %v2520_v37 = vpop.xlane.xlu0 %2519 }
 0x730   :  { %v2733_v31 = vrot.slane %v2520_v37, %v5828_v62  ;;  %v3047_v37 = vrot.slane %v5756_v40, %v5828_v62 }
 0x732   :  { %v2734_v28 = vsel %vm2648_vm12, %v2733_v31, %v2729_v14  ;;  %v3048_v30 = vsel %vm2648_vm12, %v3047_v37, %v3043_v52 }
 0x733   :  { %v2943_v60 = vpop.xlane.xlu0 %2942  ;;  %v2739_v29 = vsel %vm2655_vm13, %v2738_v23, %v2734_v28  ;;  %v3053_v4 = vsel %vm2655_vm13, %v3052_v63, %v3048_v30 }
 0x734   :  { %v3126_v22 = vrot.slane %v2943_v60, %v5828_v62  ;;  %v3062_v60 = vrot.slane %v2904_v59, %v5846_v0 }
 0x736   :  { %v3127_v40 = vsel %vm2648_vm12, %v3126_v22, %v3122_v10 }
 0x737   :  { %v2529_v38 = vpop.xlane.xlu0 %2528  ;;  %v3132_v41 = vsel %vm2655_vm13, %v3131_v7, %v3127_v40 }
 0x738   :  { %v2748_v53 = vrot.slane %v2529_v38, %v5846_v0 }
 0x73b   :  { %v2526_v18 = vpop.xlane.xlu0 %2525 }
 0x73c   :  { %v2743_v34 = vrot.slane %v2526_v18, %v5839_v42 }
 0x73e   :  { %v2744_v55 = vsel %vm2662_vm14, %v2743_v34, %v2739_v29 }
 0x73f   :  { %v2949_v49 = vpop.xlane.xlu0 %2948  ;;  %v2749_v46 = vsel %vm2669_vm15, %v2748_v53, %v2744_v55 }
 0x740   :  { %v2751_v19 = vsel %vm2750_vm0, %v2749_v46, %v2670_v1  ;;  %v3136_v32 = vrot.slane %v2949_v49, %v5839_v42  ;;  %v3058_v42 = vsel %vm2662_vm14, %v3057_v51, %v3053_v4 }
 0x741   :  { %v2754_v62 = vsel %vm2753_vm1, %v2751_v19, 0.0  ;;  %v3063_v56 = vsel %vm2669_vm15, %v3062_v60, %v3058_v42 }
 0x742   :  { %2755 = vadd.xlane.f32.xlu1 %v2754_v62  ;;  %v3137_v9 = vsel %vm2662_vm14, %v3136_v32, %v3132_v41 }
 0x743   :  { %v2952_v61 = vpop.xlane.xlu0 %2951 }
 0x744   :  { %v3141_v39 = vrot.slane %v2952_v61, %v5846_v0 }
 0x746   :  { %v3142_v31 = vsel %vm2669_vm15, %v3141_v39, %v3137_v9 }
 0x747   :  { %v3143_v8 = vsel %vm2750_vm0, %v3142_v31, %v3063_v56 }
 0x748   :  { %v3145_v47 = vsel %vm2753_vm1, %v3143_v8, 0.0 }
 0x749   :  { %3146 = vadd.xlane.f32.xlu0 %v3145_v47 }
 0x7cf   :  { %v2756_v12 = vpop.xlane.xlu1 %2755 }
 0x7d0   :  { %v2758_v0 = vsel %vm2757_vm2, %v2756_v12, 0.0 }
 0x7d6   :  { %v3147_v44 = vpop.xlane.xlu0 %3146 }
 0x7d7   :  { %v3149_v6 = vsel %vm3148_vm3, %v3147_v44, 0.0 }
 0x7d8   :  { %v3150_v38 = vadd.f32 %v3149_v6, %v2758_v0 }
 0x7da   :  { %v3158_v24 = vadd.f32 %v3319_v17, %v3150_v38 }
 0x7dc   :  { %3160 = vst.msk [vmem:[#allocation3] sm:$0x3] %vm3159_vm4, %v3158_v24 }
 0x7dd   :  { %3829 = shalt.err (!%p3826_p4)
}
 0x7de   :  { %s3830_s2 = scalar_lea.hbm %s5948_s11, 32 }
 0x7df   :  { %p3831_p5 = scmp.ne.s32.totalorder %s5948_s11, %s3830_s2  ;;  %p3834_p6 = scmp.lt.u32.totalorder %s3830_s2, %s5948_s11 }
 0x7e1   :  { %p3836_p7 = pnand %p3834_p6, %p3831_p5 }
 0x7e3   :  { %3839 = shalt.err (!%p3836_p7)
}
 0x7e4   :  { %3170 = dma.vmem_to_hbm [thread:$0]  %s3168_s16, 32, %s5948_s11, [#allocation4]  }
 0x7e5   :  { %3840 = dma.done.wait [#allocation4], 32  }
 0x7e6   :  { %3841 = vsyncadd [#allocation4], 4294967264 }
 0x7e7   :  { %3174 = vsyncpa [#allocation4], 1 }

</bundles_post_ra>
